<compile_context>
chip_gen: v6e
topology: v6e:2x2x1
jax: 0.10.0
libtpu: 0.0.40
codegen_flags: <defaults>
</compile_context>

<pallas_src>
import jax
import jax.numpy as jnp
from jax.experimental import pallas as pl
from jax.experimental.pallas import tpu as pltpu

BN_EPS = 1e-5
LANE = 128                      # channel padding target (lane-dense stores)
MXU_DTYPE = jnp.bfloat16        # MXU operand dtype; accumulation stays f32
VMEM_LIMIT = 48 * 1024 * 1024   # under v7x's 64 MiB / TC, above default scoped limit


def _round_up(n, m):
    return ((n + m - 1) // m) * m


def _tile(dim, target, align):
    """Largest multiple of `align` that divides `dim` and is <= target, else full dim."""
    if dim <= target:
        return dim
    t = (target // align) * align
    while t >= align:
        if dim % t == 0:
            return t
        t -= align
    return dim


# ----------------------------------------------------------------------------
# Pallas kernels
# ----------------------------------------------------------------------------
def _bn_relu_kernel(x_ref, scale_ref, bias_ref, o_ref):
    # y = relu(x * scale + bias)   (folded inference batchnorm + relu), f32 math
    o_ref[...] = jnp.maximum(
        x_ref[...] * scale_ref[...] + bias_ref[...], 0.0).astype(o_ref.dtype)


def _conv_bn_relu_kernel(a_ref, b_ref, scale_ref, bias_ref, o_ref, acc_ref):
    # tiled conv-as-matmul with fused bn2+relu epilogue
    @pl.when(pl.program_id(2) == 0)
    def _():
        acc_ref[...] = jnp.zeros_like(acc_ref)

    acc_ref[...] += jnp.dot(a_ref[...], b_ref[...],
                            preferred_element_type=jnp.float32)

    @pl.when(pl.program_id(2) == pl.num_programs(2) - 1)
    def _():
        o_ref[...] = jnp.maximum(
            acc_ref[...] * scale_ref[...] + bias_ref[...], 0.0
        ).astype(o_ref.dtype)


def _conv_add_kernel(a_ref, b_ref, r_ref, o_ref, acc_ref):
    # tiled conv-as-matmul with fused identity-residual add
    @pl.when(pl.program_id(2) == 0)
    def _():
        acc_ref[...] = jnp.zeros_like(acc_ref)

    acc_ref[...] += jnp.dot(a_ref[...], b_ref[...],
                            preferred_element_type=jnp.float32)

    @pl.when(pl.program_id(2) == pl.num_programs(2) - 1)
    def _():
        o_ref[...] = (acc_ref[...] + r_ref[...].astype(jnp.float32)
                      ).astype(o_ref.dtype)


def _conv_sc_kernel(a_ref, b_ref, asc_ref, wsc_ref, o_ref, acc_ref):
    # tiled conv-as-matmul with the 1x1 shortcut conv fused in: the accumulator
    # is seeded with asc @ wsc instead of zeros.
    sc = jnp.dot(asc_ref[...], wsc_ref[...], preferred_element_type=jnp.float32)

    @pl.when(pl.program_id(2) == 0)
    def _():
        acc_ref[...] = sc

    acc_ref[...] += jnp.dot(a_ref[...], b_ref[...],
                            preferred_element_type=jnp.float32)

    @pl.when(pl.program_id(2) == pl.num_programs(2) - 1)
    def _():
        o_ref[...] = acc_ref[...].astype(o_ref.dtype)


# ----------------------------------------------------------------------------
# pallas_call wrappers
# ----------------------------------------------------------------------------
def bn_relu(x2d, scale, bias, out_dtype):
    M, C = x2d.shape
    tm = _tile(M, 512, 8)
    return pl.pallas_call(
        _bn_relu_kernel,
        out_shape=jax.ShapeDtypeStruct((M, C), out_dtype),
        grid=(M // tm,),
        in_specs=[pl.BlockSpec((tm, C), lambda i: (i, 0)),
                  pl.BlockSpec((1, C), lambda i: (0, 0)),
                  pl.BlockSpec((1, C), lambda i: (0, 0))],
        out_specs=pl.BlockSpec((tm, C), lambda i: (i, 0)),
        compiler_params=pltpu.CompilerParams(
            dimension_semantics=("parallel",),
            vmem_limit_bytes=VMEM_LIMIT),
    )(x2d, scale, bias)


def _mm_tiles(M, K, N):
    return _tile(M, 512, 8), _tile(N, 256, 128), _tile(K, 512, 128)


def conv_bn_relu_matmul(a, b, scale, bias, out_dtype):
    M, K = a.shape
    _, N = b.shape
    tm, tn, tk = _mm_tiles(M, K, N)
    return pl.pallas_call(
        _conv_bn_relu_kernel,
        out_shape=jax.ShapeDtypeStruct((M, N), out_dtype),
        grid=(M // tm, N // tn, K // tk),
        in_specs=[pl.BlockSpec((tm, tk), lambda i, j, k: (i, k)),
                  pl.BlockSpec((tk, tn), lambda i, j, k: (k, j)),
                  pl.BlockSpec((1, tn), lambda i, j, k: (0, j)),
                  pl.BlockSpec((1, tn), lambda i, j, k: (0, j))],
        out_specs=pl.BlockSpec((tm, tn), lambda i, j, k: (i, j)),
        scratch_shapes=[pltpu.VMEM((tm, tn), jnp.float32)],
        compiler_params=pltpu.CompilerParams(
            dimension_semantics=("parallel", "parallel", "arbitrary"),
            vmem_limit_bytes=VMEM_LIMIT),
    )(a, b, scale, bias)


def conv_add_matmul(a, b, r):
    M, K = a.shape
    _, N = b.shape
    tm, tn, tk = _mm_tiles(M, K, N)
    return pl.pallas_call(
        _conv_add_kernel,
        out_shape=jax.ShapeDtypeStruct((M, N), jnp.float32),
        grid=(M // tm, N // tn, K // tk),
        in_specs=[pl.BlockSpec((tm, tk), lambda i, j, k: (i, k)),
                  pl.BlockSpec((tk, tn), lambda i, j, k: (k, j)),
                  pl.BlockSpec((tm, tn), lambda i, j, k: (i, j))],
        out_specs=pl.BlockSpec((tm, tn), lambda i, j, k: (i, j)),
        scratch_shapes=[pltpu.VMEM((tm, tn), jnp.float32)],
        compiler_params=pltpu.CompilerParams(
            dimension_semantics=("parallel", "parallel", "arbitrary"),
            vmem_limit_bytes=VMEM_LIMIT),
    )(a, b, r)


def conv_sc_matmul(a, b, asc, wsc):
    M, K = a.shape
    _, N = b.shape
    Ksc = asc.shape[1]
    tm, tn, tk = _mm_tiles(M, K, N)
    return pl.pallas_call(
        _conv_sc_kernel,
        out_shape=jax.ShapeDtypeStruct((M, N), jnp.float32),
        grid=(M // tm, N // tn, K // tk),
        in_specs=[pl.BlockSpec((tm, tk), lambda i, j, k: (i, k)),
                  pl.BlockSpec((tk, tn), lambda i, j, k: (k, j)),
                  pl.BlockSpec((tm, Ksc), lambda i, j, k: (i, 0)),
                  pl.BlockSpec((Ksc, tn), lambda i, j, k: (0, j))],
        out_specs=pl.BlockSpec((tm, tn), lambda i, j, k: (i, j)),
        scratch_shapes=[pltpu.VMEM((tm, tn), jnp.float32)],
        compiler_params=pltpu.CompilerParams(
            dimension_semantics=("parallel", "parallel", "arbitrary"),
            vmem_limit_bytes=VMEM_LIMIT),
    )(a, b, asc, wsc)


# ----------------------------------------------------------------------------
# Conv glue (im2col layout plumbing; the matmuls themselves run in Pallas)
# ----------------------------------------------------------------------------
def _im2col_3x3(x, stride):
    # x: NHWC (channels already lane-padded), pad=1, kernel=3
    N, H, W, C = x.shape
    xp = jnp.pad(x, ((0, 0), (1, 1), (1, 1), (0, 0)))
    Ho = (H + 2 - 3) // stride + 1
    Wo = (W + 2 - 3) // stride + 1
    cols = []
    for kh in range(3):
        for kw in range(3):
            cols.append(xp[:,
                           kh:kh + stride * (Ho - 1) + 1:stride,
                           kw:kw + stride * (Wo - 1) + 1:stride, :])
    patches = jnp.stack(cols, axis=3)            # (N, Ho, Wo, 9, C)
    return patches.reshape(N * Ho * Wo, 9 * C), (N, Ho, Wo)


# ----------------------------------------------------------------------------
# Parameter construction (deterministic, synthetic) + one-time kernel prep
# ----------------------------------------------------------------------------
def _bn_fold(gamma, beta, mean, var):
    scale = gamma / jnp.sqrt(var + BN_EPS)
    bias = beta - mean * scale
    return scale, bias


def make_basic_block_params(key, in_planes, out_planes):
    ks = jax.random.split(key, 9)
    p = {}
    g1 = 1.0 + 0.1 * jax.random.normal(ks[0], (in_planes,), jnp.float32)
    b1 = 0.1 * jax.random.normal(ks[1], (in_planes,), jnp.float32)
    m1 = 0.1 * jax.random.normal(ks[2], (in_planes,), jnp.float32)
    v1 = jax.random.uniform(ks[3], (in_planes,), jnp.float32, 0.5, 1.5)
    p["bn1_scale"], p["bn1_bias"] = _bn_fold(g1, b1, m1, v1)
    g2 = 1.0 + 0.1 * jax.random.normal(ks[4], (out_planes,), jnp.float32)
    b2 = 0.1 * jax.random.normal(ks[5], (out_planes,), jnp.float32)
    m2 = 0.1 * jax.random.normal(ks[6], (out_planes,), jnp.float32)
    v2 = jax.random.uniform(ks[7], (out_planes,), jnp.float32, 0.5, 1.5)
    p["bn2_scale"], p["bn2_bias"] = _bn_fold(g2, b2, m2, v2)
    kw = jax.random.split(ks[8], 3)
    p["conv1_w"] = 0.1 * jax.random.normal(kw[0], (out_planes, in_planes, 3, 3), jnp.float32)
    p["conv2_w"] = 0.1 * jax.random.normal(kw[1], (out_planes, out_planes, 3, 3), jnp.float32)
    if in_planes != out_planes:
        p["sc_w"] = 0.1 * jax.random.normal(kw[2], (out_planes, in_planes, 1, 1), jnp.float32)
    return p


def _prep_w3x3(w, cin_p, cout_p):
    # torch (Cout, Cin, 3, 3) -> lane-padded (9*Cin_p, Cout_p), bf16
    cout, cin = w.shape[0], w.shape[1]
    w = jnp.transpose(w, (2, 3, 1, 0))                                   # (3,3,Cin,Cout)
    w = jnp.pad(w, ((0, 0), (0, 0), (0, cin_p - cin), (0, cout_p - cout)))
    return w.reshape(9 * cin_p, cout_p).astype(MXU_DTYPE)


def _prep_w1x1(w, cin_p, cout_p):
    cout, cin = w.shape[0], w.shape[1]
    w = w.reshape(cout, cin).T                                           # (Cin, Cout)
    w = jnp.pad(w, ((0, cin_p - cin), (0, cout_p - cout)))
    return w.astype(MXU_DTYPE)


def _prep_bn(scale, bias, c_p):
    c = scale.shape[0]
    return (jnp.pad(scale, (0, c_p - c)).reshape(1, c_p),
            jnp.pad(bias, (0, c_p - c)).reshape(1, c_p))


def prepare_basic_block_params(raw, cin, cout):
    # Hoisted once at parameter-construction time (weight transpose/pad/cast).
    cin_p, cout_p = _round_up(cin, LANE), _round_up(cout, LANE)
    p = {}
    p["bn1_scale"], p["bn1_bias"] = _prep_bn(raw["bn1_scale"], raw["bn1_bias"], cin_p)
    p["bn2_scale"], p["bn2_bias"] = _prep_bn(raw["bn2_scale"], raw["bn2_bias"], cout_p)
    p["conv1_w2d"] = _prep_w3x3(raw["conv1_w"], cin_p, cout_p)
    p["conv2_w2d"] = _prep_w3x3(raw["conv2_w"], cout_p, cout_p)
    if "sc_w" in raw:
        p["sc_w2d"] = _prep_w1x1(raw["sc_w"], cin_p, cout_p)
    return p


def make_network_block_params(key, nb_layers, in_planes, out_planes):
    raws = []
    keys = jax.random.split(key, nb_layers)
    for i in range(int(nb_layers)):
        cin = in_planes if i == 0 else out_planes
        raws.append(make_basic_block_params(keys[i], cin, out_planes))
    preps = []
    for i, raw in enumerate(raws):
        cin = in_planes if i == 0 else out_planes
        preps.append(prepare_basic_block_params(raw, cin, out_planes))
    return raws, preps


# ----------------------------------------------------------------------------
# Forward passes (Pallas)
# ----------------------------------------------------------------------------
def basic_block_forward(x, p, stride, equal):
    # x: NHWC f32, channels lane-padded (zeros in the padding lanes)
    N, H, W, C = x.shape
    act1 = bn_relu(x.reshape(N * H * W, C), p["bn1_scale"], p["bn1_bias"],
                   MXU_DTYPE).reshape(N, H, W, C)

    # conv1 (stride) with fused bn2+relu epilogue
    patches1, (_, Ho, Wo) = _im2col_3x3(act1, stride)
    cout_p = p["conv1_w2d"].shape[1]
    out = conv_bn_relu_matmul(patches1, p["conv1_w2d"],
                              p["bn2_scale"], p["bn2_bias"], MXU_DTYPE)
    out = out.reshape(N, Ho, Wo, cout_p)
    # TODO(synk): dropout identity (dropRate=0.0 / eval)

    # conv2 (stride 1) with fused residual / 1x1-shortcut
    patches2, _ = _im2col_3x3(out, 1)
    if equal:
        r = x.reshape(N * H * W, C)                                  # identity shortcut
        y = conv_add_matmul(patches2, p["conv2_w2d"], r)
    else:
        asc = act1[:, ::stride, ::stride, :].reshape(N * Ho * Wo, C)  # 1x1 shortcut input
        y = conv_sc_matmul(patches2, p["conv2_w2d"], asc, p["sc_w2d"])
    return y.reshape(N, Ho, Wo, cout_p)


def network_block_forward(x_nchw, prepared_params, in_planes, out_planes, stride):
    # Accept NCHW (PyTorch convention); NHWC + lane-padded channels internally.
    cin_p = _round_up(in_planes, LANE)
    x = jnp.transpose(x_nchw, (0, 2, 3, 1)).astype(jnp.float32)
    x = jnp.pad(x, ((0, 0), (0, 0), (0, 0), (0, cin_p - in_planes)))
    for i, p in enumerate(prepared_params):
        equal = (in_planes == out_planes) if i == 0 else True
        s = stride if i == 0 else 1
        x = basic_block_forward(x, p, s, equal)
    x = x[..., :out_planes]
    return jnp.transpose(x, (0, 3, 1, 2))


# ----------------------------------------------------------------------------
# Pure-JAX reference (f32) for validation
# ----------------------------------------------------------------------------
def _ref_bn_relu(x, scale, bias):
    return jnp.maximum(x * scale[None, :, None, None] + bias[None, :, None, None], 0.0)


def _ref_conv(x, w, stride, pad):
    return jax.lax.conv_general_dilated(
        x, w, (stride, stride), ((pad, pad), (pad, pad)),
        dimension_numbers=("NCHW", "OIHW", "NCHW"))


def _ref_basic_block(x, raw, stride, equal):
    act1 = _ref_bn_relu(x, raw["bn1_scale"], raw["bn1_bias"])
    out = _ref_conv(act1, raw["conv1_w"], stride, 1)
    out = _ref_bn_relu(out, raw["bn2_scale"], raw["bn2_bias"])
    out = _ref_conv(out, raw["conv2_w"], 1, 1)
    sc = x if equal else _ref_conv(act1, raw["sc_w"], stride, 0)
    return sc + out


def _ref_network_block(x, raws, in_planes, out_planes, stride):
    for i, raw in enumerate(raws):
        equal = (in_planes == out_planes) if i == 0 else True
        s = stride if i == 0 else 1
        x = _ref_basic_block(x, raw, s, equal)
    return x


# ----------------------------------------------------------------------------
if __name__ == "__main__":
    key = jax.random.PRNGKey(0)
    k_x, k_p = jax.random.split(key)

    # NetworkBlock(nb_layers=2, in_planes=4, out_planes=8, block=BasicBlock,
    #              stride=2, dropRate=0.0)
    nb_layers, in_planes, out_planes, stride = 2, 4, 8, 2
    x = jax.random.normal(k_x, (2, in_planes, 16, 16), jnp.float32)  # NCHW

    raws, preps = make_network_block_params(k_p, nb_layers, in_planes, out_planes)

    fwd = jax.jit(lambda xx: network_block_forward(xx, preps, in_planes, out_planes, stride))
    out = jax.block_until_ready(fwd(x))

    expected_shape = (2, out_planes, 16 // stride, 16 // stride)
    assert out.shape == expected_shape, (out.shape, expected_shape)
    assert jnp.all(jnp.isfinite(out))

    # Validate against a pure-JAX f32 reference (loose tol: bf16 MXU operands).
    ref = _ref_network_block(x, raws, in_planes, out_planes, stride)
    max_err = float(jnp.max(jnp.abs(out - ref)))
    assert max_err < 1e-1, f"max abs error vs reference: {max_err}"

    print("KERNEL_OK")
</pallas_src>

<mosaic_0001>
module attributes {stable_mosaic.version = 11 : i64} {
  func.func @_bn_relu_kernel(%arg0: i32, %arg1: memref<512x128xf32, #tpu.memory_space<vmem>>, %arg2: memref<1x128xf32, #tpu.memory_space<vmem>>, %arg3: memref<1x128xf32, #tpu.memory_space<vmem>>, %arg4: memref<512x128xbf16, #tpu.memory_space<vmem>>) attributes {dimension_semantics = [#tpu.dimension_semantics<parallel>], iteration_bounds = array<i64: 1>, scalar_prefetch = 0 : i64, scratch_operands = 0 : i64, tpu.core_type = #tpu.core_type<tc>, window_params = [{transform_indices = @transform_0, window_bounds = array<i64: 512, 128>}, {pipeline_mode = #tpu.pipeline_mode<synchronous>, transform_indices = @transform_1, window_bounds = array<i64: 1, 128>}, {pipeline_mode = #tpu.pipeline_mode<synchronous>, transform_indices = @transform_2, window_bounds = array<i64: 1, 128>}, {transform_indices = @transform_3, window_bounds = array<i64: 512, 128>}]} {
    %c0 = arith.constant 0 : index
    %c0_0 = arith.constant 0 : index
    %0 = vector.load %arg1[%c0, %c0_0] : memref<512x128xf32, #tpu.memory_space<vmem>>, vector<512x128xf32>
    %c0_1 = arith.constant 0 : index
    %c0_2 = arith.constant 0 : index
    %1 = vector.load %arg2[%c0_1, %c0_2] : memref<1x128xf32, #tpu.memory_space<vmem>>, vector<1x128xf32>
    %2 = vector.broadcast %1 : vector<1x128xf32> to vector<512x128xf32>
    %3 = arith.mulf %0, %2 : vector<512x128xf32>
    %c0_3 = arith.constant 0 : index
    %c0_4 = arith.constant 0 : index
    %4 = vector.load %arg3[%c0_3, %c0_4] : memref<1x128xf32, #tpu.memory_space<vmem>>, vector<1x128xf32>
    %5 = vector.broadcast %4 : vector<1x128xf32> to vector<512x128xf32>
    %6 = arith.addf %3, %5 : vector<512x128xf32>
    %cst = arith.constant 0.000000e+00 : f32
    %7 = vector.broadcast %cst : f32 to vector<512x128xf32>
    %8 = arith.maximumf %6, %7 : vector<512x128xf32>
    %9 = arith.truncf %8 : vector<512x128xf32> to vector<512x128xbf16>
    %c0_5 = arith.constant 0 : index
    %c0_6 = arith.constant 0 : index
    %10 = vector.load %arg4[%c0_5, %c0_6] : memref<512x128xbf16, #tpu.memory_space<vmem>>, vector<512x128xbf16>
    tpu.vector_store %arg4[%c0_5, %c0_6], %9 {strides = array<i32>} : memref<512x128xbf16, #tpu.memory_space<vmem>>, vector<512x128xbf16>,
    return
  }
  func.func @transform_0(%arg0: i32) -> (i32, i32) {
    %c0_i32 = arith.constant 0 : i32
    %c0_i32_0 = arith.constant 0 : i32
    return %arg0, %c0_i32 : i32, i32
  }
  func.func @transform_1(%arg0: i32) -> (i32, i32) {
    %c0_i32 = arith.constant 0 : i32
    %c0_i32_0 = arith.constant 0 : i32
    %c0_i32_1 = arith.constant 0 : i32
    return %c0_i32, %c0_i32_0 : i32, i32
  }
  func.func @transform_2(%arg0: i32) -> (i32, i32) {
    %c0_i32 = arith.constant 0 : i32
    %c0_i32_0 = arith.constant 0 : i32
    %c0_i32_1 = arith.constant 0 : i32
    return %c0_i32, %c0_i32_0 : i32, i32
  }
  func.func @transform_3(%arg0: i32) -> (i32, i32) {
    %c0_i32 = arith.constant 0 : i32
    %c0_i32_0 = arith.constant 0 : i32
    return %arg0, %c0_i32 : i32, i32
  }
}

module attributes {stable_mosaic.version = 11 : i64} {
  func.func @_conv_bn_relu_kernel(%arg0: i32, %arg1: i32, %arg2: i32, %arg3: memref<128x384xbf16, #tpu.memory_space<vmem>>, %arg4: memref<384x128xbf16, #tpu.memory_space<vmem>>, %arg5: memref<1x128xf32, #tpu.memory_space<vmem>>, %arg6: memref<1x128xf32, #tpu.memory_space<vmem>>, %arg7: memref<128x128xbf16, #tpu.memory_space<vmem>>, %arg8: memref<128x128xf32, #tpu.memory_space<vmem>>) attributes {dimension_semantics = [#tpu.dimension_semantics<parallel>, #tpu.dimension_semantics<parallel>, #tpu.dimension_semantics<arbitrary>], iteration_bounds = array<i64: 1, 1, 3>, scalar_prefetch = 0 : i64, scratch_operands = 1 : i64, tpu.core_type = #tpu.core_type<tc>, window_params = [{transform_indices = @transform_0, window_bounds = array<i64: 128, 384>}, {transform_indices = @transform_1, window_bounds = array<i64: 384, 128>}, {transform_indices = @transform_2, window_bounds = array<i64: 1, 128>}, {transform_indices = @transform_3, window_bounds = array<i64: 1, 128>}, {transform_indices = @transform_4, window_bounds = array<i64: 128, 128>}]} {
    %c0_i32 = arith.constant 0 : i32
    %0 = arith.cmpi eq, %arg2, %c0_i32 : i32
    %1 = arith.extui %0 : i1 to i32
    %c0_i32_0 = arith.constant 0 : i32
    %2 = arith.cmpi ne, %1, %c0_i32_0 : i32
    scf.if %2 {
      %cst_9 = arith.constant 0.000000e+00 : f32
      %12 = vector.broadcast %cst_9 : f32 to vector<128x128xf32>
      %c0_10 = arith.constant 0 : index
      %c0_11 = arith.constant 0 : index
      %13 = vector.load %arg8[%c0_10, %c0_11] : memref<128x128xf32, #tpu.memory_space<vmem>>, vector<128x128xf32>
      tpu.vector_store %arg8[%c0_10, %c0_11], %12 {strides = array<i32>} : memref<128x128xf32, #tpu.memory_space<vmem>>, vector<128x128xf32>,
    } else {
    }
    %c0 = arith.constant 0 : index
    %c0_1 = arith.constant 0 : index
    %3 = vector.load %arg8[%c0, %c0_1] : memref<128x128xf32, #tpu.memory_space<vmem>>, vector<128x128xf32>
    %c0_2 = arith.constant 0 : index
    %c0_3 = arith.constant 0 : index
    %4 = vector.load %arg3[%c0_2, %c0_3] : memref<128x384xbf16, #tpu.memory_space<vmem>>, vector<128x384xbf16>
    %c0_4 = arith.constant 0 : index
    %c0_5 = arith.constant 0 : index
    %5 = vector.load %arg4[%c0_4, %c0_5] : memref<384x128xbf16, #tpu.memory_space<vmem>>, vector<384x128xbf16>
    %cst = arith.constant dense<0.000000e+00> : vector<128x128xf32>
    %6 = tpu.matmul %4, %5, %cst {dimension_numbers = #tpu.dot_dimension_numbers<[1], [0], [0], [1], [0, 0, 1, 1], [], []>} : vector<128x384xbf16>, vector<384x128xbf16>, vector<128x128xf32> -> vector<128x128xf32>
    %7 = arith.addf %3, %6 : vector<128x128xf32>
    %c0_6 = arith.constant 0 : index
    %c0_7 = arith.constant 0 : index
    %8 = vector.load %arg8[%c0_6, %c0_7] : memref<128x128xf32, #tpu.memory_space<vmem>>, vector<128x128xf32>
    tpu.vector_store %arg8[%c0_6, %c0_7], %7 {strides = array<i32>} : memref<128x128xf32, #tpu.memory_space<vmem>>, vector<128x128xf32>,
    %c2_i32 = arith.constant 2 : i32
    %9 = arith.cmpi eq, %arg2, %c2_i32 : i32
    %10 = arith.extui %9 : i1 to i32
    %c0_i32_8 = arith.constant 0 : i32
    %11 = arith.cmpi ne, %10, %c0_i32_8 : i32
    scf.if %11 {
      %c0_9 = arith.constant 0 : index
      %c0_10 = arith.constant 0 : index
      %12 = vector.load %arg8[%c0_9, %c0_10] : memref<128x128xf32, #tpu.memory_space<vmem>>, vector<128x128xf32>
      %c0_11 = arith.constant 0 : index
      %c0_12 = arith.constant 0 : index
      %13 = vector.load %arg5[%c0_11, %c0_12] : memref<1x128xf32, #tpu.memory_space<vmem>>, vector<1x128xf32>
      %14 = vector.broadcast %13 : vector<1x128xf32> to vector<128x128xf32>
      %15 = arith.mulf %12, %14 : vector<128x128xf32>
      %c0_13 = arith.constant 0 : index
      %c0_14 = arith.constant 0 : index
      %16 = vector.load %arg6[%c0_13, %c0_14] : memref<1x128xf32, #tpu.memory_space<vmem>>, vector<1x128xf32>
      %17 = vector.broadcast %16 : vector<1x128xf32> to vector<128x128xf32>
      %18 = arith.addf %15, %17 : vector<128x128xf32>
      %cst_15 = arith.constant 0.000000e+00 : f32
      %19 = vector.broadcast %cst_15 : f32 to vector<128x128xf32>
      %20 = arith.maximumf %18, %19 : vector<128x128xf32>
      %21 = arith.truncf %20 : vector<128x128xf32> to vector<128x128xbf16>
      %c0_16 = arith.constant 0 : index
      %c0_17 = arith.constant 0 : index
      %22 = vector.load %arg7[%c0_16, %c0_17] : memref<128x128xbf16, #tpu.memory_space<vmem>>, vector<128x128xbf16>
      tpu.vector_store %arg7[%c0_16, %c0_17], %21 {strides = array<i32>} : memref<128x128xbf16, #tpu.memory_space<vmem>>, vector<128x128xbf16>,
    } else {
    }
    return
  }
  func.func @transform_0(%arg0: i32, %arg1: i32, %arg2: i32) -> (i32, i32) {
    %c0_i32 = arith.constant 0 : i32
    return %arg0, %arg2 : i32, i32
  }
  func.func @transform_1(%arg0: i32, %arg1: i32, %arg2: i32) -> (i32, i32) {
    %c0_i32 = arith.constant 0 : i32
    return %arg2, %arg1 : i32, i32
  }
  func.func @transform_2(%arg0: i32, %arg1: i32, %arg2: i32) -> (i32, i32) {
    %c0_i32 = arith.constant 0 : i32
    %c0_i32_0 = arith.constant 0 : i32
    return %c0_i32, %arg1 : i32, i32
  }
  func.func @transform_3(%arg0: i32, %arg1: i32, %arg2: i32) -> (i32, i32) {
    %c0_i32 = arith.constant 0 : i32
    %c0_i32_0 = arith.constant 0 : i32
    return %c0_i32, %arg1 : i32, i32
  }
  func.func @transform_4(%arg0: i32, %arg1: i32, %arg2: i32) -> (i32, i32) {
    %c0_i32 = arith.constant 0 : i32
    return %arg0, %arg1 : i32, i32
  }
}

module attributes {stable_mosaic.version = 11 : i64} {
  func.func @_bn_relu_kernel(%arg0: i32, %arg1: memref<128x128xf32, #tpu.memory_space<vmem>>, %arg2: memref<1x128xf32, #tpu.memory_space<vmem>>, %arg3: memref<1x128xf32, #tpu.memory_space<vmem>>, %arg4: memref<128x128xbf16, #tpu.memory_space<vmem>>) attributes {dimension_semantics = [#tpu.dimension_semantics<parallel>], iteration_bounds = array<i64: 1>, scalar_prefetch = 0 : i64, scratch_operands = 0 : i64, tpu.core_type = #tpu.core_type<tc>, window_params = [{transform_indices = @transform_0, window_bounds = array<i64: 128, 128>}, {pipeline_mode = #tpu.pipeline_mode<synchronous>, transform_indices = @transform_1, window_bounds = array<i64: 1, 128>}, {pipeline_mode = #tpu.pipeline_mode<synchronous>, transform_indices = @transform_2, window_bounds = array<i64: 1, 128>}, {transform_indices = @transform_3, window_bounds = array<i64: 128, 128>}]} {
    %c0 = arith.constant 0 : index
    %c0_0 = arith.constant 0 : index
    %0 = vector.load %arg1[%c0, %c0_0] : memref<128x128xf32, #tpu.memory_space<vmem>>, vector<128x128xf32>
    %c0_1 = arith.constant 0 : index
    %c0_2 = arith.constant 0 : index
    %1 = vector.load %arg2[%c0_1, %c0_2] : memref<1x128xf32, #tpu.memory_space<vmem>>, vector<1x128xf32>
    %2 = vector.broadcast %1 : vector<1x128xf32> to vector<128x128xf32>
    %3 = arith.mulf %0, %2 : vector<128x128xf32>
    %c0_3 = arith.constant 0 : index
    %c0_4 = arith.constant 0 : index
    %4 = vector.load %arg3[%c0_3, %c0_4] : memref<1x128xf32, #tpu.memory_space<vmem>>, vector<1x128xf32>
    %5 = vector.broadcast %4 : vector<1x128xf32> to vector<128x128xf32>
    %6 = arith.addf %3, %5 : vector<128x128xf32>
    %cst = arith.constant 0.000000e+00 : f32
    %7 = vector.broadcast %cst : f32 to vector<128x128xf32>
    %8 = arith.maximumf %6, %7 : vector<128x128xf32>
    %9 = arith.truncf %8 : vector<128x128xf32> to vector<128x128xbf16>
    %c0_5 = arith.constant 0 : index
    %c0_6 = arith.constant 0 : index
    %10 = vector.load %arg4[%c0_5, %c0_6] : memref<128x128xbf16, #tpu.memory_space<vmem>>, vector<128x128xbf16>
    tpu.vector_store %arg4[%c0_5, %c0_6], %9 {strides = array<i32>} : memref<128x128xbf16, #tpu.memory_space<vmem>>, vector<128x128xbf16>,
    return
  }
  func.func @transform_0(%arg0: i32) -> (i32, i32) {
    %c0_i32 = arith.constant 0 : i32
    %c0_i32_0 = arith.constant 0 : i32
    return %arg0, %c0_i32 : i32, i32
  }
  func.func @transform_1(%arg0: i32) -> (i32, i32) {
    %c0_i32 = arith.constant 0 : i32
    %c0_i32_0 = arith.constant 0 : i32
    %c0_i32_1 = arith.constant 0 : i32
    return %c0_i32, %c0_i32_0 : i32, i32
  }
  func.func @transform_2(%arg0: i32) -> (i32, i32) {
    %c0_i32 = arith.constant 0 : i32
    %c0_i32_0 = arith.constant 0 : i32
    %c0_i32_1 = arith.constant 0 : i32
    return %c0_i32, %c0_i32_0 : i32, i32
  }
  func.func @transform_3(%arg0: i32) -> (i32, i32) {
    %c0_i32 = arith.constant 0 : i32
    %c0_i32_0 = arith.constant 0 : i32
    return %arg0, %c0_i32 : i32, i32
  }
}

module attributes {stable_mosaic.version = 11 : i64} {
  func.func @_conv_sc_kernel(%arg0: i32, %arg1: i32, %arg2: i32, %arg3: memref<128x384xbf16, #tpu.memory_space<vmem>>, %arg4: memref<384x128xbf16, #tpu.memory_space<vmem>>, %arg5: memref<128x128xbf16, #tpu.memory_space<vmem>>, %arg6: memref<128x128xbf16, #tpu.memory_space<vmem>>, %arg7: memref<128x128xf32, #tpu.memory_space<vmem>>, %arg8: memref<128x128xf32, #tpu.memory_space<vmem>>) attributes {dimension_semantics = [#tpu.dimension_semantics<parallel>, #tpu.dimension_semantics<parallel>, #tpu.dimension_semantics<arbitrary>], iteration_bounds = array<i64: 1, 1, 3>, scalar_prefetch = 0 : i64, scratch_operands = 1 : i64, tpu.core_type = #tpu.core_type<tc>, window_params = [{transform_indices = @transform_0, window_bounds = array<i64: 128, 384>}, {transform_indices = @transform_1, window_bounds = array<i64: 384, 128>}, {transform_indices = @transform_2, window_bounds = array<i64: 128, 128>}, {transform_indices = @transform_3, window_bounds = array<i64: 128, 128>}, {transform_indices = @transform_4, window_bounds = array<i64: 128, 128>}]} {
    %c0 = arith.constant 0 : index
    %c0_0 = arith.constant 0 : index
    %0 = vector.load %arg5[%c0, %c0_0] : memref<128x128xbf16, #tpu.memory_space<vmem>>, vector<128x128xbf16>
    %c0_1 = arith.constant 0 : index
    %c0_2 = arith.constant 0 : index
    %1 = vector.load %arg6[%c0_1, %c0_2] : memref<128x128xbf16, #tpu.memory_space<vmem>>, vector<128x128xbf16>
    %cst = arith.constant dense<0.000000e+00> : vector<128x128xf32>
    %2 = tpu.matmul %0, %1, %cst {dimension_numbers = #tpu.dot_dimension_numbers<[1], [0], [0], [1], [0, 0, 1, 1], [], []>} : vector<128x128xbf16>, vector<128x128xbf16>, vector<128x128xf32> -> vector<128x128xf32>
    %c0_i32 = arith.constant 0 : i32
    %3 = arith.cmpi eq, %arg2, %c0_i32 : i32
    %4 = arith.extui %3 : i1 to i32
    %c0_i32_3 = arith.constant 0 : i32
    %5 = arith.cmpi ne, %4, %c0_i32_3 : i32
    scf.if %5 {
      %c0_14 = arith.constant 0 : index
      %c0_15 = arith.constant 0 : index
      %15 = vector.load %arg8[%c0_14, %c0_15] : memref<128x128xf32, #tpu.memory_space<vmem>>, vector<128x128xf32>
      tpu.vector_store %arg8[%c0_14, %c0_15], %2 {strides = array<i32>} : memref<128x128xf32, #tpu.memory_space<vmem>>, vector<128x128xf32>,
    } else {
    }
    %c0_4 = arith.constant 0 : index
    %c0_5 = arith.constant 0 : index
    %6 = vector.load %arg8[%c0_4, %c0_5] : memref<128x128xf32, #tpu.memory_space<vmem>>, vector<128x128xf32>
    %c0_6 = arith.constant 0 : index
    %c0_7 = arith.constant 0 : index
    %7 = vector.load %arg3[%c0_6, %c0_7] : memref<128x384xbf16, #tpu.memory_space<vmem>>, vector<128x384xbf16>
    %c0_8 = arith.constant 0 : index
    %c0_9 = arith.constant 0 : index
    %8 = vector.load %arg4[%c0_8, %c0_9] : memref<384x128xbf16, #tpu.memory_space<vmem>>, vector<384x128xbf16>
    %cst_10 = arith.constant dense<0.000000e+00> : vector<128x128xf32>
    %9 = tpu.matmul %7, %8, %cst_10 {dimension_numbers = #tpu.dot_dimension_numbers<[1], [0], [0], [1], [0, 0, 1, 1], [], []>} : vector<128x384xbf16>, vector<384x128xbf16>, vector<128x128xf32> -> vector<128x128xf32>
    %10 = arith.addf %6, %9 : vector<128x128xf32>
    %c0_11 = arith.constant 0 : index
    %c0_12 = arith.constant 0 : index
    %11 = vector.load %arg8[%c0_11, %c0_12] : memref<128x128xf32, #tpu.memory_space<vmem>>, vector<128x128xf32>
    tpu.vector_store %arg8[%c0_11, %c0_12], %10 {strides = array<i32>} : memref<128x128xf32, #tpu.memory_space<vmem>>, vector<128x128xf32>,
    %c2_i32 = arith.constant 2 : i32
    %12 = arith.cmpi eq, %arg2, %c2_i32 : i32
    %13 = arith.extui %12 : i1 to i32
    %c0_i32_13 = arith.constant 0 : i32
    %14 = arith.cmpi ne, %13, %c0_i32_13 : i32
    scf.if %14 {
      %c0_14 = arith.constant 0 : index
      %c0_15 = arith.constant 0 : index
      %15 = vector.load %arg8[%c0_14, %c0_15] : memref<128x128xf32, #tpu.memory_space<vmem>>, vector<128x128xf32>
      %c0_16 = arith.constant 0 : index
      %c0_17 = arith.constant 0 : index
      %16 = vector.load %arg7[%c0_16, %c0_17] : memref<128x128xf32, #tpu.memory_space<vmem>>, vector<128x128xf32>
      tpu.vector_store %arg7[%c0_16, %c0_17], %15 {strides = array<i32>} : memref<128x128xf32, #tpu.memory_space<vmem>>, vector<128x128xf32>,
    } else {
    }
    return
  }
  func.func @transform_0(%arg0: i32, %arg1: i32, %arg2: i32) -> (i32, i32) {
    %c0_i32 = arith.constant 0 : i32
    return %arg0, %arg2 : i32, i32
  }
  func.func @transform_1(%arg0: i32, %arg1: i32, %arg2: i32) -> (i32, i32) {
    %c0_i32 = arith.constant 0 : i32
    return %arg2, %arg1 : i32, i32
  }
  func.func @transform_2(%arg0: i32, %arg1: i32, %arg2: i32) -> (i32, i32) {
    %c0_i32 = arith.constant 0 : i32
    %c0_i32_0 = arith.constant 0 : i32
    return %arg0, %c0_i32 : i32, i32
  }
  func.func @transform_3(%arg0: i32, %arg1: i32, %arg2: i32) -> (i32, i32) {
    %c0_i32 = arith.constant 0 : i32
    %c0_i32_0 = arith.constant 0 : i32
    return %c0_i32, %arg1 : i32, i32
  }
  func.func @transform_4(%arg0: i32, %arg1: i32, %arg2: i32) -> (i32, i32) {
    %c0_i32 = arith.constant 0 : i32
    return %arg0, %arg1 : i32, i32
  }
}

module attributes {stable_mosaic.version = 11 : i64} {
  func.func @_conv_add_kernel(%arg0: i32, %arg1: i32, %arg2: i32, %arg3: memref<128x384xbf16, #tpu.memory_space<vmem>>, %arg4: memref<384x128xbf16, #tpu.memory_space<vmem>>, %arg5: memref<128x128xf32, #tpu.memory_space<vmem>>, %arg6: memref<128x128xf32, #tpu.memory_space<vmem>>, %arg7: memref<128x128xf32, #tpu.memory_space<vmem>>) attributes {dimension_semantics = [#tpu.dimension_semantics<parallel>, #tpu.dimension_semantics<parallel>, #tpu.dimension_semantics<arbitrary>], iteration_bounds = array<i64: 1, 1, 3>, scalar_prefetch = 0 : i64, scratch_operands = 1 : i64, tpu.core_type = #tpu.core_type<tc>, window_params = [{transform_indices = @transform_0, window_bounds = array<i64: 128, 384>}, {transform_indices = @transform_1, window_bounds = array<i64: 384, 128>}, {transform_indices = @transform_2, window_bounds = array<i64: 128, 128>}, {transform_indices = @transform_3, window_bounds = array<i64: 128, 128>}]} {
    %c0_i32 = arith.constant 0 : i32
    %0 = arith.cmpi eq, %arg2, %c0_i32 : i32
    %1 = arith.extui %0 : i1 to i32
    %c0_i32_0 = arith.constant 0 : i32
    %2 = arith.cmpi ne, %1, %c0_i32_0 : i32
    scf.if %2 {
      %cst_9 = arith.constant 0.000000e+00 : f32
      %12 = vector.broadcast %cst_9 : f32 to vector<128x128xf32>
      %c0_10 = arith.constant 0 : index
      %c0_11 = arith.constant 0 : index
      %13 = vector.load %arg7[%c0_10, %c0_11] : memref<128x128xf32, #tpu.memory_space<vmem>>, vector<128x128xf32>
      tpu.vector_store %arg7[%c0_10, %c0_11], %12 {strides = array<i32>} : memref<128x128xf32, #tpu.memory_space<vmem>>, vector<128x128xf32>,
    } else {
    }
    %c0 = arith.constant 0 : index
    %c0_1 = arith.constant 0 : index
    %3 = vector.load %arg7[%c0, %c0_1] : memref<128x128xf32, #tpu.memory_space<vmem>>, vector<128x128xf32>
    %c0_2 = arith.constant 0 : index
    %c0_3 = arith.constant 0 : index
    %4 = vector.load %arg3[%c0_2, %c0_3] : memref<128x384xbf16, #tpu.memory_space<vmem>>, vector<128x384xbf16>
    %c0_4 = arith.constant 0 : index
    %c0_5 = arith.constant 0 : index
    %5 = vector.load %arg4[%c0_4, %c0_5] : memref<384x128xbf16, #tpu.memory_space<vmem>>, vector<384x128xbf16>
    %cst = arith.constant dense<0.000000e+00> : vector<128x128xf32>
    %6 = tpu.matmul %4, %5, %cst {dimension_numbers = #tpu.dot_dimension_numbers<[1], [0], [0], [1], [0, 0, 1, 1], [], []>} : vector<128x384xbf16>, vector<384x128xbf16>, vector<128x128xf32> -> vector<128x128xf32>
    %7 = arith.addf %3, %6 : vector<128x128xf32>
    %c0_6 = arith.constant 0 : index
    %c0_7 = arith.constant 0 : index
    %8 = vector.load %arg7[%c0_6, %c0_7] : memref<128x128xf32, #tpu.memory_space<vmem>>, vector<128x128xf32>
    tpu.vector_store %arg7[%c0_6, %c0_7], %7 {strides = array<i32>} : memref<128x128xf32, #tpu.memory_space<vmem>>, vector<128x128xf32>,
    %c2_i32 = arith.constant 2 : i32
    %9 = arith.cmpi eq, %arg2, %c2_i32 : i32
    %10 = arith.extui %9 : i1 to i32
    %c0_i32_8 = arith.constant 0 : i32
    %11 = arith.cmpi ne, %10, %c0_i32_8 : i32
    scf.if %11 {
      %c0_9 = arith.constant 0 : index
      %c0_10 = arith.constant 0 : index
      %12 = vector.load %arg7[%c0_9, %c0_10] : memref<128x128xf32, #tpu.memory_space<vmem>>, vector<128x128xf32>
      %c0_11 = arith.constant 0 : index
      %c0_12 = arith.constant 0 : index
      %13 = vector.load %arg5[%c0_11, %c0_12] : memref<128x128xf32, #tpu.memory_space<vmem>>, vector<128x128xf32>
      %14 = arith.addf %12, %13 : vector<128x128xf32>
      %c0_13 = arith.constant 0 : index
      %c0_14 = arith.constant 0 : index
      %15 = vector.load %arg6[%c0_13, %c0_14] : memref<128x128xf32, #tpu.memory_space<vmem>>, vector<128x128xf32>
      tpu.vector_store %arg6[%c0_13, %c0_14], %14 {strides = array<i32>} : memref<128x128xf32, #tpu.memory_space<vmem>>, vector<128x128xf32>,
    } else {
    }
    return
  }
  func.func @transform_0(%arg0: i32, %arg1: i32, %arg2: i32) -> (i32, i32) {
    %c0_i32 = arith.constant 0 : i32
    return %arg0, %arg2 : i32, i32
  }
  func.func @transform_1(%arg0: i32, %arg1: i32, %arg2: i32) -> (i32, i32) {
    %c0_i32 = arith.constant 0 : i32
    return %arg2, %arg1 : i32, i32
  }
  func.func @transform_2(%arg0: i32, %arg1: i32, %arg2: i32) -> (i32, i32) {
    %c0_i32 = arith.constant 0 : i32
    return %arg0, %arg1 : i32, i32
  }
  func.func @transform_3(%arg0: i32, %arg1: i32, %arg2: i32) -> (i32, i32) {
    %c0_i32 = arith.constant 0 : i32
    return %arg0, %arg1 : i32, i32
  }
}

</mosaic_0001>

<bundles_post_ra>
// kernel: _lambda_.6
= control target key start
LH: loop header
LB: loop body
LE: loop exit
PB: predicated region body
PF: predicated region fallthrough
CT: control target
= control target key end

     0   :  { %s1375_s0 = inlined_call_operand.vmem [shape: f32[512,128], index: 0, kind: input, shape index: {}]   ;;  %s1376_s1 = inlined_call_operand.vmem [shape: f32[1,128], index: 1, kind: input, shape index: {}]   ;;  %s1377_s2 = inlined_call_operand.vmem [shape: f32[1,128], index: 2, kind: input, shape index: {}]   ;;  %s1378_s3 = inlined_call_operand.vmem [shape: bf16[512,128], index: 3, kind: output, shape index: {}]  }
   0x1   :  { %v14_v0 = vld [vmem:[%s1375_s0] sm:$0xff]  ;;  %v15_v1 = vld [vmem:[%s1375_s0 + $0x8] sm:$0xff]  ;;  %v16_v6 = vld [vmem:[%s1375_s0 + $0x10] sm:$0xff] }
   0x2   :  { %v958_v2 = vld [vmem:[%s1376_s1] ss:$0 sm:$0xff]  ;;  %v17_v7 = vld [vmem:[%s1375_s0 + $0x18] sm:$0xff]  ;;  %v19_v11 = vld [vmem:[%s1375_s0 + $0x28] sm:$0xff] }
   0x3   :  { %v85_v3 = vmul.f32 %v958_v2, %v14_v0  ;;  %v86_v4 = vmul.f32 %v958_v2, %v15_v1  ;;  %v965_v5 = vld [vmem:[%s1377_s2] ss:$0 sm:$0xff]  ;;  %v87_v8 = vmul.f32 %v958_v2, %v16_v6  ;;  %v88_v9 = vmul.f32 %v958_v2, %v17_v7  ;;  %v20_v12 = vld [vmem:[%s1375_s0 + $0x30] sm:$0xff]  ;;  %v21_v17 = vld [vmem:[%s1375_s0 + $0x38] sm:$0xff] }
   0x4   :  { %v18_v10 = vld [vmem:[%s1375_s0 + $0x20] sm:$0xff]  ;;  %v90_v16 = vmul.f32 %v958_v2, %v19_v11  ;;  %v91_v20 = vmul.f32 %v958_v2, %v20_v12  ;;  %v92_v21 = vmul.f32 %v958_v2, %v21_v17  ;;  %v23_v27 = vld [vmem:[%s1375_s0 + $0x48] sm:$0xff]  ;;  %v24_v32 = vld [vmem:[%s1375_s0 + $0x50] sm:$0xff] }
   0x5   :  { %v156_v13 = vadd.f32 %v965_v5, %v85_v3  ;;  %v157_v14 = vadd.f32 %v965_v5, %v86_v4  ;;  %v89_v15 = vmul.f32 %v958_v2, %v18_v10  ;;  %v158_v18 = vadd.f32 %v965_v5, %v87_v8  ;;  %v22_v22 = vld [vmem:[%s1375_s0 + $0x40] sm:$0xff]  ;;  %v25_v33 = vld [vmem:[%s1375_s0 + $0x58] sm:$0xff]  ;;  %v27_v39 = vld [vmem:[%s1375_s0 + $0x68] sm:$0xff] }
   0x6   :  { %v159_v19 = vadd.f32 %v965_v5, %v88_v9  ;;  %v161_v26 = vadd.f32 %v965_v5, %v90_v16  ;;  %v162_v30 = vadd.f32 %v965_v5, %v91_v20  ;;  %v163_v31 = vadd.f32 %v965_v5, %v92_v21  ;;  %v26_v38 = vld [vmem:[%s1375_s0 + $0x60] sm:$0xff]  ;;  %v28_v44 = vld [vmem:[%s1375_s0 + $0x70] sm:$0xff]  ;;  %v29_v49 = vld [vmem:[%s1375_s0 + $0x78] sm:$0xff] }
   0x7   :  { %v220_v23 = vmax.f32 %v156_v13, 0.0  ;;  %v221_v24 = vmax.f32 %v157_v14, 0.0  ;;  %v160_v25 = vadd.f32 %v965_v5, %v89_v15  ;;  %v222_v28 = vmax.f32 %v158_v18, 0.0  ;;  %v30_v54 = vld [vmem:[%s1375_s0 + $0x80] sm:$0xff]  ;;  %v31_v63 = vld [vmem:[%s1375_s0 + $0x88] sm:$0xff]  ;;  %v32_v6 = vld [vmem:[%s1375_s0 + $0x90] sm:$0xff] }
   0x8   :  { %v223_v29 = vmax.f32 %v159_v19, 0.0  ;;  %v225_v36 = vmax.f32 %v161_v26, 0.0  ;;  %v93_v37 = vmul.f32 %v958_v2, %v22_v22  ;;  %v226_v41 = vmax.f32 %v162_v30, 0.0  ;;  %v33_v7 = vld [vmem:[%s1375_s0 + $0x98] sm:$0xff]  ;;  %v34_v12 = vld [vmem:[%s1375_s0 + $0xa0] sm:$0xff]  ;;  %v35_v13 = vld [vmem:[%s1375_s0 + $0xa8] sm:$0xff] }
   0x9   :  { %v741_v34 = vpack.c.bf16 %v221_v24, %v220_v23  ;;  %v224_v35 = vmax.f32 %v160_v25, 0.0  ;;  %v227_v42 = vmax.f32 %v163_v31, 0.0  ;;  %v94_v43 = vmul.f32 %v958_v2, %v23_v27  ;;  %v36_v18 = vld [vmem:[%s1375_s0 + $0xb0] sm:$0xff]  ;;  %v37_v23 = vld [vmem:[%s1375_s0 + $0xb8] sm:$0xff] }
   0xa   :  { %v746_v40 = vpack.c.bf16 %v223_v29, %v222_v28  ;;  %v164_v46 = vadd.f32 %v965_v5, %v93_v37  ;;  %v95_v47 = vmul.f32 %v958_v2, %v24_v32  ;;  %v96_v48 = vmul.f32 %v958_v2, %v25_v33  ;;  %v38_v28 = vld [vmem:[%s1375_s0 + $0xc0] sm:$0xff]  ;;  %v39_v37 = vld [vmem:[%s1375_s0 + $0xc8] sm:$0xff] }
   0xb   :  { %742 = vst [vmem:[%s1378_s3] sm:$0xff] %v741_v34   ;;  %v751_v45 = vpack.c.bf16 %v225_v36, %v224_v35  ;;  %v756_v50 = vpack.c.bf16 %v227_v42, %v226_v41  ;;  %v165_v51 = vadd.f32 %v965_v5, %v94_v43  ;;  %v97_v52 = vmul.f32 %v958_v2, %v26_v38  ;;  %v40_v42 = vld [vmem:[%s1375_s0 + $0xd0] sm:$0xff]  ;;  %v41_v43 = vld [vmem:[%s1375_s0 + $0xd8] sm:$0xff] }
   0xc   :  { %898 = vst [vmem:[%s1378_s3 + $0x8] sm:$0xff] %v746_v40   ;;  %v98_v53 = vmul.f32 %v958_v2, %v27_v39  ;;  %v228_v55 = vmax.f32 %v164_v46, 0.0  ;;  %v166_v56 = vadd.f32 %v965_v5, %v95_v47  ;;  %v167_v57 = vadd.f32 %v965_v5, %v96_v48  ;;  %v42_v48 = vld [vmem:[%s1375_s0 + $0xe0] sm:$0xff] }
   0xd   :  { %899 = vst [vmem:[%s1378_s3 + $0x10] sm:$0xff] %v751_v45   ;;  %v99_v58 = vmul.f32 %v958_v2, %v28_v44  ;;  %900 = vst [vmem:[%s1378_s3 + $0x18] sm:$0xff] %v756_v50   ;;  %v229_v59 = vmax.f32 %v165_v51, 0.0  ;;  %v168_v60 = vadd.f32 %v965_v5, %v97_v52  ;;  %v100_v62 = vmul.f32 %v958_v2, %v29_v49  ;;  %v43_v49 = vld [vmem:[%s1375_s0 + $0xe8] sm:$0xff] }
   0xe   :  { %v169_v61 = vadd.f32 %v965_v5, %v98_v53  ;;  %v230_v0 = vmax.f32 %v166_v56, 0.0  ;;  %v231_v1 = vmax.f32 %v167_v57, 0.0  ;;  %v101_v4 = vmul.f32 %v958_v2, %v30_v54  ;;  %v44_v54 = vld [vmem:[%s1375_s0 + $0xf0] sm:$0xff] }
   0xf   :  { %v170_v3 = vadd.f32 %v965_v5, %v99_v58  ;;  %v761_v8 = vpack.c.bf16 %v229_v59, %v228_v55  ;;  %v232_v9 = vmax.f32 %v168_v60, 0.0  ;;  %v171_v11 = vadd.f32 %v965_v5, %v100_v62  ;;  %v45_v59 = vld [vmem:[%s1375_s0 + $0xf8] sm:$0xff] }
  0x10   :  { %v233_v10 = vmax.f32 %v169_v61, 0.0  ;;  %v766_v14 = vpack.c.bf16 %v231_v1, %v230_v0  ;;  %v102_v16 = vmul.f32 %v958_v2, %v31_v63  ;;  %v172_v17 = vadd.f32 %v965_v5, %v101_v4  ;;  %v46_v0 = vld [vmem:[%s1375_s0 + $0x100] sm:$0xff] }
  0x11   :  { %v234_v15 = vmax.f32 %v170_v3, 0.0  ;;  %901 = vst [vmem:[%s1378_s3 + $0x20] sm:$0xff] %v761_v8   ;;  %v235_v20 = vmax.f32 %v171_v11, 0.0  ;;  %v103_v21 = vmul.f32 %v958_v2, %v32_v6  ;;  %v104_v22 = vmul.f32 %v958_v2, %v33_v7  ;;  %v47_v11 = vld [vmem:[%s1375_s0 + $0x108] sm:$0xff] }
  0x12   :  { %v771_v19 = vpack.c.bf16 %v233_v10, %v232_v9  ;;  %902 = vst [vmem:[%s1378_s3 + $0x28] sm:$0xff] %v766_v14   ;;  %v173_v24 = vadd.f32 %v965_v5, %v102_v16  ;;  %v236_v25 = vmax.f32 %v172_v17, 0.0  ;;  %v105_v26 = vmul.f32 %v958_v2, %v34_v12  ;;  %v48_v16 = vld [vmem:[%s1375_s0 + $0x110] sm:$0xff]  ;;  %v49_v17 = vld [vmem:[%s1375_s0 + $0x118] sm:$0xff] }
  0x13   :  { %v106_v27 = vmul.f32 %v958_v2, %v35_v13  ;;  %v776_v29 = vpack.c.bf16 %v235_v20, %v234_v15  ;;  %v174_v30 = vadd.f32 %v965_v5, %v103_v21  ;;  %v175_v31 = vadd.f32 %v965_v5, %v104_v22  ;;  %v50_v22 = vld [vmem:[%s1375_s0 + $0x120] sm:$0xff] }
  0x14   :  { %903 = vst [vmem:[%s1378_s3 + $0x30] sm:$0xff] %v771_v19   ;;  %v107_v32 = vmul.f32 %v958_v2, %v36_v18  ;;  %v237_v33 = vmax.f32 %v173_v24, 0.0  ;;  %v176_v34 = vadd.f32 %v965_v5, %v105_v26  ;;  %v108_v36 = vmul.f32 %v958_v2, %v37_v23  ;;  %v51_v23 = vld [vmem:[%s1375_s0 + $0x128] sm:$0xff] }
  0x15   :  { %v177_v35 = vadd.f32 %v965_v5, %v106_v27  ;;  %904 = vst [vmem:[%s1378_s3 + $0x38] sm:$0xff] %v776_v29   ;;  %v238_v38 = vmax.f32 %v174_v30, 0.0  ;;  %v239_v39 = vmax.f32 %v175_v31, 0.0  ;;  %v109_v41 = vmul.f32 %v958_v2, %v38_v28  ;;  %v52_v28 = vld [vmem:[%s1375_s0 + $0x130] sm:$0xff] }
  0x16   :  { %v178_v40 = vadd.f32 %v965_v5, %v107_v32  ;;  %v781_v44 = vpack.c.bf16 %v237_v33, %v236_v25  ;;  %v240_v45 = vmax.f32 %v176_v34, 0.0  ;;  %v179_v47 = vadd.f32 %v965_v5, %v108_v36  ;;  %v53_v33 = vld [vmem:[%s1375_s0 + $0x138] sm:$0xff] }
  0x17   :  { %v241_v46 = vmax.f32 %v177_v35, 0.0  ;;  %v786_v50 = vpack.c.bf16 %v239_v39, %v238_v38  ;;  %v110_v52 = vmul.f32 %v958_v2, %v39_v37  ;;  %v180_v53 = vadd.f32 %v965_v5, %v109_v41  ;;  %v54_v38 = vld [vmem:[%s1375_s0 + $0x140] sm:$0xff] }
  0x18   :  { %v242_v51 = vmax.f32 %v178_v40, 0.0  ;;  %905 = vst [vmem:[%s1378_s3 + $0x40] sm:$0xff] %v781_v44   ;;  %v243_v56 = vmax.f32 %v179_v47, 0.0  ;;  %v111_v57 = vmul.f32 %v958_v2, %v40_v42  ;;  %v112_v58 = vmul.f32 %v958_v2, %v41_v43  ;;  %v55_v47 = vld [vmem:[%s1375_s0 + $0x148] sm:$0xff] }
  0x19   :  { %v791_v55 = vpack.c.bf16 %v241_v46, %v240_v45  ;;  %906 = vst [vmem:[%s1378_s3 + $0x48] sm:$0xff] %v786_v50   ;;  %v181_v60 = vadd.f32 %v965_v5, %v110_v52  ;;  %v244_v61 = vmax.f32 %v180_v53, 0.0  ;;  %v113_v62 = vmul.f32 %v958_v2, %v42_v48  ;;  %v56_v52 = vld [vmem:[%s1375_s0 + $0x150] sm:$0xff]  ;;  %v57_v53 = vld [vmem:[%s1375_s0 + $0x158] sm:$0xff] }
  0x1a   :  { %v114_v63 = vmul.f32 %v958_v2, %v43_v49  ;;  %v796_v1 = vpack.c.bf16 %v243_v56, %v242_v51  ;;  %v182_v3 = vadd.f32 %v965_v5, %v111_v57  ;;  %v183_v4 = vadd.f32 %v965_v5, %v112_v58  ;;  %v58_v58 = vld [vmem:[%s1375_s0 + $0x160] sm:$0xff] }
  0x1b   :  { %907 = vst [vmem:[%s1378_s3 + $0x50] sm:$0xff] %v791_v55   ;;  %v115_v6 = vmul.f32 %v958_v2, %v44_v54  ;;  %v245_v7 = vmax.f32 %v181_v60, 0.0  ;;  %v184_v8 = vadd.f32 %v965_v5, %v113_v62  ;;  %v116_v10 = vmul.f32 %v958_v2, %v45_v59  ;;  %v59_v59 = vld [vmem:[%s1375_s0 + $0x168] sm:$0xff] }
  0x1c   :  { %v185_v9 = vadd.f32 %v965_v5, %v114_v63  ;;  %908 = vst [vmem:[%s1378_s3 + $0x58] sm:$0xff] %v796_v1   ;;  %v246_v12 = vmax.f32 %v182_v3, 0.0  ;;  %v247_v13 = vmax.f32 %v183_v4, 0.0  ;;  %v117_v15 = vmul.f32 %v958_v2, %v46_v0  ;;  %v60_v0 = vld [vmem:[%s1375_s0 + $0x170] sm:$0xff] }
  0x1d   :  { %v186_v14 = vadd.f32 %v965_v5, %v115_v6  ;;  %v801_v18 = vpack.c.bf16 %v245_v7, %v244_v61  ;;  %v248_v19 = vmax.f32 %v184_v8, 0.0  ;;  %v187_v21 = vadd.f32 %v965_v5, %v116_v10  ;;  %v61_v7 = vld [vmem:[%s1375_s0 + $0x178] sm:$0xff] }
  0x1e   :  { %v249_v20 = vmax.f32 %v185_v9, 0.0  ;;  %v806_v24 = vpack.c.bf16 %v247_v13, %v246_v12  ;;  %v118_v26 = vmul.f32 %v958_v2, %v47_v11  ;;  %v188_v27 = vadd.f32 %v965_v5, %v117_v15  ;;  %v62_v12 = vld [vmem:[%s1375_s0 + $0x180] sm:$0xff] }
  0x1f   :  { %v250_v25 = vmax.f32 %v186_v14, 0.0  ;;  %909 = vst [vmem:[%s1378_s3 + $0x60] sm:$0xff] %v801_v18   ;;  %v251_v30 = vmax.f32 %v187_v21, 0.0  ;;  %v119_v31 = vmul.f32 %v958_v2, %v48_v16  ;;  %v120_v32 = vmul.f32 %v958_v2, %v49_v17  ;;  %v63_v21 = vld [vmem:[%s1375_s0 + $0x188] sm:$0xff] }
  0x20   :  { %v811_v29 = vpack.c.bf16 %v249_v20, %v248_v19  ;;  %910 = vst [vmem:[%s1378_s3 + $0x68] sm:$0xff] %v806_v24   ;;  %v189_v34 = vadd.f32 %v965_v5, %v118_v26  ;;  %v252_v35 = vmax.f32 %v188_v27, 0.0  ;;  %v121_v36 = vmul.f32 %v958_v2, %v50_v22  ;;  %v64_v26 = vld [vmem:[%s1375_s0 + $0x190] sm:$0xff]  ;;  %v65_v27 = vld [vmem:[%s1375_s0 + $0x198] sm:$0xff] }
  0x21   :  { %v122_v37 = vmul.f32 %v958_v2, %v51_v23  ;;  %v816_v39 = vpack.c.bf16 %v251_v30, %v250_v25  ;;  %v190_v40 = vadd.f32 %v965_v5, %v119_v31  ;;  %v191_v41 = vadd.f32 %v965_v5, %v120_v32  ;;  %v66_v32 = vld [vmem:[%s1375_s0 + $0x1a0] sm:$0xff] }
  0x22   :  { %911 = vst [vmem:[%s1378_s3 + $0x70] sm:$0xff] %v811_v29   ;;  %v123_v42 = vmul.f32 %v958_v2, %v52_v28  ;;  %v253_v43 = vmax.f32 %v189_v34, 0.0  ;;  %v192_v44 = vadd.f32 %v965_v5, %v121_v36  ;;  %v124_v46 = vmul.f32 %v958_v2, %v53_v33  ;;  %v67_v33 = vld [vmem:[%s1375_s0 + $0x1a8] sm:$0xff] }
  0x23   :  { %v193_v45 = vadd.f32 %v965_v5, %v122_v37  ;;  %912 = vst [vmem:[%s1378_s3 + $0x78] sm:$0xff] %v816_v39   ;;  %v254_v48 = vmax.f32 %v190_v40, 0.0  ;;  %v255_v49 = vmax.f32 %v191_v41, 0.0  ;;  %v125_v51 = vmul.f32 %v958_v2, %v54_v38  ;;  %v68_v38 = vld [vmem:[%s1375_s0 + $0x1b0] sm:$0xff] }
  0x24   :  { %v194_v50 = vadd.f32 %v965_v5, %v123_v42  ;;  %v821_v54 = vpack.c.bf16 %v253_v43, %v252_v35  ;;  %v256_v55 = vmax.f32 %v192_v44, 0.0  ;;  %v195_v57 = vadd.f32 %v965_v5, %v124_v46  ;;  %v69_v43 = vld [vmem:[%s1375_s0 + $0x1b8] sm:$0xff] }
  0x25   :  { %v257_v56 = vmax.f32 %v193_v45, 0.0  ;;  %v826_v60 = vpack.c.bf16 %v255_v49, %v254_v48  ;;  %v126_v62 = vmul.f32 %v958_v2, %v55_v47  ;;  %v196_v63 = vadd.f32 %v965_v5, %v125_v51  ;;  %v70_v48 = vld [vmem:[%s1375_s0 + $0x1c0] sm:$0xff] }
  0x26   :  { %v258_v61 = vmax.f32 %v194_v50, 0.0  ;;  %913 = vst [vmem:[%s1378_s3 + $0x80] sm:$0xff] %v821_v54   ;;  %v259_v3 = vmax.f32 %v195_v57, 0.0  ;;  %v127_v4 = vmul.f32 %v958_v2, %v56_v52  ;;  %v128_v6 = vmul.f32 %v958_v2, %v57_v53  ;;  %v71_v57 = vld [vmem:[%s1375_s0 + $0x1c8] sm:$0xff] }
  0x27   :  { %v831_v1 = vpack.c.bf16 %v257_v56, %v256_v55  ;;  %914 = vst [vmem:[%s1378_s3 + $0x88] sm:$0xff] %v826_v60   ;;  %v197_v8 = vadd.f32 %v965_v5, %v126_v62  ;;  %v260_v9 = vmax.f32 %v196_v63, 0.0  ;;  %v129_v10 = vmul.f32 %v958_v2, %v58_v58  ;;  %v72_v62 = vld [vmem:[%s1375_s0 + $0x1d0] sm:$0xff]  ;;  %v73_v63 = vld [vmem:[%s1375_s0 + $0x1d8] sm:$0xff] }
  0x28   :  { %v130_v11 = vmul.f32 %v958_v2, %v59_v59  ;;  %v836_v13 = vpack.c.bf16 %v259_v3, %v258_v61  ;;  %v198_v14 = vadd.f32 %v965_v5, %v127_v4  ;;  %v199_v15 = vadd.f32 %v965_v5, %v128_v6  ;;  %v74_v6 = vld [vmem:[%s1375_s0 + $0x1e0] sm:$0xff] }
  0x29   :  { %915 = vst [vmem:[%s1378_s3 + $0x90] sm:$0xff] %v831_v1   ;;  %v131_v16 = vmul.f32 %v958_v2, %v60_v0  ;;  %v261_v17 = vmax.f32 %v197_v8, 0.0  ;;  %v200_v18 = vadd.f32 %v965_v5, %v129_v10  ;;  %v132_v20 = vmul.f32 %v958_v2, %v61_v7  ;;  %v75_v7 = vld [vmem:[%s1375_s0 + $0x1e8] sm:$0xff] }
  0x2a   :  { %v201_v19 = vadd.f32 %v965_v5, %v130_v11  ;;  %916 = vst [vmem:[%s1378_s3 + $0x98] sm:$0xff] %v836_v13   ;;  %v262_v22 = vmax.f32 %v198_v14, 0.0  ;;  %v263_v23 = vmax.f32 %v199_v15, 0.0  ;;  %v133_v25 = vmul.f32 %v958_v2, %v62_v12  ;;  %v76_v12 = vld [vmem:[%s1375_s0 + $0x1f0] sm:$0xff] }
  0x2b   :  { %v202_v24 = vadd.f32 %v965_v5, %v131_v16  ;;  %v841_v28 = vpack.c.bf16 %v261_v17, %v260_v9  ;;  %v264_v29 = vmax.f32 %v200_v18, 0.0  ;;  %v203_v31 = vadd.f32 %v965_v5, %v132_v20  ;;  %v77_v17 = vld [vmem:[%s1375_s0 + $0x1f8] sm:$0xff] }
  0x2c   :  { %v265_v30 = vmax.f32 %v201_v19, 0.0  ;;  %v846_v34 = vpack.c.bf16 %v263_v23, %v262_v22  ;;  %v134_v36 = vmul.f32 %v958_v2, %v63_v21  ;;  %v204_v37 = vadd.f32 %v965_v5, %v133_v25 }
  0x2d   :  { %v266_v35 = vmax.f32 %v202_v24, 0.0  ;;  %917 = vst [vmem:[%s1378_s3 + $0xa0] sm:$0xff] %v841_v28   ;;  %v267_v40 = vmax.f32 %v203_v31, 0.0  ;;  %v135_v41 = vmul.f32 %v958_v2, %v64_v26  ;;  %v136_v42 = vmul.f32 %v958_v2, %v65_v27 }
  0x2e   :  { %v851_v39 = vpack.c.bf16 %v265_v30, %v264_v29  ;;  %918 = vst [vmem:[%s1378_s3 + $0xa8] sm:$0xff] %v846_v34   ;;  %v205_v44 = vadd.f32 %v965_v5, %v134_v36  ;;  %v268_v45 = vmax.f32 %v204_v37, 0.0  ;;  %v137_v46 = vmul.f32 %v958_v2, %v66_v32 }
  0x2f   :  { %v138_v47 = vmul.f32 %v958_v2, %v67_v33  ;;  %v856_v49 = vpack.c.bf16 %v267_v40, %v266_v35  ;;  %v206_v50 = vadd.f32 %v965_v5, %v135_v41  ;;  %v207_v51 = vadd.f32 %v965_v5, %v136_v42 }
  0x30   :  { %919 = vst [vmem:[%s1378_s3 + $0xb0] sm:$0xff] %v851_v39   ;;  %v139_v52 = vmul.f32 %v958_v2, %v68_v38  ;;  %v269_v53 = vmax.f32 %v205_v44, 0.0  ;;  %v208_v54 = vadd.f32 %v965_v5, %v137_v46  ;;  %v140_v56 = vmul.f32 %v958_v2, %v69_v43 }
  0x31   :  { %v209_v55 = vadd.f32 %v965_v5, %v138_v47  ;;  %920 = vst [vmem:[%s1378_s3 + $0xb8] sm:$0xff] %v856_v49   ;;  %v270_v58 = vmax.f32 %v206_v50, 0.0  ;;  %v271_v59 = vmax.f32 %v207_v51, 0.0  ;;  %v141_v61 = vmul.f32 %v958_v2, %v70_v48 }
  0x32   :  { %v210_v60 = vadd.f32 %v965_v5, %v139_v52  ;;  %v861_v0 = vpack.c.bf16 %v269_v53, %v268_v45  ;;  %v272_v1 = vmax.f32 %v208_v54, 0.0  ;;  %v211_v4 = vadd.f32 %v965_v5, %v140_v56 }
  0x33   :  { %v273_v3 = vmax.f32 %v209_v55, 0.0  ;;  %v866_v8 = vpack.c.bf16 %v271_v59, %v270_v58  ;;  %v142_v10 = vmul.f32 %v958_v2, %v71_v57  ;;  %v212_v11 = vadd.f32 %v965_v5, %v141_v61 }
  0x34   :  { %v274_v9 = vmax.f32 %v210_v60, 0.0  ;;  %921 = vst [vmem:[%s1378_s3 + $0xc0] sm:$0xff] %v861_v0   ;;  %v275_v14 = vmax.f32 %v211_v4, 0.0  ;;  %v143_v15 = vmul.f32 %v958_v2, %v72_v62  ;;  %v144_v16 = vmul.f32 %v958_v2, %v73_v63 }
  0x35   :  { %v871_v13 = vpack.c.bf16 %v273_v3, %v272_v1  ;;  %922 = vst [vmem:[%s1378_s3 + $0xc8] sm:$0xff] %v866_v8   ;;  %v213_v18 = vadd.f32 %v965_v5, %v142_v10  ;;  %v276_v19 = vmax.f32 %v212_v11, 0.0  ;;  %v145_v20 = vmul.f32 %v958_v2, %v74_v6 }
  0x36   :  { %v146_v21 = vmul.f32 %v958_v2, %v75_v7  ;;  %v876_v22 = vpack.c.bf16 %v275_v14, %v274_v9  ;;  %v214_v23 = vadd.f32 %v965_v5, %v143_v15  ;;  %v215_v24 = vadd.f32 %v965_v5, %v144_v16 }
  0x37   :  { %923 = vst [vmem:[%s1378_s3 + $0xd0] sm:$0xff] %v871_v13   ;;  %v147_v25 = vmul.f32 %v958_v2, %v76_v12  ;;  %v277_v26 = vmax.f32 %v213_v18, 0.0  ;;  %v216_v27 = vadd.f32 %v965_v5, %v145_v20  ;;  %v148_v29 = vmul.f32 %v958_v2, %v77_v17 }
  0x38   :  { %v217_v28 = vadd.f32 %v965_v5, %v146_v21  ;;  %924 = vst [vmem:[%s1378_s3 + $0xd8] sm:$0xff] %v876_v22   ;;  %v278_v30 = vmax.f32 %v214_v23, 0.0  ;;  %v279_v31 = vmax.f32 %v215_v24, 0.0 }
  0x39   :  { %v218_v32 = vadd.f32 %v965_v5, %v147_v25  ;;  %v881_v33 = vpack.c.bf16 %v277_v26, %v276_v19  ;;  %v280_v34 = vmax.f32 %v216_v27, 0.0  ;;  %v219_v36 = vadd.f32 %v965_v5, %v148_v29 }
  0x3a   :  { %v281_v35 = vmax.f32 %v217_v28, 0.0  ;;  %v886_v37 = vpack.c.bf16 %v279_v31, %v278_v30 }
  0x3b   :  { %v282_v38 = vmax.f32 %v218_v32, 0.0  ;;  %925 = vst [vmem:[%s1378_s3 + $0xe0] sm:$0xff] %v881_v33   ;;  %v283_v39 = vmax.f32 %v219_v36, 0.0 }
  0x3c   :  { %v891_v2 = vpack.c.bf16 %v281_v35, %v280_v34  ;;  %926 = vst [vmem:[%s1378_s3 + $0xe8] sm:$0xff] %v886_v37  }
  0x3d   :  { %v896_v40 = vpack.c.bf16 %v283_v39, %v282_v38 }
  0x3e   :  { %927 = vst [vmem:[%s1378_s3 + $0xf0] sm:$0xff] %v891_v2  }
  0x3f   :  { %928 = vst [vmem:[%s1378_s3 + $0xf8] sm:$0xff] %v896_v40  }

// kernel: _lambda_.7
= control target key start
LH: loop header
LB: loop body
LE: loop exit
PB: predicated region body
PF: predicated region fallthrough
CT: control target
= control target key end

     0   :  { %s1743_s15 = smov 0   ;;  %s1745_s16 = smov 0   ;;  %s1996_s0 = inlined_call_operand.vmem [shape: bf16[128,1152], index: 0, kind: input, shape index: {}]   ;;  %s1997_s1 = inlined_call_operand.vmem [shape: bf16[1152,128], index: 1, kind: input, shape index: {}]   ;;  %s1998_s2 = inlined_call_operand.vmem [shape: f32[1,128], index: 2, kind: input, shape index: {}]   ;;  %s1999_s3 = inlined_call_operand.vmem [shape: f32[1,128], index: 3, kind: input, shape index: {}]   ;;  %s2000_s4 = inlined_call_operand.vmem [shape: bf16[128,128], index: 4, kind: output, shape index: {}]  }
   0x1   :  { %s1747_s17 = smov 0   ;;  %s1749_s18 = smov 0  }
   0x2   :  { %s1751_s19 = smov 0  }
   0x3 LB: > { %s26_s20 = sadd.s32 1, %s1711_s18  ;;  %p49_p1 = scmp.ne.s32.totalorder %s1703_s16, %s1699_s15  ;;  %s1715_s19 = sphi %s1751_s19, %s14_s19   ;;  %s1711_s18 = sphi %s1749_s18, %s2004_s18   ;;  %s1707_s17 = sphi %s1747_s17, %s2003_s17   ;;  %s1703_s16 = sphi %s1745_s16, %s2002_s16   ;;  %s1699_s15 = sphi %s1743_s15, %s2001_s15  }
   0x4   : > { %p27_p0 = scmp.ge.s32.totalorder %s26_s20, 3  ;;  %p50_p2 = scmp.eq.s32.totalorder %s1715_s19, 0 }
   0x5   : > { %s42_s22 = sadd.s32 1, %s1703_s16  ;;  %p1294_p5 = scmp.ge.s32.totalorder %s1715_s19, 3 }
   0x6   : > { %s2006_s20 = smov (%p27_p0, %s26_s20), 0  ;;  %p51_p3 = por %p50_p2, %p49_p1 }
   0x7   : > { %s38_s21 = ssub.s32 %s1711_s18, %s2006_s20  ;;  %195 = sbr.rel (%p1294_p5) target bundleno = 35 (0x23), region = 24 }
   0x8   : > { %p40_p4 = scmp.eq.s32.totalorder %s38_s21, 0 }
   0xa   : > { %s1778_s23 = scalar_select %p40_p4, %s1703_s16, %s42_s22  }
   0xc   : > { %198 = sbr.rel (!%p51_p3) target bundleno = 35 (0x23), region = 28  ;;  %s200_s24 = sand.u32 (%p51_p3), 1, %s1703_s16  }
   0xd   : > { %s1402_s25 = smul.u32 (%p51_p3), 12, %s1711_s18 }
   0xe   : > { %s1578_s26 = smul.u32 (%p51_p3), 192, %s200_s24 }
   0xf   : > { %s1786_s29 = scalar_lea.vmem (%p51_p3), %s1996_s0, %s1402_s25 }
  0x10   : > { %v223_v0 = vld [vmem:[%s1786_s29] sm:$0xff] (%p51_p3)  ;;  %v227_v2 = vld [vmem:[%s1786_s29 + $0x48] sm:$0xff] (%p51_p3)  ;;  %s1791_s30 = scalar_lea.vmem (%p51_p3), [#allocation3], %s1578_s26  ;;  %v231_v4 = vld [vmem:[%s1786_s29 + $0x90] sm:$0xff] (%p51_p3) }
  0x11   : > { %v225_v1 = vld [vmem:[%s1786_s29 + $0x24] sm:$0xff]  ;;  %224 = vst [vmem:[%s1791_s30] sm:$0xff] %v223_v0  ;;  %228 = vst [vmem:[%s1791_s30 + $0x18] sm:$0xff] %v227_v2  ;;  %v229_v3 = vld [vmem:[%s1786_s29 + $0x6c] sm:$0xff] }
  0x12   : > { %226 = vst [vmem:[%s1791_s30 + $0xc] sm:$0xff] %v225_v1  ;;  %v233_v5 = vld [vmem:[%s1786_s29 + $0xb4] sm:$0xff]  ;;  %230 = vst [vmem:[%s1791_s30 + $0x24] sm:$0xff] %v229_v3  ;;  %v237_v7 = vld [vmem:[%s1786_s29 + $0xfc] sm:$0xff] }
  0x13   : > { %232 = vst [vmem:[%s1791_s30 + $0x30] sm:$0xff] %v231_v4  ;;  %234 = vst [vmem:[%s1791_s30 + $0x3c] sm:$0xff] %v233_v5  ;;  %v235_v6 = vld [vmem:[%s1786_s29 + $0xd8] sm:$0xff]  ;;  %v239_v8 = vld [vmem:[%s1786_s29 + $0x120] sm:$0xff] }
  0x14   : > { %236 = vst [vmem:[%s1791_s30 + $0x48] sm:$0xff] %v235_v6  ;;  %238 = vst [vmem:[%s1791_s30 + $0x54] sm:$0xff] %v237_v7  ;;  %v241_v9 = vld [vmem:[%s1786_s29 + $0x144] sm:$0xff]  ;;  %v245_v11 = vld [vmem:[%s1786_s29 + $0x18c] sm:$0xff] }
  0x15   : > { %240 = vst [vmem:[%s1791_s30 + $0x60] sm:$0xff] %v239_v8  ;;  %v243_v10 = vld [vmem:[%s1786_s29 + $0x168] sm:$0xff]  ;;  %242 = vst [vmem:[%s1791_s30 + $0x6c] sm:$0xff] %v241_v9  ;;  %v247_v12 = vld [vmem:[%s1786_s29 + $0x1b0] sm:$0xff] }
  0x16   : > { %244 = vst [vmem:[%s1791_s30 + $0x78] sm:$0xff] %v243_v10  ;;  %246 = vst [vmem:[%s1791_s30 + $0x84] sm:$0xff] %v245_v11  ;;  %v249_v13 = vld [vmem:[%s1786_s29 + $0x1d4] sm:$0xff]  ;;  %v253_v15 = vld [vmem:[%s1786_s29 + $0x21c] sm:$0xff] }
  0x17   : > { %v251_v14 = vld [vmem:[%s1786_s29 + $0x1f8] sm:$0xff]  ;;  %248 = vst [vmem:[%s1791_s30 + $0x90] sm:$0xff] %v247_v12  ;;  %250 = vst [vmem:[%s1791_s30 + $0x9c] sm:$0xff] %v249_v13  ;;  %v1296_v16 = vld [vmem:[%s1786_s29 + $0x8] sm:$0xf] }
  0x18   : > { %252 = vst [vmem:[%s1791_s30 + $0xa8] sm:$0xff] %v251_v14  ;;  %v1298_v17 = vld [vmem:[%s1786_s29 + $0x2c] sm:$0xf]  ;;  %254 = vst [vmem:[%s1791_s30 + $0xb4] sm:$0xff] %v253_v15  ;;  %v1300_v18 = vld [vmem:[%s1786_s29 + $0x50] sm:$0xf] }
  0x19   : > { %1297 = vst [vmem:[%s1791_s30 + $0x8] sm:$0xf] %v1296_v16  ;;  %1299 = vst [vmem:[%s1791_s30 + $0x14] sm:$0xf] %v1298_v17  ;;  %v1302_v19 = vld [vmem:[%s1786_s29 + $0x74] sm:$0xf] }
  0x1a   : > { %v1304_v20 = vld [vmem:[%s1786_s29 + $0x98] sm:$0xf]  ;;  %1301 = vst [vmem:[%s1791_s30 + $0x20] sm:$0xf] %v1300_v18  ;;  %1303 = vst [vmem:[%s1791_s30 + $0x2c] sm:$0xf] %v1302_v19 }
  0x1b   : > { %1305 = vst [vmem:[%s1791_s30 + $0x38] sm:$0xf] %v1304_v20  ;;  %v1306_v21 = vld [vmem:[%s1786_s29 + $0xbc] sm:$0xf]  ;;  %v1308_v22 = vld [vmem:[%s1786_s29 + $0xe0] sm:$0xf] }
  0x1c   : > { %v1310_v23 = vld [vmem:[%s1786_s29 + $0x104] sm:$0xf]  ;;  %1307 = vst [vmem:[%s1791_s30 + $0x44] sm:$0xf] %v1306_v21  ;;  %1309 = vst [vmem:[%s1791_s30 + $0x50] sm:$0xf] %v1308_v22 }
  0x1d   : > { %1311 = vst [vmem:[%s1791_s30 + $0x5c] sm:$0xf] %v1310_v23  ;;  %v1312_v24 = vld [vmem:[%s1786_s29 + $0x128] sm:$0xf]  ;;  %v1314_v25 = vld [vmem:[%s1786_s29 + $0x14c] sm:$0xf] }
  0x1e   : > { %v1316_v26 = vld [vmem:[%s1786_s29 + $0x170] sm:$0xf]  ;;  %1313 = vst [vmem:[%s1791_s30 + $0x68] sm:$0xf] %v1312_v24  ;;  %1315 = vst [vmem:[%s1791_s30 + $0x74] sm:$0xf] %v1314_v25 }
  0x1f   : > { %1317 = vst [vmem:[%s1791_s30 + $0x80] sm:$0xf] %v1316_v26  ;;  %v1318_v27 = vld [vmem:[%s1786_s29 + $0x194] sm:$0xf]  ;;  %v1320_v28 = vld [vmem:[%s1786_s29 + $0x1b8] sm:$0xf] }
  0x20   : > { %v1322_v29 = vld [vmem:[%s1786_s29 + $0x1dc] sm:$0xf]  ;;  %1319 = vst [vmem:[%s1791_s30 + $0x8c] sm:$0xf] %v1318_v27  ;;  %1321 = vst [vmem:[%s1791_s30 + $0x98] sm:$0xf] %v1320_v28 }
  0x21   : > { %1323 = vst [vmem:[%s1791_s30 + $0xa4] sm:$0xf] %v1322_v29  ;;  %v1324_v30 = vld [vmem:[%s1786_s29 + $0x200] sm:$0xf]  ;;  %v1326_v31 = vld [vmem:[%s1786_s29 + $0x224] sm:$0xf] }
  0x22   : > { %1325 = vst [vmem:[%s1791_s30 + $0xb0] sm:$0xf] %v1324_v30  ;;  %1327 = vst [vmem:[%s1791_s30 + $0xbc] sm:$0xf] %v1326_v31 }
  0x23 PF: > { %p1328_p6 = scmp.ge.s32.totalorder %s1715_s19, 1  ;;  %p311_p7 = scmp.lt.s32.totalorder %s1715_s19, 4 }
  0x25   : > { %p312_p8 = pnand %p1328_p6, %p311_p7 }
  0x26   : > { %s318_s5 = sand.u32 (!%p312_p8), 1, %s1699_s15   ;;  %s362_s6 = smul.u32 (!%p312_p8), 48, %s1707_s17 }
  0x27   : > { %315 = sbr.rel (%p312_p8) target bundleno = 375 (0x177), region = 58  ;;  %p1330_p10 = scmp.ne.s32.totalorder (!%p312_p8), %s1707_s17, 0 }
  0x28   : > { %s1579_s7 = smul.u32 (!%p312_p8), 192, %s318_s5  ;;  %p363_p9 = scmp.lt.s32.totalorder (!%p312_p8), %s362_s6, 143 }
  0x2a   : > { %s1863_s12 = scalar_lea.vmem (!%p312_p8), [#allocation3], %s1579_s7 }
  0x2c   : > { %s2008_s6 = smov (!%p363_p9, %s362_s6), 143  ;;  %390 = sbr.rel (%p1330_p10) target bundleno = 58 (0x3a), region = 66 }
  0x2d   : > { %s1329_s8 = sshll.u32 %s2008_s6, 2 }
  0x2e   : > { %s1861_s11 = scalar_lea.vmem %s1997_s1, %s1329_s8 }
  0x31   : > { %v1717_v32 = vmov 0.0  }
  0x32   : > { %391 = vst [vmem:[#allocation2 + $0x30] sm:$0xff] %v1717_v32  ;;  %392 = vst [vmem:[#allocation2] sm:$0xff] %v1717_v32 }
  0x33   : > { %393 = vst [vmem:[#allocation2 + $0x58] sm:$0xff] %v1717_v32  ;;  %394 = vst [vmem:[#allocation2 + $0x18] sm:$0xff] %v1717_v32 }
  0x34   : > { %395 = vst [vmem:[#allocation2 + $0x50] sm:$0xff] %v1717_v32  ;;  %396 = vst [vmem:[#allocation2 + $0x68] sm:$0xff] %v1717_v32 }
  0x35   : > { %397 = vst [vmem:[#allocation2 + $0x8] sm:$0xff] %v1717_v32  ;;  %398 = vst [vmem:[#allocation2 + $0x48] sm:$0xff] %v1717_v32 }
  0x36   : > { %399 = vst [vmem:[#allocation2 + $0x40] sm:$0xff] %v1717_v32  ;;  %400 = vst [vmem:[#allocation2 + $0x20] sm:$0xff] %v1717_v32 }
  0x37   : > { %401 = vst [vmem:[#allocation2 + $0x10] sm:$0xff] %v1717_v32  ;;  %402 = vst [vmem:[#allocation2 + $0x38] sm:$0xff] %v1717_v32 }
  0x38   : > { %403 = vst [vmem:[#allocation2 + $0x60] sm:$0xff] %v1717_v32  ;;  %404 = vst [vmem:[#allocation2 + $0x70] sm:$0xff] %v1717_v32 }
  0x39   : > { %405 = vst [vmem:[#allocation2 + $0x78] sm:$0xff] %v1717_v32  ;;  %406 = vst [vmem:[#allocation2 + $0x28] sm:$0xff] %v1717_v32 }
  0x3a PF: > { %v1621_v33 = vld [vmem:[%s1861_s11 + $0x78] sm:$0xff]   ;;  %v1624_v36 = vld [vmem:[%s1861_s11 + $0x70] sm:$0xff]   ;;  %v1627_v39 = vld [vmem:[%s1861_s11 + $0x68] sm:$0xff]   ;;  %p1379_p11 = scmp.ne.s32.totalorder %s1707_s17, 2 }
  0x3b   : > { %v1622_v34 = vld [vmem:[%s1861_s11 + $0x38] sm:$0xff]   ;;  %1466 = vmatprep.subr.bf16.mxu0 %v1621_v33  ;;  %v1625_v37 = vld [vmem:[%s1861_s11 + $0x30] sm:$0xff]   ;;  %v1628_v40 = vld [vmem:[%s1861_s11 + $0x28] sm:$0xff]  }
  0x3c   : > { %v1623_v35 = vld [vmem:[%s1861_s11 + $0xb8] sm:$0xff]   ;;  %1467 = vmatpush3.bf16.msra.mxu0 %v1622_v34  ;;  %v1626_v38 = vld [vmem:[%s1861_s11 + $0xb0] sm:$0xff]   ;;  %v1629_v41 = vld [vmem:[%s1861_s11 + $0xa8] sm:$0xff]  }
  0x3d   : > { %1546 = vmatprep.subr.bf16.mxu1 %v1623_v35  ;;  %1468 = vmatprep.subr.bf16.mxu0 %v1624_v36  ;;  %v1630_v42 = vld [vmem:[%s1861_s11 + $0x60] sm:$0xff]   ;;  %v1633_v45 = vld [vmem:[%s1861_s11 + $0x58] sm:$0xff]   ;;  %v1636_v48 = vld [vmem:[%s1861_s11 + $0x50] sm:$0xff]  }
  0x3e   : > { %1547 = vmatpush3.bf16.msra.mxu1 %v1623_v35  ;;  %v1631_v43 = vld [vmem:[%s1861_s11 + $0x20] sm:$0xff]   ;;  %v1635_v46 = vld [vmem:[%s1861_s11 + $0x98] sm:$0xff]   ;;  %v1638_v49 = vld [vmem:[%s1861_s11 + $0x90] sm:$0xff]  }
  0x3f   : > { %1548 = vmatprep.subr.bf16.mxu1 %v1626_v38  ;;  %v1632_v44 = vld [vmem:[%s1861_s11 + $0xa0] sm:$0xff]   ;;  %v1634_v47 = vld [vmem:[%s1861_s11 + $0x18] sm:$0xff]   ;;  %v1637_v50 = vld [vmem:[%s1861_s11 + $0x10] sm:$0xff]  }
  0x40   : > { %1469 = vmatpush3.bf16.msra.mxu0 %v1625_v37  ;;  %v1639_v51 = vld [vmem:[%s1861_s11 + $0x48] sm:$0xff]   ;;  %v1642_v54 = vld [vmem:[%s1861_s11 + $0x40] sm:$0xff]   ;;  %v1657_v1 = vld [vmem:[%s1863_s12 + $0x50] ss:$12 sps:$4 sm:$0xff]  }
  0x41   : > { %1470 = vmatprep.subr.bf16.mxu0 %v1627_v39  ;;  %v1640_v52 = vld [vmem:[%s1861_s11 + $0x8] sm:$0xff]   ;;  %v1644_v55 = vld [vmem:[%s1861_s11 + $0x80] sm:$0xff]   ;;  %v1655_v3 = vld [vmem:[%s1863_s12 + $0x30] ss:$12 sps:$4 sm:$0xff]  }
  0x42   : > { %1549 = vmatpush3.bf16.msra.mxu1 %v1626_v38  ;;  %v1641_v53 = vld [vmem:[%s1861_s11 + $0x88] sm:$0xff]   ;;  %v1647_v56 = vld [vmem:[%s1863_s12 + $0x4] ss:$12 sps:$4 sm:$0xff]   ;;  %v1653_v0 = vld [vmem:[%s1863_s12 + $0x34] ss:$12 sps:$4 sm:$0xff]  }
  0x43   : > { %1550 = vmatprep.subr.bf16.mxu1 %v1629_v41  ;;  %v1648_v57 = vld [vmem:[%s1863_s12 + $0x8] ss:$12 sps:$4 sm:$0xff]   ;;  %v1643_v58 = vld [vmem:[%s1861_s11] sm:$0xff]   ;;  %807 = vmatprep.mubr.bf16.mxu0 %v1647_v56  ;;  %v1658_v4 = vld [vmem:[%s1863_s12 + $0x4c] ss:$12 sps:$4 sm:$0xff]  }
  0x44   : > { %1471 = vmatpush3.bf16.msra.mxu0 %v1628_v40  ;;  %1562 = vmatprep.mubr.bf16.mxu1 %v1648_v57  ;;  %v1645_v59 = vld [vmem:[%s1863_s12] ss:$12 sps:$4 sm:$0xff]   ;;  %v1650_v60 = vld [vmem:[%s1863_s12 + $0x1c] ss:$12 sps:$4 sm:$0xff]   ;;  %v1656_v62 = vld [vmem:[%s1863_s12 + $0x38] ss:$12 sps:$4 sm:$0xff]  }
  0x45   : > { %1472 = vmatprep.subr.bf16.mxu0 %v1630_v42  ;;  %v1649_v61 = vld [vmem:[%s1863_s12 + $0x20] ss:$12 sps:$4 sm:$0xff]   ;;  %v1652_v63 = vld [vmem:[%s1863_s12 + $0x18] ss:$12 sps:$4 sm:$0xff]   ;;  %v1664_v2 = vld [vmem:[%s1863_s12 + $0x68] ss:$12 sps:$4 sm:$0xff]  }
  0x46   : > { %1551 = vmatpush3.bf16.msra.mxu1 %v1629_v41  ;;  %v1665_v5 = vld [vmem:[%s1863_s12 + $0x80] ss:$12 sps:$4 sm:$0xff]   ;;  %v1672_v6 = vld [vmem:[%s1863_s12 + $0x98] ss:$12 sps:$4 sm:$0xff]   ;;  %v1660_v7 = vld [vmem:[%s1863_s12 + $0x48] ss:$12 sps:$4 sm:$0xff]  }
  0x47   : > { %1552 = vmatprep.subr.bf16.mxu1 %v1632_v44  ;;  %v1661_v8 = vld [vmem:[%s1863_s12 + $0x64] ss:$12 sps:$4 sm:$0xff]   ;;  %v1663_v10 = vld [vmem:[%s1863_s12 + $0x60] ss:$12 sps:$4 sm:$0xff]   ;;  %v1666_v11 = vld [vmem:[%s1863_s12 + $0x7c] ss:$12 sps:$4 sm:$0xff]  }
  0x48   : > { %1473 = vmatpush3.bf16.msra.mxu0 %v1631_v43  ;;  %v1673_v9 = vld [vmem:[%s1863_s12 + $0xb0] ss:$12 sps:$4 sm:$0xff]   ;;  %v1668_v12 = vld [vmem:[%s1863_s12 + $0x78] ss:$12 sps:$4 sm:$0xff]   ;;  %v1669_v13 = vld [vmem:[%s1863_s12 + $0x94] ss:$12 sps:$4 sm:$0xff]  }
  0x49   : > { %1474 = vmatprep.subr.bf16.mxu0 %v1633_v45  ;;  %v1671_v14 = vld [vmem:[%s1863_s12 + $0x90] ss:$12 sps:$4 sm:$0xff]   ;;  %v1674_v15 = vld [vmem:[%s1863_s12 + $0xac] ss:$12 sps:$4 sm:$0xff]   ;;  %v1676_v16 = vld [vmem:[%s1863_s12 + $0xa8] ss:$12 sps:$4 sm:$0xff]  }
  0x4a   : > { %1553 = vmatpush3.bf16.msra.mxu1 %v1632_v44  ;;  %v407_v22 = vld [vmem:[#allocation2 + $0x30] sm:$0xff]  ;;  %v408_v30 = vld [vmem:[#allocation2] sm:$0xff]  ;;  %v409_v37 = vld [vmem:[#allocation2 + $0x58] sm:$0xff] }
  0x4b   : > { %1554 = vmatprep.subr.bf16.mxu1 %v1635_v46  ;;  %v410_v44 = vld [vmem:[#allocation2 + $0x18] sm:$0xff] }
  0x4c   : > { %1475 = vmatpush3.bf16.msra.mxu0 %v1634_v47 }
  0x4d   : > { %1476 = vmatprep.subr.bf16.mxu0 %v1636_v48 }
  0x4e   : > { %1555 = vmatpush3.bf16.msra.mxu1 %v1635_v46 }
  0x4f   : > { %1556 = vmatprep.subr.bf16.mxu1 %v1638_v49 }
  0x50   : > { %1477 = vmatpush3.bf16.msra.mxu0 %v1637_v50 }
  0x51   : > { %1478 = vmatprep.subr.bf16.mxu0 %v1639_v51 }
  0x52   : > { %1557 = vmatpush3.bf16.msra.mxu1 %v1638_v49 }
  0x53   : > { %1558 = vmatprep.subr.bf16.mxu1 %v1641_v53 }
  0x54   : > { %1479 = vmatpush3.bf16.msra.mxu0 %v1640_v52  ;;  %v411_v52 = vld [vmem:[#allocation2 + $0x50] sm:$0xff] }
  0x55   : > { %1480 = vmatprep.subr.bf16.mxu0 %v1642_v54 }
  0x56   : > { %1559 = vmatpush3.bf16.msra.mxu1 %v1641_v53 }
  0x57   : > { %1560 = vmatprep.subr.bf16.mxu1 %v1644_v55 }
  0x58   : > { %1481 = vmatpush3.bf16.msra.mxu0 %v1643_v58 }
  0x5a   : > { %1561 = vmatpush3.bf16.msra.mxu1 %v1644_v55 }
  0x5b   : > { %808 = vmatmul.mubr.bf16.vlgmr.msra.gmra.mxu0 %v1645_v59  ;;  %v412_v59 = vld [vmem:[#allocation2 + $0x68] sm:$0xff] }
  0x5c   : > { %815 = vmatprep.mubr.bf16.mxu0 %v1650_v60 }
  0x5d   : > { %1563 = vmatmul.mubr.bf16.vlgmr.msra.gmra.mxu1 %v1649_v61 }
  0x5e   : > { %1566 = vmatprep.mubr.bf16.mxu1 %v1656_v62 }
  0x63   : > { %816 = vmatmul.mubr.bf16.gmra.mxu0 %v1652_v63 }
  0x64   : > { %823 = vmatprep.mubr.bf16.mxu0 %v1653_v0 }
  0x65   : > { %1567 = vmatmul.mubr.bf16.gmra.mxu1 %v1657_v1  ;;  %v413_v1 = vld [vmem:[#allocation2 + $0x8] sm:$0xff] }
  0x66   : > { %1570 = vmatprep.mubr.bf16.mxu1 %v1664_v2 }
  0x6b   : > { %824 = vmatmul.mubr.bf16.gmra.mxu0 %v1655_v3 }
  0x6c   : > { %831 = vmatprep.mubr.bf16.mxu0 %v1658_v4 }
  0x6d   : > { %1571 = vmatmul.mubr.bf16.gmra.mxu1 %v1665_v5 }
  0x6e   : > { %1574 = vmatprep.mubr.bf16.mxu1 %v1672_v6 }
  0x73   : > { %832 = vmatmul.mubr.bf16.gmra.mxu0 %v1660_v7 }
  0x74   : > { %839 = vmatprep.mubr.bf16.mxu0 %v1661_v8  ;;  %v414_v8 = vld [vmem:[#allocation2 + $0x48] sm:$0xff] }
  0x75   : > { %1575 = vmatmul.mubr.bf16.gmra.mxu1 %v1673_v9 }
  0x7b   : > { %840 = vmatmul.mubr.bf16.gmra.mxu0 %v1663_v10 }
  0x7c   : > { %847 = vmatprep.mubr.bf16.mxu0 %v1666_v11 }
  0x83   : > { %848 = vmatmul.mubr.bf16.gmra.mxu0 %v1668_v12 }
  0x84   : > { %855 = vmatprep.mubr.bf16.mxu0 %v1669_v13 }
  0x8b   : > { %856 = vmatmul.mubr.bf16.gmra.mxu0 %v1671_v14 }
  0x8c   : > { %863 = vmatprep.mubr.bf16.mxu0 %v1674_v15 }
  0x93   : > { %864 = vmatmul.mubr.bf16.gmra.mxu0 %v1676_v16  ;;  %v415_v16 = vld [vmem:[#allocation2 + $0x40] sm:$0xff] }
 0x11b   : > { %v1482_v17 = vpop.f32.mrf.mxu0 }
 0x11d   : > { %v1483_v18 = vpop.f32.mrf.mxu0  ;;  %v1564_v19 = vpop.f32.mrf.mxu1 }
 0x11e   : > { %v1484_v20 = vadd.f32 %v1483_v18, %v1482_v17 }
 0x11f   : > { %v1485_v21 = vpop.f32.mrf.mxu0  ;;  %v906_v23 = vpop.f32.mrf.mxu1 }
 0x120   : > { %v907_v24 = vadd.f32 %v1484_v20, %v906_v23  ;;  %v416_v23 = vld [vmem:[#allocation2 + $0x20] sm:$0xff] }
 0x121   : > { %v1486_v25 = vpop.f32.mrf.mxu0  ;;  %v1565_v26 = vpop.f32.mrf.mxu1 }
 0x122   : > { %v969_v27 = vadd.f32 %v907_v24, %v407_v22  ;;  %v1487_v28 = vadd.f32 %v1486_v25, %v1485_v21 }
 0x123   : > { %v1488_v29 = vpop.f32.mrf.mxu0  ;;  %v909_v31 = vpop.f32.mrf.mxu1 }
 0x124   : > { %985 = vst [vmem:[#allocation2 + $0x30] sm:$0xff] %v969_v27  ;;  %v910_v32 = vadd.f32 %v1487_v28, %v909_v31 }
 0x125   : > { %v1489_v33 = vpop.f32.mrf.mxu0  ;;  %v1568_v34 = vpop.f32.mrf.mxu1 }
 0x126   : > { %v970_v35 = vadd.f32 %v910_v32, %v408_v30  ;;  %v1490_v36 = vadd.f32 %v1489_v33, %v1488_v29  ;;  %v417_v29 = vld [vmem:[#allocation2 + $0x10] sm:$0xff] }
 0x127   : > { %v1491_v38 = vpop.f32.mrf.mxu0  ;;  %v922_v41 = vpop.f32.mrf.mxu1 }
 0x128   : > { %986 = vst [vmem:[#allocation2] sm:$0xff] %v970_v35  ;;  %v915_v39 = vadd.f32 %v1564_v19, %v1490_v36  ;;  %v418_v36 = vld [vmem:[#allocation2 + $0x38] sm:$0xff] }
 0x129   : > { %v1492_v40 = vpop.f32.mrf.mxu0  ;;  %v1569_v48 = vpop.f32.mrf.mxu1 }
 0x12a   : > { %v971_v42 = vadd.f32 %v915_v39, %v409_v37  ;;  %v1493_v43 = vadd.f32 %v1492_v40, %v1491_v38 }
 0x12b   : > { %v1494_v45 = vpop.f32.mrf.mxu0  ;;  %v925_v55 = vpop.f32.mrf.mxu1 }
 0x12c   : > { %987 = vst [vmem:[#allocation2 + $0x58] sm:$0xff] %v971_v42  ;;  %v918_v46 = vadd.f32 %v1565_v26, %v1493_v43 }
 0x12d   : > { %v1495_v47 = vpop.f32.mrf.mxu0  ;;  %v1572_v62 = vpop.f32.mrf.mxu1 }
 0x12e   : > { %v972_v49 = vadd.f32 %v918_v46, %v410_v44  ;;  %v1496_v50 = vadd.f32 %v1495_v47, %v1494_v45  ;;  %v419_v44 = vld [vmem:[#allocation2 + $0x60] sm:$0xff] }
 0x12f   : > { %v1497_v51 = vpop.f32.mrf.mxu0  ;;  %v938_v5 = vpop.f32.mrf.mxu1 }
 0x130   : > { %988 = vst [vmem:[#allocation2 + $0x18] sm:$0xff] %v972_v49  ;;  %v923_v53 = vadd.f32 %v1496_v50, %v922_v41 }
 0x131   : > { %v1498_v54 = vpop.f32.mrf.mxu0  ;;  %v1573_v12 = vpop.f32.mrf.mxu1 }
 0x132   : > { %v973_v56 = vadd.f32 %v923_v53, %v411_v52  ;;  %v1499_v57 = vadd.f32 %v1498_v54, %v1497_v51  ;;  %v420_v51 = vld [vmem:[#allocation2 + $0x70] sm:$0xff] }
 0x133   : > { %v1500_v58 = vpop.f32.mrf.mxu0  ;;  %v941_v19 = vpop.f32.mrf.mxu1 }
 0x134   : > { %989 = vst [vmem:[#allocation2 + $0x50] sm:$0xff] %v973_v56  ;;  %v926_v60 = vadd.f32 %v1499_v57, %v925_v55  ;;  %v421_v56 = vld [vmem:[#allocation2 + $0x78] sm:$0xff] }
 0x135   : > { %v1501_v61 = vpop.f32.mrf.mxu0  ;;  %v1576_v26 = vpop.f32.mrf.mxu1 }
 0x136   : > { %v974_v63 = vadd.f32 %v926_v60, %v412_v59  ;;  %v1502_v0 = vadd.f32 %v1501_v61, %v1500_v58 }
 0x137   : > { %v1503_v2 = vpop.f32.mrf.mxu0  ;;  %v954_v33 = vpop.f32.mrf.mxu1 }
 0x138   : > { %990 = vst [vmem:[#allocation2 + $0x68] sm:$0xff] %v974_v63  ;;  %v931_v3 = vadd.f32 %v1568_v34, %v1502_v0 }
 0x139   : > { %v1504_v4 = vpop.f32.mrf.mxu0  ;;  %v1577_v40 = vpop.f32.mrf.mxu1 }
 0x13a   : > { %v975_v6 = vadd.f32 %v931_v3, %v413_v1  ;;  %v1505_v7 = vadd.f32 %v1504_v4, %v1503_v2 }
 0x13b   : > { %v1506_v9 = vpop.f32.mrf.mxu0  ;;  %v957_v47 = vpop.f32.mrf.mxu1 }
 0x13c   : > { %991 = vst [vmem:[#allocation2 + $0x8] sm:$0xff] %v975_v6  ;;  %v934_v10 = vadd.f32 %v1569_v48, %v1505_v7 }
 0x13d   : > { %v1507_v11 = vpop.f32.mrf.mxu0 }
 0x13e   : > { %v976_v13 = vadd.f32 %v934_v10, %v414_v8  ;;  %v1508_v14 = vadd.f32 %v1507_v11, %v1506_v9 }
 0x13f   : > { %v1509_v15 = vpop.f32.mrf.mxu0 }
 0x140   : > { %992 = vst [vmem:[#allocation2 + $0x48] sm:$0xff] %v976_v13  ;;  %v939_v17 = vadd.f32 %v1508_v14, %v938_v5 }
 0x141   : > { %v1510_v18 = vpop.f32.mrf.mxu0 }
 0x142   : > { %v977_v20 = vadd.f32 %v939_v17, %v415_v16  ;;  %v1511_v21 = vadd.f32 %v1510_v18, %v1509_v15 }
 0x143   : > { %v1512_v22 = vpop.f32.mrf.mxu0 }
 0x144   : > { %993 = vst [vmem:[#allocation2 + $0x40] sm:$0xff] %v977_v20  ;;  %v942_v24 = vadd.f32 %v1511_v21, %v941_v19 }
 0x145   : > { %v1513_v25 = vpop.f32.mrf.mxu0 }
 0x146   : > { %v978_v27 = vadd.f32 %v942_v24, %v416_v23  ;;  %v1514_v28 = vadd.f32 %v1513_v25, %v1512_v22 }
 0x147   : > { %v1515_v30 = vpop.f32.mrf.mxu0 }
 0x148   : > { %994 = vst [vmem:[#allocation2 + $0x20] sm:$0xff] %v978_v27  ;;  %v947_v31 = vadd.f32 %v1572_v62, %v1514_v28  ;;  %v422_v62 = vld [vmem:[#allocation2 + $0x28] sm:$0xff] }
 0x149   : > { %v1516_v32 = vpop.f32.mrf.mxu0 }
 0x14a   : > { %v979_v34 = vadd.f32 %v947_v31, %v417_v29  ;;  %v1517_v35 = vadd.f32 %v1516_v32, %v1515_v30 }
 0x14b   : > { %v1518_v37 = vpop.f32.mrf.mxu0 }
 0x14c   : > { %995 = vst [vmem:[#allocation2 + $0x10] sm:$0xff] %v979_v34  ;;  %v950_v38 = vadd.f32 %v1573_v12, %v1517_v35 }
 0x14d   : > { %v1519_v39 = vpop.f32.mrf.mxu0 }
 0x14e   : > { %v980_v41 = vadd.f32 %v950_v38, %v418_v36  ;;  %v1520_v42 = vadd.f32 %v1519_v39, %v1518_v37 }
 0x14f   : > { %v1521_v43 = vpop.f32.mrf.mxu0 }
 0x150   : > { %996 = vst [vmem:[#allocation2 + $0x38] sm:$0xff] %v980_v41  ;;  %v955_v45 = vadd.f32 %v1520_v42, %v954_v33 }
 0x151   : > { %v1522_v46 = vpop.f32.mrf.mxu0 }
 0x152   : > { %v981_v48 = vadd.f32 %v955_v45, %v419_v44  ;;  %v1523_v49 = vadd.f32 %v1522_v46, %v1521_v43 }
 0x153   : > { %v1524_v50 = vpop.f32.mrf.mxu0 }
 0x154   : > { %997 = vst [vmem:[#allocation2 + $0x60] sm:$0xff] %v981_v48  ;;  %v958_v52 = vadd.f32 %v1523_v49, %v957_v47 }
 0x155   : > { %v1525_v53 = vpop.f32.mrf.mxu0 }
 0x156   : > { %v982_v54 = vadd.f32 %v958_v52, %v420_v51  ;;  %v1526_v55 = vadd.f32 %v1525_v53, %v1524_v50 }
 0x157   : > { %v1527_v57 = vpop.f32.mrf.mxu0 }
 0x158   : > { %998 = vst [vmem:[#allocation2 + $0x70] sm:$0xff] %v982_v54  ;;  %v963_v58 = vadd.f32 %v1576_v26, %v1526_v55 }
 0x159   : > { %v1528_v59 = vpop.f32.mrf.mxu0 }
 0x15a   : > { %v983_v60 = vadd.f32 %v963_v58, %v421_v56  ;;  %v1529_v61 = vadd.f32 %v1528_v59, %v1527_v57 }
 0x15c   : > { %999 = vst [vmem:[#allocation2 + $0x78] sm:$0xff] %v983_v60  ;;  %v966_v63 = vadd.f32 %v1577_v40, %v1529_v61  ;;  %1004 = sbr.rel (%p1379_p11) target bundleno = 375 (0x177), region = 70 }
 0x15e   : > { %v984_v0 = vadd.f32 %v966_v63, %v422_v62 }
 0x160   : > { %1000 = vst [vmem:[#allocation2 + $0x28] sm:$0xff] %v984_v0 }
 0x161   : > { %v1005_v1 = vld [vmem:[#allocation2 + $0x30] sm:$0xff]  ;;  %v1006_v2 = vld [vmem:[#allocation2] sm:$0xff]  ;;  %v1007_v7 = vld [vmem:[#allocation2 + $0x58] sm:$0xff] }
 0x162   : > { %v1918_v3 = vld [vmem:[%s1998_s2] ss:$0 sm:$0xff]  ;;  %v1008_v8 = vld [vmem:[#allocation2 + $0x18] sm:$0xff]  ;;  %v1009_v11 = vld [vmem:[#allocation2 + $0x50] sm:$0xff] }
 0x163   : > { %v1028_v4 = vmul.f32 %v1918_v3, %v1005_v1  ;;  %v1029_v5 = vmul.f32 %v1918_v3, %v1006_v2  ;;  %v1925_v6 = vld [vmem:[%s1999_s3] ss:$0 sm:$0xff]  ;;  %v1030_v9 = vmul.f32 %v1918_v3, %v1007_v7  ;;  %v1031_v10 = vmul.f32 %v1918_v3, %v1008_v8  ;;  %v1010_v12 = vld [vmem:[#allocation2 + $0x68] sm:$0xff]  ;;  %v1015_v33 = vld [vmem:[#allocation2 + $0x10] sm:$0xff] }
 0x164   : > { %v1011_v13 = vld [vmem:[#allocation2 + $0x8] sm:$0xff]  ;;  %v1032_v16 = vmul.f32 %v1918_v3, %v1009_v11  ;;  %v1033_v17 = vmul.f32 %v1918_v3, %v1010_v12  ;;  %v1013_v23 = vld [vmem:[#allocation2 + $0x40] sm:$0xff]  ;;  %v1016_v34 = vld [vmem:[#allocation2 + $0x38] sm:$0xff]  ;;  %v1038_v48 = vmul.f32 %v1918_v3, %v1015_v33 }
 0x165   : > { %v1051_v14 = vadd.f32 %v1925_v6, %v1028_v4  ;;  %v1052_v15 = vadd.f32 %v1925_v6, %v1029_v5  ;;  %v1012_v18 = vld [vmem:[#allocation2 + $0x48] sm:$0xff]  ;;  %v1053_v19 = vadd.f32 %v1925_v6, %v1030_v9  ;;  %v1054_v20 = vadd.f32 %v1925_v6, %v1031_v10  ;;  %v1014_v28 = vld [vmem:[#allocation2 + $0x20] sm:$0xff]  ;;  %v1018_v40 = vld [vmem:[#allocation2 + $0x70] sm:$0xff] }
 0x166   : > { %v1034_v21 = vmul.f32 %v1918_v3, %v1011_v13  ;;  %v1035_v22 = vmul.f32 %v1918_v3, %v1012_v18  ;;  %v1055_v26 = vadd.f32 %v1925_v6, %v1032_v16  ;;  %v1056_v27 = vadd.f32 %v1925_v6, %v1033_v17  ;;  %v1017_v39 = vld [vmem:[#allocation2 + $0x60] sm:$0xff]  ;;  %v1019_v45 = vld [vmem:[#allocation2 + $0x78] sm:$0xff] }
 0x167   : > { %v1067_v24 = vmax.f32 %v1051_v14, 0.0  ;;  %v1068_v25 = vmax.f32 %v1052_v15, 0.0  ;;  %v1069_v29 = vmax.f32 %v1053_v19, 0.0  ;;  %v1070_v30 = vmax.f32 %v1054_v20, 0.0  ;;  %v1020_v50 = vld [vmem:[#allocation2 + $0x28] sm:$0xff] }
 0x168   : > { %v1057_v31 = vadd.f32 %v1925_v6, %v1034_v21  ;;  %v1058_v32 = vadd.f32 %v1925_v6, %v1035_v22  ;;  %v1071_v36 = vmax.f32 %v1055_v26, 0.0  ;;  %v1072_v37 = vmax.f32 %v1056_v27, 0.0 }
 0x169   : > { %v1422_v35 = vpack.c.bf16 %v1068_v25, %v1067_v24  ;;  %v1036_v38 = vmul.f32 %v1918_v3, %v1013_v23  ;;  %v1427_v41 = vpack.c.bf16 %v1070_v30, %v1069_v29  ;;  %v1037_v44 = vmul.f32 %v1918_v3, %v1014_v28 }
 0x16a   : > { %v1073_v42 = vmax.f32 %v1057_v31, 0.0  ;;  %v1074_v43 = vmax.f32 %v1058_v32, 0.0  ;;  %v1432_v46 = vpack.c.bf16 %v1072_v37, %v1071_v36  ;;  %v1039_v49 = vmul.f32 %v1918_v3, %v1016_v34 }
 0x16b   : > { %1423 = vst [vmem:[%s2000_s4] sm:$0xff] %v1422_v35   ;;  %v1059_v47 = vadd.f32 %v1925_v6, %v1036_v38  ;;  %1459 = vst [vmem:[%s2000_s4 + $0x8] sm:$0xff] %v1427_v41   ;;  %v1060_v52 = vadd.f32 %v1925_v6, %v1037_v44  ;;  %v1040_v53 = vmul.f32 %v1918_v3, %v1017_v39 }
 0x16c   : > { %v1437_v51 = vpack.c.bf16 %v1074_v43, %v1073_v42  ;;  %v1041_v54 = vmul.f32 %v1918_v3, %v1018_v40  ;;  %1460 = vst [vmem:[%s2000_s4 + $0x10] sm:$0xff] %v1432_v46   ;;  %v1061_v56 = vadd.f32 %v1925_v6, %v1038_v48  ;;  %v1062_v57 = vadd.f32 %v1925_v6, %v1039_v49 }
 0x16d   : > { %v1075_v55 = vmax.f32 %v1059_v47, 0.0  ;;  %v1042_v58 = vmul.f32 %v1918_v3, %v1019_v45  ;;  %v1076_v59 = vmax.f32 %v1060_v52, 0.0  ;;  %v1063_v60 = vadd.f32 %v1925_v6, %v1040_v53 }
 0x16e   : > { %1461 = vst [vmem:[%s2000_s4 + $0x18] sm:$0xff] %v1437_v51   ;;  %v1064_v61 = vadd.f32 %v1925_v6, %v1041_v54  ;;  %v1043_v62 = vmul.f32 %v1918_v3, %v1020_v50  ;;  %v1077_v63 = vmax.f32 %v1061_v56, 0.0  ;;  %v1078_v0 = vmax.f32 %v1062_v57, 0.0 }
 0x16f   : > { %v1065_v1 = vadd.f32 %v1925_v6, %v1042_v58  ;;  %v1442_v2 = vpack.c.bf16 %v1076_v59, %v1075_v55  ;;  %v1079_v4 = vmax.f32 %v1063_v60, 0.0 }
 0x170   : > { %v1080_v5 = vmax.f32 %v1064_v61, 0.0  ;;  %v1066_v7 = vadd.f32 %v1925_v6, %v1043_v62  ;;  %v1447_v8 = vpack.c.bf16 %v1078_v0, %v1077_v63 }
 0x171   : > { %v1081_v9 = vmax.f32 %v1065_v1, 0.0  ;;  %1462 = vst [vmem:[%s2000_s4 + $0x20] sm:$0xff] %v1442_v2  }
 0x172   : > { %v1452_v10 = vpack.c.bf16 %v1080_v5, %v1079_v4  ;;  %v1082_v11 = vmax.f32 %v1066_v7, 0.0  ;;  %1463 = vst [vmem:[%s2000_s4 + $0x28] sm:$0xff] %v1447_v8  }
 0x174   : > { %1464 = vst [vmem:[%s2000_s4 + $0x30] sm:$0xff] %v1452_v10   ;;  %v1457_v3 = vpack.c.bf16 %v1082_v11, %v1081_v9 }
 0x176   : > { %1465 = vst [vmem:[%s2000_s4 + $0x38] sm:$0xff] %v1457_v3  }
 0x177 PF: > { %s14_s19 = sadd.s32 1, %s1715_s19   ;;  %s2001_s15 = smov %s1703_s16 }
 0x178   : > { %p11_p12 = scmp.ge.s32.totalorder %s14_s19, 5   ;;  %s2002_s16 = smov %s1778_s23 }
 0x179   : > { %s2003_s17 = smov %s1711_s18  ;;  %s2004_s18 = smov %s2006_s20 }
 0x17a   :  { %13 = sbr.rel (!%p11_p12) target bundleno = 3 (0x3), region = 120 }

// kernel: _lambda_.9
= control target key start
LH: loop header
LB: loop body
LE: loop exit
PB: predicated region body
PF: predicated region fallthrough
CT: control target
= control target key end

     0   :  { %s391_s0 = inlined_call_operand.vmem [shape: f32[128,128], index: 0, kind: input, shape index: {}]   ;;  %s392_s1 = inlined_call_operand.vmem [shape: f32[1,128], index: 1, kind: input, shape index: {}]   ;;  %s393_s2 = inlined_call_operand.vmem [shape: f32[1,128], index: 2, kind: input, shape index: {}]   ;;  %s394_s3 = inlined_call_operand.vmem [shape: bf16[128,128], index: 3, kind: output, shape index: {}]  }
   0x1   :  { %v14_v0 = vld [vmem:[%s391_s0] sm:$0xff]  ;;  %v15_v1 = vld [vmem:[%s391_s0 + $0x8] sm:$0xff]  ;;  %v16_v6 = vld [vmem:[%s391_s0 + $0x10] sm:$0xff] }
   0x2   :  { %v286_v2 = vld [vmem:[%s392_s1] ss:$0 sm:$0xff]  ;;  %v17_v7 = vld [vmem:[%s391_s0 + $0x18] sm:$0xff]  ;;  %v19_v11 = vld [vmem:[%s391_s0 + $0x28] sm:$0xff] }
   0x3   :  { %v37_v3 = vmul.f32 %v286_v2, %v14_v0  ;;  %v38_v4 = vmul.f32 %v286_v2, %v15_v1  ;;  %v293_v5 = vld [vmem:[%s393_s2] ss:$0 sm:$0xff]  ;;  %v39_v8 = vmul.f32 %v286_v2, %v16_v6  ;;  %v40_v9 = vmul.f32 %v286_v2, %v17_v7  ;;  %v20_v12 = vld [vmem:[%s391_s0 + $0x30] sm:$0xff]  ;;  %v21_v17 = vld [vmem:[%s391_s0 + $0x38] sm:$0xff] }
   0x4   :  { %v18_v10 = vld [vmem:[%s391_s0 + $0x20] sm:$0xff]  ;;  %v42_v16 = vmul.f32 %v286_v2, %v19_v11  ;;  %v43_v20 = vmul.f32 %v286_v2, %v20_v12  ;;  %v44_v21 = vmul.f32 %v286_v2, %v21_v17  ;;  %v23_v27 = vld [vmem:[%s391_s0 + $0x48] sm:$0xff]  ;;  %v24_v32 = vld [vmem:[%s391_s0 + $0x50] sm:$0xff] }
   0x5   :  { %v60_v13 = vadd.f32 %v293_v5, %v37_v3  ;;  %v61_v14 = vadd.f32 %v293_v5, %v38_v4  ;;  %v41_v15 = vmul.f32 %v286_v2, %v18_v10  ;;  %v62_v18 = vadd.f32 %v293_v5, %v39_v8  ;;  %v22_v22 = vld [vmem:[%s391_s0 + $0x40] sm:$0xff]  ;;  %v25_v33 = vld [vmem:[%s391_s0 + $0x58] sm:$0xff]  ;;  %v27_v39 = vld [vmem:[%s391_s0 + $0x68] sm:$0xff] }
   0x6   :  { %v63_v19 = vadd.f32 %v293_v5, %v40_v9  ;;  %v65_v26 = vadd.f32 %v293_v5, %v42_v16  ;;  %v66_v30 = vadd.f32 %v293_v5, %v43_v20  ;;  %v67_v31 = vadd.f32 %v293_v5, %v44_v21  ;;  %v26_v38 = vld [vmem:[%s391_s0 + $0x60] sm:$0xff]  ;;  %v28_v44 = vld [vmem:[%s391_s0 + $0x70] sm:$0xff]  ;;  %v29_v49 = vld [vmem:[%s391_s0 + $0x78] sm:$0xff] }
   0x7   :  { %v76_v23 = vmax.f32 %v60_v13, 0.0  ;;  %v77_v24 = vmax.f32 %v61_v14, 0.0  ;;  %v64_v25 = vadd.f32 %v293_v5, %v41_v15  ;;  %v78_v28 = vmax.f32 %v62_v18, 0.0 }
   0x8   :  { %v79_v29 = vmax.f32 %v63_v19, 0.0  ;;  %v81_v36 = vmax.f32 %v65_v26, 0.0  ;;  %v45_v37 = vmul.f32 %v286_v2, %v22_v22  ;;  %v82_v41 = vmax.f32 %v66_v30, 0.0 }
   0x9   :  { %v213_v34 = vpack.c.bf16 %v77_v24, %v76_v23  ;;  %v80_v35 = vmax.f32 %v64_v25, 0.0  ;;  %v83_v42 = vmax.f32 %v67_v31, 0.0  ;;  %v46_v43 = vmul.f32 %v286_v2, %v23_v27 }
   0xa   :  { %v218_v40 = vpack.c.bf16 %v79_v29, %v78_v28  ;;  %v68_v46 = vadd.f32 %v293_v5, %v45_v37  ;;  %v47_v47 = vmul.f32 %v286_v2, %v24_v32  ;;  %v48_v48 = vmul.f32 %v286_v2, %v25_v33 }
   0xb   :  { %214 = vst [vmem:[%s394_s3] sm:$0xff] %v213_v34   ;;  %v223_v45 = vpack.c.bf16 %v81_v36, %v80_v35  ;;  %v228_v50 = vpack.c.bf16 %v83_v42, %v82_v41  ;;  %v69_v51 = vadd.f32 %v293_v5, %v46_v43  ;;  %v49_v52 = vmul.f32 %v286_v2, %v26_v38 }
   0xc   :  { %250 = vst [vmem:[%s394_s3 + $0x8] sm:$0xff] %v218_v40   ;;  %v50_v53 = vmul.f32 %v286_v2, %v27_v39  ;;  %v84_v54 = vmax.f32 %v68_v46, 0.0  ;;  %v70_v55 = vadd.f32 %v293_v5, %v47_v47  ;;  %v71_v56 = vadd.f32 %v293_v5, %v48_v48 }
   0xd   :  { %251 = vst [vmem:[%s394_s3 + $0x10] sm:$0xff] %v223_v45   ;;  %v51_v57 = vmul.f32 %v286_v2, %v28_v44  ;;  %252 = vst [vmem:[%s394_s3 + $0x18] sm:$0xff] %v228_v50   ;;  %v85_v58 = vmax.f32 %v69_v51, 0.0  ;;  %v72_v59 = vadd.f32 %v293_v5, %v49_v52  ;;  %v52_v61 = vmul.f32 %v286_v2, %v29_v49 }
   0xe   :  { %v73_v60 = vadd.f32 %v293_v5, %v50_v53  ;;  %v86_v62 = vmax.f32 %v70_v55, 0.0  ;;  %v87_v63 = vmax.f32 %v71_v56, 0.0 }
   0xf   :  { %v74_v0 = vadd.f32 %v293_v5, %v51_v57  ;;  %v233_v1 = vpack.c.bf16 %v85_v58, %v84_v54  ;;  %v88_v3 = vmax.f32 %v72_v59, 0.0  ;;  %v75_v6 = vadd.f32 %v293_v5, %v52_v61 }
  0x10   :  { %v89_v4 = vmax.f32 %v73_v60, 0.0  ;;  %v238_v7 = vpack.c.bf16 %v87_v63, %v86_v62 }
  0x11   :  { %v90_v8 = vmax.f32 %v74_v0, 0.0  ;;  %253 = vst [vmem:[%s394_s3 + $0x20] sm:$0xff] %v233_v1   ;;  %v91_v10 = vmax.f32 %v75_v6, 0.0 }
  0x12   :  { %v243_v9 = vpack.c.bf16 %v89_v4, %v88_v3  ;;  %254 = vst [vmem:[%s394_s3 + $0x28] sm:$0xff] %v238_v7  }
  0x13   :  { %v248_v2 = vpack.c.bf16 %v91_v10, %v90_v8 }
  0x14   :  { %255 = vst [vmem:[%s394_s3 + $0x30] sm:$0xff] %v243_v9  }
  0x15   :  { %256 = vst [vmem:[%s394_s3 + $0x38] sm:$0xff] %v248_v2  }

// kernel: _lambda_.11
= control target key start
LH: loop header
LB: loop body
LE: loop exit
PB: predicated region body
PF: predicated region fallthrough
CT: control target
= control target key end

     0   :  { %s1534_s12 = smov 0   ;;  %s1536_s13 = smov 0   ;;  %s1817_s0 = inlined_call_operand.vmem [shape: bf16[128,1152], index: 0, kind: input, shape index: {}]   ;;  %s1818_s1 = inlined_call_operand.vmem [shape: bf16[1152,128], index: 1, kind: input, shape index: {}]   ;;  %s1819_s2 = inlined_call_operand.vmem [shape: f32[128,128], index: 2, kind: input, shape index: {}]   ;;  %s1820_s3 = inlined_call_operand.vmem [shape: f32[128,128], index: 3, kind: output, shape index: {}]  }
   0x1   :  { %s1538_s14 = smov 0   ;;  %s1540_s15 = smov 0  }
   0x2   :  { %s1542_s16 = smov 0  }
   0x3 LB: > { %s25_s17 = sadd.s32 1, %s1507_s15  ;;  %p48_p1 = scmp.ne.s32.totalorder %s1499_s13, %s1495_s12  ;;  %s1511_s16 = sphi %s1542_s16, %s13_s16   ;;  %s1507_s15 = sphi %s1540_s15, %s1824_s15   ;;  %s1503_s14 = sphi %s1538_s14, %s1823_s14   ;;  %s1499_s13 = sphi %s1536_s13, %s1822_s13   ;;  %s1495_s12 = sphi %s1534_s12, %s1821_s12  }
   0x4   : > { %p26_p0 = scmp.ge.s32.totalorder %s25_s17, 3  ;;  %p49_p2 = scmp.eq.s32.totalorder %s1511_s16, 0 }
   0x5   : > { %s41_s19 = sadd.s32 1, %s1499_s13  ;;  %p1171_p5 = scmp.ge.s32.totalorder %s1511_s16, 3 }
   0x6   : > { %s1826_s17 = smov (%p26_p0, %s25_s17), 0  ;;  %p50_p3 = por %p49_p2, %p48_p1 }
   0x7   : > { %s37_s18 = ssub.s32 %s1507_s15, %s1826_s17  ;;  %170 = sbr.rel (%p1171_p5) target bundleno = 35 (0x23), region = 20 }
   0x8   : > { %p39_p4 = scmp.eq.s32.totalorder %s37_s18, 0 }
   0xa   : > { %s1569_s20 = scalar_select %p39_p4, %s1499_s13, %s41_s19  }
   0xc   : > { %173 = sbr.rel (!%p50_p3) target bundleno = 35 (0x23), region = 24  ;;  %s175_s21 = sand.u32 (%p50_p3), 1, %s1499_s13  }
   0xd   : > { %s1261_s22 = smul.u32 (%p50_p3), 12, %s1507_s15 }
   0xe   : > { %s1374_s23 = smul.u32 (%p50_p3), 192, %s175_s21 }
   0xf   : > { %s1577_s26 = scalar_lea.vmem (%p50_p3), %s1817_s0, %s1261_s22 }
  0x10   : > { %v198_v0 = vld [vmem:[%s1577_s26] sm:$0xff] (%p50_p3)  ;;  %v202_v2 = vld [vmem:[%s1577_s26 + $0x48] sm:$0xff] (%p50_p3)  ;;  %s1582_s27 = scalar_lea.vmem (%p50_p3), [#allocation3], %s1374_s23  ;;  %v206_v4 = vld [vmem:[%s1577_s26 + $0x90] sm:$0xff] (%p50_p3) }
  0x11   : > { %v200_v1 = vld [vmem:[%s1577_s26 + $0x24] sm:$0xff]  ;;  %199 = vst [vmem:[%s1582_s27] sm:$0xff] %v198_v0  ;;  %203 = vst [vmem:[%s1582_s27 + $0x18] sm:$0xff] %v202_v2  ;;  %v204_v3 = vld [vmem:[%s1577_s26 + $0x6c] sm:$0xff] }
  0x12   : > { %201 = vst [vmem:[%s1582_s27 + $0xc] sm:$0xff] %v200_v1  ;;  %v208_v5 = vld [vmem:[%s1577_s26 + $0xb4] sm:$0xff]  ;;  %205 = vst [vmem:[%s1582_s27 + $0x24] sm:$0xff] %v204_v3  ;;  %v212_v7 = vld [vmem:[%s1577_s26 + $0xfc] sm:$0xff] }
  0x13   : > { %207 = vst [vmem:[%s1582_s27 + $0x30] sm:$0xff] %v206_v4  ;;  %209 = vst [vmem:[%s1582_s27 + $0x3c] sm:$0xff] %v208_v5  ;;  %v210_v6 = vld [vmem:[%s1577_s26 + $0xd8] sm:$0xff]  ;;  %v214_v8 = vld [vmem:[%s1577_s26 + $0x120] sm:$0xff] }
  0x14   : > { %211 = vst [vmem:[%s1582_s27 + $0x48] sm:$0xff] %v210_v6  ;;  %213 = vst [vmem:[%s1582_s27 + $0x54] sm:$0xff] %v212_v7  ;;  %v216_v9 = vld [vmem:[%s1577_s26 + $0x144] sm:$0xff]  ;;  %v220_v11 = vld [vmem:[%s1577_s26 + $0x18c] sm:$0xff] }
  0x15   : > { %215 = vst [vmem:[%s1582_s27 + $0x60] sm:$0xff] %v214_v8  ;;  %v218_v10 = vld [vmem:[%s1577_s26 + $0x168] sm:$0xff]  ;;  %217 = vst [vmem:[%s1582_s27 + $0x6c] sm:$0xff] %v216_v9  ;;  %v222_v12 = vld [vmem:[%s1577_s26 + $0x1b0] sm:$0xff] }
  0x16   : > { %219 = vst [vmem:[%s1582_s27 + $0x78] sm:$0xff] %v218_v10  ;;  %221 = vst [vmem:[%s1582_s27 + $0x84] sm:$0xff] %v220_v11  ;;  %v224_v13 = vld [vmem:[%s1577_s26 + $0x1d4] sm:$0xff]  ;;  %v228_v15 = vld [vmem:[%s1577_s26 + $0x21c] sm:$0xff] }
  0x17   : > { %v226_v14 = vld [vmem:[%s1577_s26 + $0x1f8] sm:$0xff]  ;;  %223 = vst [vmem:[%s1582_s27 + $0x90] sm:$0xff] %v222_v12  ;;  %225 = vst [vmem:[%s1582_s27 + $0x9c] sm:$0xff] %v224_v13  ;;  %v1173_v16 = vld [vmem:[%s1577_s26 + $0x8] sm:$0xf] }
  0x18   : > { %227 = vst [vmem:[%s1582_s27 + $0xa8] sm:$0xff] %v226_v14  ;;  %v1175_v17 = vld [vmem:[%s1577_s26 + $0x2c] sm:$0xf]  ;;  %229 = vst [vmem:[%s1582_s27 + $0xb4] sm:$0xff] %v228_v15  ;;  %v1177_v18 = vld [vmem:[%s1577_s26 + $0x50] sm:$0xf] }
  0x19   : > { %1174 = vst [vmem:[%s1582_s27 + $0x8] sm:$0xf] %v1173_v16  ;;  %1176 = vst [vmem:[%s1582_s27 + $0x14] sm:$0xf] %v1175_v17  ;;  %v1179_v19 = vld [vmem:[%s1577_s26 + $0x74] sm:$0xf] }
  0x1a   : > { %v1181_v20 = vld [vmem:[%s1577_s26 + $0x98] sm:$0xf]  ;;  %1178 = vst [vmem:[%s1582_s27 + $0x20] sm:$0xf] %v1177_v18  ;;  %1180 = vst [vmem:[%s1582_s27 + $0x2c] sm:$0xf] %v1179_v19 }
  0x1b   : > { %1182 = vst [vmem:[%s1582_s27 + $0x38] sm:$0xf] %v1181_v20  ;;  %v1183_v21 = vld [vmem:[%s1577_s26 + $0xbc] sm:$0xf]  ;;  %v1185_v22 = vld [vmem:[%s1577_s26 + $0xe0] sm:$0xf] }
  0x1c   : > { %v1187_v23 = vld [vmem:[%s1577_s26 + $0x104] sm:$0xf]  ;;  %1184 = vst [vmem:[%s1582_s27 + $0x44] sm:$0xf] %v1183_v21  ;;  %1186 = vst [vmem:[%s1582_s27 + $0x50] sm:$0xf] %v1185_v22 }
  0x1d   : > { %1188 = vst [vmem:[%s1582_s27 + $0x5c] sm:$0xf] %v1187_v23  ;;  %v1189_v24 = vld [vmem:[%s1577_s26 + $0x128] sm:$0xf]  ;;  %v1191_v25 = vld [vmem:[%s1577_s26 + $0x14c] sm:$0xf] }
  0x1e   : > { %v1193_v26 = vld [vmem:[%s1577_s26 + $0x170] sm:$0xf]  ;;  %1190 = vst [vmem:[%s1582_s27 + $0x68] sm:$0xf] %v1189_v24  ;;  %1192 = vst [vmem:[%s1582_s27 + $0x74] sm:$0xf] %v1191_v25 }
  0x1f   : > { %1194 = vst [vmem:[%s1582_s27 + $0x80] sm:$0xf] %v1193_v26  ;;  %v1195_v27 = vld [vmem:[%s1577_s26 + $0x194] sm:$0xf]  ;;  %v1197_v28 = vld [vmem:[%s1577_s26 + $0x1b8] sm:$0xf] }
  0x20   : > { %v1199_v29 = vld [vmem:[%s1577_s26 + $0x1dc] sm:$0xf]  ;;  %1196 = vst [vmem:[%s1582_s27 + $0x8c] sm:$0xf] %v1195_v27  ;;  %1198 = vst [vmem:[%s1582_s27 + $0x98] sm:$0xf] %v1197_v28 }
  0x21   : > { %1200 = vst [vmem:[%s1582_s27 + $0xa4] sm:$0xf] %v1199_v29  ;;  %v1201_v30 = vld [vmem:[%s1577_s26 + $0x200] sm:$0xf]  ;;  %v1203_v31 = vld [vmem:[%s1577_s26 + $0x224] sm:$0xf] }
  0x22   : > { %1202 = vst [vmem:[%s1582_s27 + $0xb0] sm:$0xf] %v1201_v30  ;;  %1204 = vst [vmem:[%s1582_s27 + $0xbc] sm:$0xf] %v1203_v31 }
  0x23 PF: > { %p1205_p6 = scmp.ge.s32.totalorder %s1511_s16, 1  ;;  %p286_p7 = scmp.lt.s32.totalorder %s1511_s16, 4 }
  0x25   : > { %p287_p8 = pnand %p1205_p6, %p286_p7 }
  0x26   : > { %s293_s28 = sand.u32 (!%p287_p8), 1, %s1495_s12   ;;  %s337_s29 = smul.u32 (!%p287_p8), 48, %s1503_s14 }
  0x27   : > { %290 = sbr.rel (%p287_p8) target bundleno = 368 (0x170), region = 54  ;;  %p1207_p10 = scmp.ne.s32.totalorder (!%p287_p8), %s1503_s14, 0 }
  0x28   : > { %s1375_s30 = smul.u32 (!%p287_p8), 192, %s293_s28  ;;  %p338_p9 = scmp.lt.s32.totalorder (!%p287_p8), %s337_s29, 143 }
  0x2a   : > { %s1654_s8 = scalar_lea.vmem (!%p287_p8), [#allocation3], %s1375_s30 }
  0x2c   : > { %s1828_s29 = smov (!%p338_p9, %s337_s29), 143  ;;  %368 = sbr.rel (%p1207_p10) target bundleno = 58 (0x3a), region = 62 }
  0x2d   : > { %s1206_s4 = sshll.u32 %s1828_s29, 2 }
  0x2e   : > { %s1652_s7 = scalar_lea.vmem %s1818_s1, %s1206_s4 }
  0x31   : > { %v1513_v32 = vmov 0.0  }
  0x32   : > { %369 = vst [vmem:[#allocation2 + $0x30] sm:$0xff] %v1513_v32  ;;  %370 = vst [vmem:[#allocation2] sm:$0xff] %v1513_v32 }
  0x33   : > { %371 = vst [vmem:[#allocation2 + $0x58] sm:$0xff] %v1513_v32  ;;  %372 = vst [vmem:[#allocation2 + $0x18] sm:$0xff] %v1513_v32 }
  0x34   : > { %373 = vst [vmem:[#allocation2 + $0x50] sm:$0xff] %v1513_v32  ;;  %374 = vst [vmem:[#allocation2 + $0x68] sm:$0xff] %v1513_v32 }
  0x35   : > { %375 = vst [vmem:[#allocation2 + $0x8] sm:$0xff] %v1513_v32  ;;  %376 = vst [vmem:[#allocation2 + $0x48] sm:$0xff] %v1513_v32 }
  0x36   : > { %377 = vst [vmem:[#allocation2 + $0x40] sm:$0xff] %v1513_v32  ;;  %378 = vst [vmem:[#allocation2 + $0x20] sm:$0xff] %v1513_v32 }
  0x37   : > { %379 = vst [vmem:[#allocation2 + $0x10] sm:$0xff] %v1513_v32  ;;  %380 = vst [vmem:[#allocation2 + $0x38] sm:$0xff] %v1513_v32 }
  0x38   : > { %381 = vst [vmem:[#allocation2 + $0x60] sm:$0xff] %v1513_v32  ;;  %382 = vst [vmem:[#allocation2 + $0x70] sm:$0xff] %v1513_v32 }
  0x39   : > { %383 = vst [vmem:[#allocation2 + $0x78] sm:$0xff] %v1513_v32  ;;  %384 = vst [vmem:[#allocation2 + $0x28] sm:$0xff] %v1513_v32 }
  0x3a PF: > { %v1417_v33 = vld [vmem:[%s1652_s7 + $0x78] sm:$0xff]   ;;  %v1420_v36 = vld [vmem:[%s1652_s7 + $0x70] sm:$0xff]   ;;  %v1423_v39 = vld [vmem:[%s1652_s7 + $0x68] sm:$0xff]   ;;  %p1256_p11 = scmp.ne.s32.totalorder %s1503_s14, 2 }
  0x3b   : > { %v1418_v34 = vld [vmem:[%s1652_s7 + $0x38] sm:$0xff]   ;;  %1262 = vmatprep.subr.bf16.mxu0 %v1417_v33  ;;  %v1421_v37 = vld [vmem:[%s1652_s7 + $0x30] sm:$0xff]   ;;  %v1424_v40 = vld [vmem:[%s1652_s7 + $0x28] sm:$0xff]  }
  0x3c   : > { %v1419_v35 = vld [vmem:[%s1652_s7 + $0xb8] sm:$0xff]   ;;  %1263 = vmatpush3.bf16.msra.mxu0 %v1418_v34  ;;  %v1422_v38 = vld [vmem:[%s1652_s7 + $0xb0] sm:$0xff]   ;;  %v1425_v41 = vld [vmem:[%s1652_s7 + $0xa8] sm:$0xff]  }
  0x3d   : > { %1342 = vmatprep.subr.bf16.mxu1 %v1419_v35  ;;  %1264 = vmatprep.subr.bf16.mxu0 %v1420_v36  ;;  %v1426_v42 = vld [vmem:[%s1652_s7 + $0x60] sm:$0xff]   ;;  %v1429_v45 = vld [vmem:[%s1652_s7 + $0x58] sm:$0xff]   ;;  %v1432_v48 = vld [vmem:[%s1652_s7 + $0x50] sm:$0xff]  }
  0x3e   : > { %1343 = vmatpush3.bf16.msra.mxu1 %v1419_v35  ;;  %v1427_v43 = vld [vmem:[%s1652_s7 + $0x20] sm:$0xff]   ;;  %v1431_v46 = vld [vmem:[%s1652_s7 + $0x98] sm:$0xff]   ;;  %v1434_v49 = vld [vmem:[%s1652_s7 + $0x90] sm:$0xff]  }
  0x3f   : > { %1344 = vmatprep.subr.bf16.mxu1 %v1422_v38  ;;  %v1428_v44 = vld [vmem:[%s1652_s7 + $0xa0] sm:$0xff]   ;;  %v1430_v47 = vld [vmem:[%s1652_s7 + $0x18] sm:$0xff]   ;;  %v1433_v50 = vld [vmem:[%s1652_s7 + $0x10] sm:$0xff]  }
  0x40   : > { %1265 = vmatpush3.bf16.msra.mxu0 %v1421_v37  ;;  %v1435_v51 = vld [vmem:[%s1652_s7 + $0x48] sm:$0xff]   ;;  %v1438_v54 = vld [vmem:[%s1652_s7 + $0x40] sm:$0xff]   ;;  %v1453_v1 = vld [vmem:[%s1654_s8 + $0x50] ss:$12 sps:$4 sm:$0xff]  }
  0x41   : > { %1266 = vmatprep.subr.bf16.mxu0 %v1423_v39  ;;  %v1436_v52 = vld [vmem:[%s1652_s7 + $0x8] sm:$0xff]   ;;  %v1440_v55 = vld [vmem:[%s1652_s7 + $0x80] sm:$0xff]   ;;  %v1451_v3 = vld [vmem:[%s1654_s8 + $0x30] ss:$12 sps:$4 sm:$0xff]  }
  0x42   : > { %1345 = vmatpush3.bf16.msra.mxu1 %v1422_v38  ;;  %v1437_v53 = vld [vmem:[%s1652_s7 + $0x88] sm:$0xff]   ;;  %v1443_v56 = vld [vmem:[%s1654_s8 + $0x4] ss:$12 sps:$4 sm:$0xff]   ;;  %v1449_v0 = vld [vmem:[%s1654_s8 + $0x34] ss:$12 sps:$4 sm:$0xff]  }
  0x43   : > { %1346 = vmatprep.subr.bf16.mxu1 %v1425_v41  ;;  %v1444_v57 = vld [vmem:[%s1654_s8 + $0x8] ss:$12 sps:$4 sm:$0xff]   ;;  %v1439_v58 = vld [vmem:[%s1652_s7] sm:$0xff]   ;;  %785 = vmatprep.mubr.bf16.mxu0 %v1443_v56  ;;  %v1454_v4 = vld [vmem:[%s1654_s8 + $0x4c] ss:$12 sps:$4 sm:$0xff]  }
  0x44   : > { %1267 = vmatpush3.bf16.msra.mxu0 %v1424_v40  ;;  %1358 = vmatprep.mubr.bf16.mxu1 %v1444_v57  ;;  %v1441_v59 = vld [vmem:[%s1654_s8] ss:$12 sps:$4 sm:$0xff]   ;;  %v1446_v60 = vld [vmem:[%s1654_s8 + $0x1c] ss:$12 sps:$4 sm:$0xff]   ;;  %v1452_v62 = vld [vmem:[%s1654_s8 + $0x38] ss:$12 sps:$4 sm:$0xff]  }
  0x45   : > { %1268 = vmatprep.subr.bf16.mxu0 %v1426_v42  ;;  %v1445_v61 = vld [vmem:[%s1654_s8 + $0x20] ss:$12 sps:$4 sm:$0xff]   ;;  %v1448_v63 = vld [vmem:[%s1654_s8 + $0x18] ss:$12 sps:$4 sm:$0xff]   ;;  %v1460_v2 = vld [vmem:[%s1654_s8 + $0x68] ss:$12 sps:$4 sm:$0xff]  }
  0x46   : > { %1347 = vmatpush3.bf16.msra.mxu1 %v1425_v41  ;;  %v1461_v5 = vld [vmem:[%s1654_s8 + $0x80] ss:$12 sps:$4 sm:$0xff]   ;;  %v1468_v6 = vld [vmem:[%s1654_s8 + $0x98] ss:$12 sps:$4 sm:$0xff]   ;;  %v1456_v7 = vld [vmem:[%s1654_s8 + $0x48] ss:$12 sps:$4 sm:$0xff]  }
  0x47   : > { %1348 = vmatprep.subr.bf16.mxu1 %v1428_v44  ;;  %v1457_v8 = vld [vmem:[%s1654_s8 + $0x64] ss:$12 sps:$4 sm:$0xff]   ;;  %v1459_v10 = vld [vmem:[%s1654_s8 + $0x60] ss:$12 sps:$4 sm:$0xff]   ;;  %v1462_v11 = vld [vmem:[%s1654_s8 + $0x7c] ss:$12 sps:$4 sm:$0xff]  }
  0x48   : > { %1269 = vmatpush3.bf16.msra.mxu0 %v1427_v43  ;;  %v1469_v9 = vld [vmem:[%s1654_s8 + $0xb0] ss:$12 sps:$4 sm:$0xff]   ;;  %v1464_v12 = vld [vmem:[%s1654_s8 + $0x78] ss:$12 sps:$4 sm:$0xff]   ;;  %v1465_v13 = vld [vmem:[%s1654_s8 + $0x94] ss:$12 sps:$4 sm:$0xff]  }
  0x49   : > { %1270 = vmatprep.subr.bf16.mxu0 %v1429_v45  ;;  %v1467_v14 = vld [vmem:[%s1654_s8 + $0x90] ss:$12 sps:$4 sm:$0xff]   ;;  %v1470_v15 = vld [vmem:[%s1654_s8 + $0xac] ss:$12 sps:$4 sm:$0xff]   ;;  %v1472_v16 = vld [vmem:[%s1654_s8 + $0xa8] ss:$12 sps:$4 sm:$0xff]  }
  0x4a   : > { %1349 = vmatpush3.bf16.msra.mxu1 %v1428_v44  ;;  %v385_v22 = vld [vmem:[#allocation2 + $0x30] sm:$0xff]  ;;  %v386_v30 = vld [vmem:[#allocation2] sm:$0xff]  ;;  %v387_v37 = vld [vmem:[#allocation2 + $0x58] sm:$0xff] }
  0x4b   : > { %1350 = vmatprep.subr.bf16.mxu1 %v1431_v46  ;;  %v388_v44 = vld [vmem:[#allocation2 + $0x18] sm:$0xff] }
  0x4c   : > { %1271 = vmatpush3.bf16.msra.mxu0 %v1430_v47 }
  0x4d   : > { %1272 = vmatprep.subr.bf16.mxu0 %v1432_v48 }
  0x4e   : > { %1351 = vmatpush3.bf16.msra.mxu1 %v1431_v46 }
  0x4f   : > { %1352 = vmatprep.subr.bf16.mxu1 %v1434_v49 }
  0x50   : > { %1273 = vmatpush3.bf16.msra.mxu0 %v1433_v50 }
  0x51   : > { %1274 = vmatprep.subr.bf16.mxu0 %v1435_v51 }
  0x52   : > { %1353 = vmatpush3.bf16.msra.mxu1 %v1434_v49 }
  0x53   : > { %1354 = vmatprep.subr.bf16.mxu1 %v1437_v53 }
  0x54   : > { %1275 = vmatpush3.bf16.msra.mxu0 %v1436_v52  ;;  %v389_v52 = vld [vmem:[#allocation2 + $0x50] sm:$0xff] }
  0x55   : > { %1276 = vmatprep.subr.bf16.mxu0 %v1438_v54 }
  0x56   : > { %1355 = vmatpush3.bf16.msra.mxu1 %v1437_v53 }
  0x57   : > { %1356 = vmatprep.subr.bf16.mxu1 %v1440_v55 }
  0x58   : > { %1277 = vmatpush3.bf16.msra.mxu0 %v1439_v58 }
  0x5a   : > { %1357 = vmatpush3.bf16.msra.mxu1 %v1440_v55 }
  0x5b   : > { %786 = vmatmul.mubr.bf16.vlgmr.msra.gmra.mxu0 %v1441_v59  ;;  %v390_v59 = vld [vmem:[#allocation2 + $0x68] sm:$0xff] }
  0x5c   : > { %793 = vmatprep.mubr.bf16.mxu0 %v1446_v60 }
  0x5d   : > { %1359 = vmatmul.mubr.bf16.vlgmr.msra.gmra.mxu1 %v1445_v61 }
  0x5e   : > { %1362 = vmatprep.mubr.bf16.mxu1 %v1452_v62 }
  0x63   : > { %794 = vmatmul.mubr.bf16.gmra.mxu0 %v1448_v63 }
  0x64   : > { %801 = vmatprep.mubr.bf16.mxu0 %v1449_v0 }
  0x65   : > { %1363 = vmatmul.mubr.bf16.gmra.mxu1 %v1453_v1  ;;  %v391_v1 = vld [vmem:[#allocation2 + $0x8] sm:$0xff] }
  0x66   : > { %1366 = vmatprep.mubr.bf16.mxu1 %v1460_v2 }
  0x6b   : > { %802 = vmatmul.mubr.bf16.gmra.mxu0 %v1451_v3 }
  0x6c   : > { %809 = vmatprep.mubr.bf16.mxu0 %v1454_v4 }
  0x6d   : > { %1367 = vmatmul.mubr.bf16.gmra.mxu1 %v1461_v5 }
  0x6e   : > { %1370 = vmatprep.mubr.bf16.mxu1 %v1468_v6 }
  0x73   : > { %810 = vmatmul.mubr.bf16.gmra.mxu0 %v1456_v7 }
  0x74   : > { %817 = vmatprep.mubr.bf16.mxu0 %v1457_v8  ;;  %v392_v8 = vld [vmem:[#allocation2 + $0x48] sm:$0xff] }
  0x75   : > { %1371 = vmatmul.mubr.bf16.gmra.mxu1 %v1469_v9 }
  0x7b   : > { %818 = vmatmul.mubr.bf16.gmra.mxu0 %v1459_v10 }
  0x7c   : > { %825 = vmatprep.mubr.bf16.mxu0 %v1462_v11 }
  0x83   : > { %826 = vmatmul.mubr.bf16.gmra.mxu0 %v1464_v12 }
  0x84   : > { %833 = vmatprep.mubr.bf16.mxu0 %v1465_v13 }
  0x8b   : > { %834 = vmatmul.mubr.bf16.gmra.mxu0 %v1467_v14 }
  0x8c   : > { %841 = vmatprep.mubr.bf16.mxu0 %v1470_v15 }
  0x93   : > { %842 = vmatmul.mubr.bf16.gmra.mxu0 %v1472_v16  ;;  %v393_v16 = vld [vmem:[#allocation2 + $0x40] sm:$0xff] }
 0x11b   : > { %v1278_v17 = vpop.f32.mrf.mxu0 }
 0x11d   : > { %v1279_v18 = vpop.f32.mrf.mxu0  ;;  %v1360_v19 = vpop.f32.mrf.mxu1 }
 0x11e   : > { %v1280_v20 = vadd.f32 %v1279_v18, %v1278_v17 }
 0x11f   : > { %v1281_v21 = vpop.f32.mrf.mxu0  ;;  %v884_v23 = vpop.f32.mrf.mxu1 }
 0x120   : > { %v885_v24 = vadd.f32 %v1280_v20, %v884_v23  ;;  %v394_v23 = vld [vmem:[#allocation2 + $0x20] sm:$0xff] }
 0x121   : > { %v1282_v25 = vpop.f32.mrf.mxu0  ;;  %v1361_v26 = vpop.f32.mrf.mxu1 }
 0x122   : > { %v947_v27 = vadd.f32 %v885_v24, %v385_v22  ;;  %v1283_v28 = vadd.f32 %v1282_v25, %v1281_v21 }
 0x123   : > { %v1284_v29 = vpop.f32.mrf.mxu0  ;;  %v887_v31 = vpop.f32.mrf.mxu1 }
 0x124   : > { %963 = vst [vmem:[#allocation2 + $0x30] sm:$0xff] %v947_v27  ;;  %v888_v32 = vadd.f32 %v1283_v28, %v887_v31 }
 0x125   : > { %v1285_v33 = vpop.f32.mrf.mxu0  ;;  %v1364_v34 = vpop.f32.mrf.mxu1 }
 0x126   : > { %v948_v35 = vadd.f32 %v888_v32, %v386_v30  ;;  %v1286_v36 = vadd.f32 %v1285_v33, %v1284_v29  ;;  %v395_v29 = vld [vmem:[#allocation2 + $0x10] sm:$0xff] }
 0x127   : > { %v1287_v38 = vpop.f32.mrf.mxu0  ;;  %v900_v41 = vpop.f32.mrf.mxu1 }
 0x128   : > { %964 = vst [vmem:[#allocation2] sm:$0xff] %v948_v35  ;;  %v893_v39 = vadd.f32 %v1360_v19, %v1286_v36  ;;  %v396_v36 = vld [vmem:[#allocation2 + $0x38] sm:$0xff] }
 0x129   : > { %v1288_v40 = vpop.f32.mrf.mxu0  ;;  %v1365_v48 = vpop.f32.mrf.mxu1 }
 0x12a   : > { %v949_v42 = vadd.f32 %v893_v39, %v387_v37  ;;  %v1289_v43 = vadd.f32 %v1288_v40, %v1287_v38 }
 0x12b   : > { %v1290_v45 = vpop.f32.mrf.mxu0  ;;  %v903_v55 = vpop.f32.mrf.mxu1 }
 0x12c   : > { %965 = vst [vmem:[#allocation2 + $0x58] sm:$0xff] %v949_v42  ;;  %v896_v46 = vadd.f32 %v1361_v26, %v1289_v43 }
 0x12d   : > { %v1291_v47 = vpop.f32.mrf.mxu0  ;;  %v1368_v62 = vpop.f32.mrf.mxu1 }
 0x12e   : > { %v950_v49 = vadd.f32 %v896_v46, %v388_v44  ;;  %v1292_v50 = vadd.f32 %v1291_v47, %v1290_v45  ;;  %v397_v44 = vld [vmem:[#allocation2 + $0x60] sm:$0xff] }
 0x12f   : > { %v1293_v51 = vpop.f32.mrf.mxu0  ;;  %v916_v5 = vpop.f32.mrf.mxu1 }
 0x130   : > { %966 = vst [vmem:[#allocation2 + $0x18] sm:$0xff] %v950_v49  ;;  %v901_v53 = vadd.f32 %v1292_v50, %v900_v41 }
 0x131   : > { %v1294_v54 = vpop.f32.mrf.mxu0  ;;  %v1369_v12 = vpop.f32.mrf.mxu1 }
 0x132   : > { %v951_v56 = vadd.f32 %v901_v53, %v389_v52  ;;  %v1295_v57 = vadd.f32 %v1294_v54, %v1293_v51  ;;  %v398_v51 = vld [vmem:[#allocation2 + $0x70] sm:$0xff] }
 0x133   : > { %v1296_v58 = vpop.f32.mrf.mxu0  ;;  %v919_v19 = vpop.f32.mrf.mxu1 }
 0x134   : > { %967 = vst [vmem:[#allocation2 + $0x50] sm:$0xff] %v951_v56  ;;  %v904_v60 = vadd.f32 %v1295_v57, %v903_v55  ;;  %v399_v56 = vld [vmem:[#allocation2 + $0x78] sm:$0xff] }
 0x135   : > { %v1297_v61 = vpop.f32.mrf.mxu0  ;;  %v1372_v26 = vpop.f32.mrf.mxu1 }
 0x136   : > { %v952_v63 = vadd.f32 %v904_v60, %v390_v59  ;;  %v1298_v0 = vadd.f32 %v1297_v61, %v1296_v58 }
 0x137   : > { %v1299_v2 = vpop.f32.mrf.mxu0  ;;  %v932_v33 = vpop.f32.mrf.mxu1 }
 0x138   : > { %968 = vst [vmem:[#allocation2 + $0x68] sm:$0xff] %v952_v63  ;;  %v909_v3 = vadd.f32 %v1364_v34, %v1298_v0 }
 0x139   : > { %v1300_v4 = vpop.f32.mrf.mxu0  ;;  %v1373_v40 = vpop.f32.mrf.mxu1 }
 0x13a   : > { %v953_v6 = vadd.f32 %v909_v3, %v391_v1  ;;  %v1301_v7 = vadd.f32 %v1300_v4, %v1299_v2 }
 0x13b   : > { %v1302_v9 = vpop.f32.mrf.mxu0  ;;  %v935_v47 = vpop.f32.mrf.mxu1 }
 0x13c   : > { %969 = vst [vmem:[#allocation2 + $0x8] sm:$0xff] %v953_v6  ;;  %v912_v10 = vadd.f32 %v1365_v48, %v1301_v7 }
 0x13d   : > { %v1303_v11 = vpop.f32.mrf.mxu0 }
 0x13e   : > { %v954_v13 = vadd.f32 %v912_v10, %v392_v8  ;;  %v1304_v14 = vadd.f32 %v1303_v11, %v1302_v9 }
 0x13f   : > { %v1305_v15 = vpop.f32.mrf.mxu0 }
 0x140   : > { %970 = vst [vmem:[#allocation2 + $0x48] sm:$0xff] %v954_v13  ;;  %v917_v17 = vadd.f32 %v1304_v14, %v916_v5 }
 0x141   : > { %v1306_v18 = vpop.f32.mrf.mxu0 }
 0x142   : > { %v955_v20 = vadd.f32 %v917_v17, %v393_v16  ;;  %v1307_v21 = vadd.f32 %v1306_v18, %v1305_v15 }
 0x143   : > { %v1308_v22 = vpop.f32.mrf.mxu0 }
 0x144   : > { %971 = vst [vmem:[#allocation2 + $0x40] sm:$0xff] %v955_v20  ;;  %v920_v24 = vadd.f32 %v1307_v21, %v919_v19 }
 0x145   : > { %v1309_v25 = vpop.f32.mrf.mxu0 }
 0x146   : > { %v956_v27 = vadd.f32 %v920_v24, %v394_v23  ;;  %v1310_v28 = vadd.f32 %v1309_v25, %v1308_v22 }
 0x147   : > { %v1311_v30 = vpop.f32.mrf.mxu0 }
 0x148   : > { %972 = vst [vmem:[#allocation2 + $0x20] sm:$0xff] %v956_v27  ;;  %v925_v31 = vadd.f32 %v1368_v62, %v1310_v28  ;;  %v400_v62 = vld [vmem:[#allocation2 + $0x28] sm:$0xff] }
 0x149   : > { %v1312_v32 = vpop.f32.mrf.mxu0 }
 0x14a   : > { %v957_v34 = vadd.f32 %v925_v31, %v395_v29  ;;  %v1313_v35 = vadd.f32 %v1312_v32, %v1311_v30 }
 0x14b   : > { %v1314_v37 = vpop.f32.mrf.mxu0 }
 0x14c   : > { %973 = vst [vmem:[#allocation2 + $0x10] sm:$0xff] %v957_v34  ;;  %v928_v38 = vadd.f32 %v1369_v12, %v1313_v35 }
 0x14d   : > { %v1315_v39 = vpop.f32.mrf.mxu0 }
 0x14e   : > { %v958_v41 = vadd.f32 %v928_v38, %v396_v36  ;;  %v1316_v42 = vadd.f32 %v1315_v39, %v1314_v37 }
 0x14f   : > { %v1317_v43 = vpop.f32.mrf.mxu0 }
 0x150   : > { %974 = vst [vmem:[#allocation2 + $0x38] sm:$0xff] %v958_v41  ;;  %v933_v45 = vadd.f32 %v1316_v42, %v932_v33 }
 0x151   : > { %v1318_v46 = vpop.f32.mrf.mxu0 }
 0x152   : > { %v959_v48 = vadd.f32 %v933_v45, %v397_v44  ;;  %v1319_v49 = vadd.f32 %v1318_v46, %v1317_v43 }
 0x153   : > { %v1320_v50 = vpop.f32.mrf.mxu0 }
 0x154   : > { %975 = vst [vmem:[#allocation2 + $0x60] sm:$0xff] %v959_v48  ;;  %v936_v52 = vadd.f32 %v1319_v49, %v935_v47 }
 0x155   : > { %v1321_v53 = vpop.f32.mrf.mxu0 }
 0x156   : > { %v960_v54 = vadd.f32 %v936_v52, %v398_v51  ;;  %v1322_v55 = vadd.f32 %v1321_v53, %v1320_v50 }
 0x157   : > { %v1323_v57 = vpop.f32.mrf.mxu0 }
 0x158   : > { %976 = vst [vmem:[#allocation2 + $0x70] sm:$0xff] %v960_v54  ;;  %v941_v58 = vadd.f32 %v1372_v26, %v1322_v55 }
 0x159   : > { %v1324_v59 = vpop.f32.mrf.mxu0 }
 0x15a   : > { %v961_v60 = vadd.f32 %v941_v58, %v399_v56  ;;  %v1325_v61 = vadd.f32 %v1324_v59, %v1323_v57 }
 0x15c   : > { %977 = vst [vmem:[#allocation2 + $0x78] sm:$0xff] %v961_v60  ;;  %v944_v63 = vadd.f32 %v1373_v40, %v1325_v61  ;;  %982 = sbr.rel (%p1256_p11) target bundleno = 368 (0x170), region = 66 }
 0x15e   : > { %v962_v0 = vadd.f32 %v944_v63, %v400_v62 }
 0x160   : > { %978 = vst [vmem:[#allocation2 + $0x28] sm:$0xff] %v962_v0 }
 0x161   : > { %v983_v1 = vld [vmem:[#allocation2 + $0x30] sm:$0xff]  ;;  %v999_v2 = vld [vmem:[%s1819_s2] sm:$0xff]  ;;  %v1000_v5 = vld [vmem:[%s1819_s2 + $0x8] sm:$0xff] }
 0x162   : > { %v984_v3 = vld [vmem:[#allocation2] sm:$0xff]  ;;  %v1015_v4 = vadd.f32 %v999_v2, %v983_v1  ;;  %v985_v6 = vld [vmem:[#allocation2 + $0x58] sm:$0xff]  ;;  %v1001_v7 = vld [vmem:[%s1819_s2 + $0x10] sm:$0xff] }
 0x163   : > { %v1016_v8 = vadd.f32 %v1000_v5, %v984_v3  ;;  %v1017_v9 = vadd.f32 %v1001_v7, %v985_v6  ;;  %v986_v10 = vld [vmem:[#allocation2 + $0x18] sm:$0xff]  ;;  %v987_v12 = vld [vmem:[#allocation2 + $0x50] sm:$0xff]  ;;  %v1003_v14 = vld [vmem:[%s1819_s2 + $0x20] sm:$0xff] }
 0x164   : > { %v1002_v11 = vld [vmem:[%s1819_s2 + $0x18] sm:$0xff]  ;;  %1031 = vst [vmem:[%s1820_s3] sm:$0xff] %v1015_v4  ;;  %v988_v15 = vld [vmem:[#allocation2 + $0x68] sm:$0xff]  ;;  %v1019_v17 = vadd.f32 %v1003_v14, %v987_v12  ;;  %v1005_v20 = vld [vmem:[%s1819_s2 + $0x30] sm:$0xff] }
 0x165   : > { %v1018_v13 = vadd.f32 %v1002_v11, %v986_v10  ;;  %v1004_v16 = vld [vmem:[%s1819_s2 + $0x28] sm:$0xff]  ;;  %1032 = vst [vmem:[%s1820_s3 + $0x8] sm:$0xff] %v1016_v8  ;;  %1033 = vst [vmem:[%s1820_s3 + $0x10] sm:$0xff] %v1017_v9  ;;  %v1006_v23 = vld [vmem:[%s1819_s2 + $0x38] sm:$0xff] }
 0x166   : > { %v1020_v18 = vadd.f32 %v1004_v16, %v988_v15  ;;  %v989_v19 = vld [vmem:[#allocation2 + $0x8] sm:$0xff]  ;;  %v991_v24 = vld [vmem:[#allocation2 + $0x40] sm:$0xff]  ;;  %1035 = vst [vmem:[%s1820_s3 + $0x20] sm:$0xff] %v1019_v17  ;;  %v993_v30 = vld [vmem:[#allocation2 + $0x10] sm:$0xff] }
 0x167   : > { %v990_v21 = vld [vmem:[#allocation2 + $0x48] sm:$0xff]  ;;  %1034 = vst [vmem:[%s1820_s3 + $0x18] sm:$0xff] %v1018_v13  ;;  %v1021_v22 = vadd.f32 %v1005_v20, %v989_v19  ;;  %v1007_v25 = vld [vmem:[%s1819_s2 + $0x40] sm:$0xff]  ;;  %v1009_v32 = vld [vmem:[%s1819_s2 + $0x50] sm:$0xff] }
 0x168   : > { %1036 = vst [vmem:[%s1820_s3 + $0x28] sm:$0xff] %v1020_v18  ;;  %v1022_v26 = vadd.f32 %v1006_v23, %v990_v21  ;;  %v1023_v27 = vadd.f32 %v1007_v25, %v991_v24  ;;  %v992_v28 = vld [vmem:[#allocation2 + $0x20] sm:$0xff]  ;;  %v1008_v29 = vld [vmem:[%s1819_s2 + $0x48] sm:$0xff]  ;;  %v994_v33 = vld [vmem:[#allocation2 + $0x38] sm:$0xff]  ;;  %v1025_v35 = vadd.f32 %v1009_v32, %v993_v30 }
 0x169   : > { %1037 = vst [vmem:[%s1820_s3 + $0x30] sm:$0xff] %v1021_v22  ;;  %v1024_v31 = vadd.f32 %v1008_v29, %v992_v28  ;;  %v1010_v34 = vld [vmem:[%s1819_s2 + $0x58] sm:$0xff]  ;;  %v995_v37 = vld [vmem:[#allocation2 + $0x60] sm:$0xff]  ;;  %v996_v39 = vld [vmem:[#allocation2 + $0x70] sm:$0xff] }
 0x16a   : > { %1038 = vst [vmem:[%s1820_s3 + $0x38] sm:$0xff] %v1022_v26  ;;  %1039 = vst [vmem:[%s1820_s3 + $0x40] sm:$0xff] %v1023_v27  ;;  %v1026_v36 = vadd.f32 %v1010_v34, %v994_v33  ;;  %v1011_v38 = vld [vmem:[%s1819_s2 + $0x60] sm:$0xff]  ;;  %v1012_v41 = vld [vmem:[%s1819_s2 + $0x68] sm:$0xff] }
 0x16b   : > { %1040 = vst [vmem:[%s1820_s3 + $0x48] sm:$0xff] %v1024_v31  ;;  %v1027_v40 = vadd.f32 %v1011_v38, %v995_v37  ;;  %v997_v42 = vld [vmem:[#allocation2 + $0x78] sm:$0xff]  ;;  %v1013_v43 = vld [vmem:[%s1819_s2 + $0x70] sm:$0xff]  ;;  %1041 = vst [vmem:[%s1820_s3 + $0x50] sm:$0xff] %v1025_v35  ;;  %v1028_v44 = vadd.f32 %v1012_v41, %v996_v39 }
 0x16c   : > { %1042 = vst [vmem:[%s1820_s3 + $0x58] sm:$0xff] %v1026_v36  ;;  %v1029_v45 = vadd.f32 %v1013_v43, %v997_v42  ;;  %v998_v46 = vld [vmem:[#allocation2 + $0x28] sm:$0xff]  ;;  %v1014_v47 = vld [vmem:[%s1819_s2 + $0x78] sm:$0xff] }
 0x16d   : > { %1043 = vst [vmem:[%s1820_s3 + $0x60] sm:$0xff] %v1027_v40  ;;  %v1030_v48 = vadd.f32 %v1014_v47, %v998_v46  ;;  %1044 = vst [vmem:[%s1820_s3 + $0x68] sm:$0xff] %v1028_v44 }
 0x16e   : > { %1045 = vst [vmem:[%s1820_s3 + $0x70] sm:$0xff] %v1029_v45 }
 0x16f   : > { %1046 = vst [vmem:[%s1820_s3 + $0x78] sm:$0xff] %v1030_v48 }
 0x170 PF: > { %s13_s16 = sadd.s32 1, %s1511_s16   ;;  %s1821_s12 = smov %s1499_s13 }
 0x171   : > { %p10_p12 = scmp.ge.s32.totalorder %s13_s16, 5   ;;  %s1822_s13 = smov %s1569_s20 }
 0x172   : > { %s1823_s14 = smov %s1507_s15  ;;  %s1824_s15 = smov %s1826_s17 }
 0x173   :  { %12 = sbr.rel (!%p10_p12) target bundleno = 3 (0x3), region = 113 }

// kernel: _lambda_.8
= control target key start
LH: loop header
LB: loop body
LE: loop exit
PB: predicated region body
PF: predicated region fallthrough
CT: control target
= control target key end

     0   :  { %s1856_s15 = smov 0   ;;  %s1858_s16 = smov 0   ;;  %s2142_s0 = inlined_call_operand.vmem [shape: bf16[128,1152], index: 0, kind: input, shape index: {}]   ;;  %s2143_s1 = inlined_call_operand.vmem [shape: bf16[1152,128], index: 1, kind: input, shape index: {}]   ;;  %s2144_s2 = inlined_call_operand.vmem [shape: bf16[128,128], index: 2, kind: input, shape index: {}]   ;;  %s2145_s3 = inlined_call_operand.vmem [shape: bf16[128,128], index: 3, kind: input, shape index: {}]   ;;  %s2146_s4 = inlined_call_operand.vmem [shape: f32[128,128], index: 4, kind: output, shape index: {}]  }
   0x1   :  { %s1860_s17 = smov 0   ;;  %s1862_s18 = smov 0  }
   0x2   :  { %s1864_s19 = smov 0  }
   0x3 LB: > { %s26_s20 = sadd.s32 1, %s1825_s18  ;;  %p49_p1 = scmp.ne.s32.totalorder %s1817_s16, %s1813_s15  ;;  %s1829_s19 = sphi %s1864_s19, %s14_s19   ;;  %s1825_s18 = sphi %s1862_s18, %s2150_s18   ;;  %s1821_s17 = sphi %s1860_s17, %s2149_s17   ;;  %s1817_s16 = sphi %s1858_s16, %s2148_s16   ;;  %s1813_s15 = sphi %s1856_s15, %s2147_s15  }
   0x4   : > { %p27_p0 = scmp.ge.s32.totalorder %s26_s20, 3  ;;  %p50_p2 = scmp.eq.s32.totalorder %s1829_s19, 0 }
   0x5   : > { %s42_s22 = sadd.s32 1, %s1817_s16  ;;  %p1410_p5 = scmp.ge.s32.totalorder %s1829_s19, 3 }
   0x6   : > { %s2152_s20 = smov (%p27_p0, %s26_s20), 0  ;;  %p51_p3 = por %p50_p2, %p49_p1 }
   0x7   : > { %s38_s21 = ssub.s32 %s1825_s18, %s2152_s20  ;;  %199 = sbr.rel (%p1410_p5) target bundleno = 35 (0x23), region = 24 }
   0x8   : > { %p40_p4 = scmp.eq.s32.totalorder %s38_s21, 0 }
   0xa   : > { %s1891_s23 = scalar_select %p40_p4, %s1817_s16, %s42_s22  }
   0xc   : > { %202 = sbr.rel (!%p51_p3) target bundleno = 35 (0x23), region = 28  ;;  %s204_s24 = sand.u32 (%p51_p3), 1, %s1817_s16  }
   0xd   : > { %s1516_s25 = smul.u32 (%p51_p3), 12, %s1825_s18 }
   0xe   : > { %s1677_s26 = smul.u32 (%p51_p3), 192, %s204_s24 }
   0xf   : > { %s1899_s29 = scalar_lea.vmem (%p51_p3), %s2142_s0, %s1516_s25 }
  0x10   : > { %v227_v0 = vld [vmem:[%s1899_s29] sm:$0xff] (%p51_p3)  ;;  %v231_v2 = vld [vmem:[%s1899_s29 + $0x48] sm:$0xff] (%p51_p3)  ;;  %s1904_s30 = scalar_lea.vmem (%p51_p3), [#allocation3], %s1677_s26  ;;  %v235_v4 = vld [vmem:[%s1899_s29 + $0x90] sm:$0xff] (%p51_p3) }
  0x11   : > { %v229_v1 = vld [vmem:[%s1899_s29 + $0x24] sm:$0xff]  ;;  %228 = vst [vmem:[%s1904_s30] sm:$0xff] %v227_v0  ;;  %232 = vst [vmem:[%s1904_s30 + $0x18] sm:$0xff] %v231_v2  ;;  %v233_v3 = vld [vmem:[%s1899_s29 + $0x6c] sm:$0xff] }
  0x12   : > { %230 = vst [vmem:[%s1904_s30 + $0xc] sm:$0xff] %v229_v1  ;;  %v237_v5 = vld [vmem:[%s1899_s29 + $0xb4] sm:$0xff]  ;;  %234 = vst [vmem:[%s1904_s30 + $0x24] sm:$0xff] %v233_v3  ;;  %v241_v7 = vld [vmem:[%s1899_s29 + $0xfc] sm:$0xff] }
  0x13   : > { %236 = vst [vmem:[%s1904_s30 + $0x30] sm:$0xff] %v235_v4  ;;  %238 = vst [vmem:[%s1904_s30 + $0x3c] sm:$0xff] %v237_v5  ;;  %v239_v6 = vld [vmem:[%s1899_s29 + $0xd8] sm:$0xff]  ;;  %v243_v8 = vld [vmem:[%s1899_s29 + $0x120] sm:$0xff] }
  0x14   : > { %240 = vst [vmem:[%s1904_s30 + $0x48] sm:$0xff] %v239_v6  ;;  %242 = vst [vmem:[%s1904_s30 + $0x54] sm:$0xff] %v241_v7  ;;  %v245_v9 = vld [vmem:[%s1899_s29 + $0x144] sm:$0xff]  ;;  %v249_v11 = vld [vmem:[%s1899_s29 + $0x18c] sm:$0xff] }
  0x15   : > { %244 = vst [vmem:[%s1904_s30 + $0x60] sm:$0xff] %v243_v8  ;;  %v247_v10 = vld [vmem:[%s1899_s29 + $0x168] sm:$0xff]  ;;  %246 = vst [vmem:[%s1904_s30 + $0x6c] sm:$0xff] %v245_v9  ;;  %v251_v12 = vld [vmem:[%s1899_s29 + $0x1b0] sm:$0xff] }
  0x16   : > { %248 = vst [vmem:[%s1904_s30 + $0x78] sm:$0xff] %v247_v10  ;;  %250 = vst [vmem:[%s1904_s30 + $0x84] sm:$0xff] %v249_v11  ;;  %v253_v13 = vld [vmem:[%s1899_s29 + $0x1d4] sm:$0xff]  ;;  %v257_v15 = vld [vmem:[%s1899_s29 + $0x21c] sm:$0xff] }
  0x17   : > { %v255_v14 = vld [vmem:[%s1899_s29 + $0x1f8] sm:$0xff]  ;;  %252 = vst [vmem:[%s1904_s30 + $0x90] sm:$0xff] %v251_v12  ;;  %254 = vst [vmem:[%s1904_s30 + $0x9c] sm:$0xff] %v253_v13  ;;  %v1412_v16 = vld [vmem:[%s1899_s29 + $0x8] sm:$0xf] }
  0x18   : > { %256 = vst [vmem:[%s1904_s30 + $0xa8] sm:$0xff] %v255_v14  ;;  %v1414_v17 = vld [vmem:[%s1899_s29 + $0x2c] sm:$0xf]  ;;  %258 = vst [vmem:[%s1904_s30 + $0xb4] sm:$0xff] %v257_v15  ;;  %v1416_v18 = vld [vmem:[%s1899_s29 + $0x50] sm:$0xf] }
  0x19   : > { %1413 = vst [vmem:[%s1904_s30 + $0x8] sm:$0xf] %v1412_v16  ;;  %1415 = vst [vmem:[%s1904_s30 + $0x14] sm:$0xf] %v1414_v17  ;;  %v1418_v19 = vld [vmem:[%s1899_s29 + $0x74] sm:$0xf] }
  0x1a   : > { %v1420_v20 = vld [vmem:[%s1899_s29 + $0x98] sm:$0xf]  ;;  %1417 = vst [vmem:[%s1904_s30 + $0x20] sm:$0xf] %v1416_v18  ;;  %1419 = vst [vmem:[%s1904_s30 + $0x2c] sm:$0xf] %v1418_v19 }
  0x1b   : > { %1421 = vst [vmem:[%s1904_s30 + $0x38] sm:$0xf] %v1420_v20  ;;  %v1422_v21 = vld [vmem:[%s1899_s29 + $0xbc] sm:$0xf]  ;;  %v1424_v22 = vld [vmem:[%s1899_s29 + $0xe0] sm:$0xf] }
  0x1c   : > { %v1426_v23 = vld [vmem:[%s1899_s29 + $0x104] sm:$0xf]  ;;  %1423 = vst [vmem:[%s1904_s30 + $0x44] sm:$0xf] %v1422_v21  ;;  %1425 = vst [vmem:[%s1904_s30 + $0x50] sm:$0xf] %v1424_v22 }
  0x1d   : > { %1427 = vst [vmem:[%s1904_s30 + $0x5c] sm:$0xf] %v1426_v23  ;;  %v1428_v24 = vld [vmem:[%s1899_s29 + $0x128] sm:$0xf]  ;;  %v1430_v25 = vld [vmem:[%s1899_s29 + $0x14c] sm:$0xf] }
  0x1e   : > { %v1432_v26 = vld [vmem:[%s1899_s29 + $0x170] sm:$0xf]  ;;  %1429 = vst [vmem:[%s1904_s30 + $0x68] sm:$0xf] %v1428_v24  ;;  %1431 = vst [vmem:[%s1904_s30 + $0x74] sm:$0xf] %v1430_v25 }
  0x1f   : > { %1433 = vst [vmem:[%s1904_s30 + $0x80] sm:$0xf] %v1432_v26  ;;  %v1434_v27 = vld [vmem:[%s1899_s29 + $0x194] sm:$0xf]  ;;  %v1436_v28 = vld [vmem:[%s1899_s29 + $0x1b8] sm:$0xf] }
  0x20   : > { %v1438_v29 = vld [vmem:[%s1899_s29 + $0x1dc] sm:$0xf]  ;;  %1435 = vst [vmem:[%s1904_s30 + $0x8c] sm:$0xf] %v1434_v27  ;;  %1437 = vst [vmem:[%s1904_s30 + $0x98] sm:$0xf] %v1436_v28 }
  0x21   : > { %1439 = vst [vmem:[%s1904_s30 + $0xa4] sm:$0xf] %v1438_v29  ;;  %v1440_v30 = vld [vmem:[%s1899_s29 + $0x200] sm:$0xf]  ;;  %v1442_v31 = vld [vmem:[%s1899_s29 + $0x224] sm:$0xf] }
  0x22   : > { %1441 = vst [vmem:[%s1904_s30 + $0xb0] sm:$0xf] %v1440_v30  ;;  %1443 = vst [vmem:[%s1904_s30 + $0xbc] sm:$0xf] %v1442_v31 }
  0x23 PF: > { %p1444_p6 = scmp.ge.s32.totalorder %s1829_s19, 1  ;;  %p315_p7 = scmp.lt.s32.totalorder %s1829_s19, 4 }
  0x25   : > { %p316_p8 = pnand %p1444_p6, %p315_p7 }
  0x26   : > { %s322_s5 = sand.u32 (!%p316_p8), 1, %s1813_s15   ;;  %s369_s6 = smul.u32 (!%p316_p8), 48, %s1821_s17 }
  0x27   : > { %319 = sbr.rel (%p316_p8) target bundleno = 612 (0x264), region = 58  ;;  %p1462_p10 = scmp.ne.s32.totalorder (!%p316_p8), %s1821_s17, 0 }
  0x28   : > { %s1971_s7 = smul.u32 (!%p316_p8), 192, %s322_s5  ;;  %p370_p9 = scmp.lt.s32.totalorder (!%p316_p8), %s369_s6, 143 }
  0x2c   : > { %v1719_v32 = vld [vmem:[%s2145_s3 + $0x38] sm:$0xff]   ;;  %v1720_v33 = vld [vmem:[%s2145_s3 + $0x30] sm:$0xff]   ;;  %s2154_s6 = smov (!%p370_p9, %s369_s6), 143  ;;  %v1721_v34 = vld [vmem:[%s2145_s3 + $0x28] sm:$0xff]  }
  0x2d   : > { %1613 = vmatprep.subr.bf16.mxu0 %v1719_v32  ;;  %s1445_s14 = sshll.u32 %s2154_s6, 2  ;;  %v1722_v35 = vld [vmem:[%s2145_s3 + $0x20] sm:$0xff]   ;;  %v1723_v37 = vld [vmem:[%s2145_s3 + $0x18] sm:$0xff]   ;;  %v1724_v38 = vld [vmem:[%s2145_s3 + $0x10] sm:$0xff]   ;;  %s2027_s6 = scalar_lea.vmem [#allocation3], %s1971_s7 }
  0x2e   : > { %1614 = vmatpush3.bf16.msra.mxu0 %v1719_v32  ;;  %s1985_s22 = scalar_lea.vmem %s2143_s1, %s1445_s14  ;;  %v1727_v36 = vld [vmem:[%s2144_s2] sm:$0xff]   ;;  %v1725_v39 = vld [vmem:[%s2145_s3 + $0x8] sm:$0xff]   ;;  %v1729_v42 = vld [vmem:[%s2144_s2 + $0x10] sm:$0xff]  }
  0x2f   : > { %1615 = vmatprep.subr.bf16.mxu0 %v1720_v33  ;;  %1629 = vmatprep.mubr.bf16.mxu0 %v1727_v36  ;;  %v1726_v40 = vld [vmem:[%s2145_s3] sm:$0xff]   ;;  %v1728_v41 = vld [vmem:[%s2144_s2 + $0x8] sm:$0xff]   ;;  %v1730_v43 = vld [vmem:[%s2144_s2 + $0x18] sm:$0xff]  }
  0x30   : > { %v1731_v44 = vld [vmem:[%s2144_s2 + $0x20] sm:$0xff]   ;;  %v1732_v45 = vld [vmem:[%s2144_s2 + $0x28] sm:$0xff]   ;;  %v1733_v46 = vld [vmem:[%s2144_s2 + $0x30] sm:$0xff]  }
  0x31   : > { %v1734_v47 = vld [vmem:[%s2144_s2 + $0x38] sm:$0xff]  }
  0x32   : > { %1616 = vmatpush3.bf16.msra.mxu0 %v1720_v33 }
  0x33   : > { %1617 = vmatprep.subr.bf16.mxu0 %v1721_v34 }
  0x36   : > { %1618 = vmatpush3.bf16.msra.mxu0 %v1721_v34 }
  0x37   : > { %1619 = vmatprep.subr.bf16.mxu0 %v1722_v35 }
  0x3a   : > { %1620 = vmatpush3.bf16.msra.mxu0 %v1722_v35 }
  0x3b   : > { %1621 = vmatprep.subr.bf16.mxu0 %v1723_v37 }
  0x3e   : > { %1622 = vmatpush3.bf16.msra.mxu0 %v1723_v37 }
  0x3f   : > { %1623 = vmatprep.subr.bf16.mxu0 %v1724_v38 }
  0x42   : > { %1624 = vmatpush3.bf16.msra.mxu0 %v1724_v38 }
  0x43   : > { %1625 = vmatprep.subr.bf16.mxu0 %v1725_v39 }
  0x46   : > { %1626 = vmatpush3.bf16.msra.mxu0 %v1725_v39 }
  0x47   : > { %1627 = vmatprep.subr.bf16.mxu0 %v1726_v40 }
  0x4a   : > { %1628 = vmatpush3.bf16.msra.mxu0 %v1726_v40 }
  0x4d   : > { %1630 = vmatmul.mubr.bf16.vlgmr.msra.gmra.mxu0 %v1728_v41 }
  0x4e   : > { %1633 = vmatprep.mubr.bf16.mxu0 %v1729_v42 }
  0x55   : > { %1634 = vmatmul.mubr.bf16.gmra.mxu0 %v1730_v43 }
  0x56   : > { %1637 = vmatprep.mubr.bf16.mxu0 %v1731_v44 }
  0x5d   : > { %1638 = vmatmul.mubr.bf16.gmra.mxu0 %v1732_v45 }
  0x5e   : > { %1641 = vmatprep.mubr.bf16.mxu0 %v1733_v46 }
  0x65   : > { %1642 = vmatmul.mubr.bf16.gmra.mxu0 %v1734_v47 }
 0x10d   : > { %v1631_v48 = vpop.f32.mrf.mxu0 }
 0x10f   : > { %v560_v49 = vpop.f32.mrf.mxu0 }
 0x111   : > { %v1632_v50 = vpop.f32.mrf.mxu0 }
 0x113   : > { %v563_v51 = vpop.f32.mrf.mxu0 }
 0x115   : > { %v1635_v52 = vpop.f32.mrf.mxu0 }
 0x117   : > { %v576_v53 = vpop.f32.mrf.mxu0 }
 0x119   : > { %v1636_v54 = vpop.f32.mrf.mxu0 }
 0x11b   : > { %v579_v55 = vpop.f32.mrf.mxu0 }
 0x11d   : > { %v1639_v56 = vpop.f32.mrf.mxu0 }
 0x11f   : > { %v592_v57 = vpop.f32.mrf.mxu0 }
 0x121   : > { %v1640_v58 = vpop.f32.mrf.mxu0 }
 0x123   : > { %v595_v59 = vpop.f32.mrf.mxu0 }
 0x125   : > { %v1643_v60 = vpop.f32.mrf.mxu0 }
 0x127   : > { %v608_v61 = vpop.f32.mrf.mxu0  ;;  %626 = sbr.rel (%p1462_p10) target bundleno = 308 (0x134), region = 66 }
 0x129   : > { %v1644_v62 = vpop.f32.mrf.mxu0 }
 0x12b   : > { %v611_v63 = vpop.f32.mrf.mxu0 }
 0x12c   : > { %627 = vst [vmem:[#allocation2 + $0x30] sm:$0xff] %v560_v49  ;;  %628 = vst [vmem:[#allocation2] sm:$0xff] %v563_v51 }
 0x12d   : > { %629 = vst [vmem:[#allocation2 + $0x58] sm:$0xff] %v1631_v48  ;;  %630 = vst [vmem:[#allocation2 + $0x18] sm:$0xff] %v1632_v50 }
 0x12e   : > { %631 = vst [vmem:[#allocation2 + $0x50] sm:$0xff] %v576_v53  ;;  %632 = vst [vmem:[#allocation2 + $0x68] sm:$0xff] %v579_v55 }
 0x12f   : > { %633 = vst [vmem:[#allocation2 + $0x8] sm:$0xff] %v1635_v52  ;;  %634 = vst [vmem:[#allocation2 + $0x48] sm:$0xff] %v1636_v54 }
 0x130   : > { %635 = vst [vmem:[#allocation2 + $0x40] sm:$0xff] %v592_v57  ;;  %636 = vst [vmem:[#allocation2 + $0x20] sm:$0xff] %v595_v59 }
 0x131   : > { %637 = vst [vmem:[#allocation2 + $0x10] sm:$0xff] %v1639_v56  ;;  %638 = vst [vmem:[#allocation2 + $0x38] sm:$0xff] %v1640_v58 }
 0x132   : > { %639 = vst [vmem:[#allocation2 + $0x60] sm:$0xff] %v608_v61  ;;  %640 = vst [vmem:[#allocation2 + $0x70] sm:$0xff] %v611_v63 }
 0x133   : > { %641 = vst [vmem:[#allocation2 + $0x78] sm:$0xff] %v1643_v60  ;;  %642 = vst [vmem:[#allocation2 + $0x28] sm:$0xff] %v1644_v62 }
 0x134 PF: > { %v1735_v0 = vld [vmem:[%s1985_s22 + $0x78] sm:$0xff]   ;;  %v1738_v3 = vld [vmem:[%s1985_s22 + $0x70] sm:$0xff]   ;;  %v1741_v6 = vld [vmem:[%s1985_s22 + $0x68] sm:$0xff]   ;;  %p1511_p11 = scmp.ne.s32.totalorder %s1821_s17, 2 }
 0x135   : > { %v1736_v1 = vld [vmem:[%s1985_s22 + $0x38] sm:$0xff]   ;;  %1533 = vmatprep.subr.bf16.mxu1 %v1735_v0  ;;  %v1739_v4 = vld [vmem:[%s1985_s22 + $0x30] sm:$0xff]   ;;  %v1742_v7 = vld [vmem:[%s1985_s22 + $0x28] sm:$0xff]  }
 0x136   : > { %v1737_v2 = vld [vmem:[%s1985_s22 + $0xb8] sm:$0xff]   ;;  %1534 = vmatpush3.bf16.msra.mxu1 %v1736_v1  ;;  %v1740_v5 = vld [vmem:[%s1985_s22 + $0xb0] sm:$0xff]   ;;  %v1743_v8 = vld [vmem:[%s1985_s22 + $0xa8] sm:$0xff]  }
 0x137   : > { %1645 = vmatprep.subr.bf16.mxu0 %v1737_v2  ;;  %1535 = vmatprep.subr.bf16.mxu1 %v1738_v3  ;;  %v1744_v9 = vld [vmem:[%s1985_s22 + $0x60] sm:$0xff]   ;;  %v1747_v12 = vld [vmem:[%s1985_s22 + $0x58] sm:$0xff]   ;;  %v1750_v15 = vld [vmem:[%s1985_s22 + $0x50] sm:$0xff]  }
 0x138   : > { %1646 = vmatpush3.bf16.msra.mxu0 %v1737_v2  ;;  %v1745_v10 = vld [vmem:[%s1985_s22 + $0x20] sm:$0xff]   ;;  %v1749_v13 = vld [vmem:[%s1985_s22 + $0x98] sm:$0xff]   ;;  %v1752_v16 = vld [vmem:[%s1985_s22 + $0x90] sm:$0xff]  }
 0x139   : > { %1647 = vmatprep.subr.bf16.mxu0 %v1740_v5  ;;  %v1746_v11 = vld [vmem:[%s1985_s22 + $0xa0] sm:$0xff]   ;;  %v1748_v14 = vld [vmem:[%s1985_s22 + $0x18] sm:$0xff]   ;;  %v1751_v17 = vld [vmem:[%s1985_s22 + $0x10] sm:$0xff]  }
 0x13a   : > { %1536 = vmatpush3.bf16.msra.mxu1 %v1739_v4  ;;  %v1753_v18 = vld [vmem:[%s1985_s22 + $0x48] sm:$0xff]   ;;  %v1756_v21 = vld [vmem:[%s1985_s22 + $0x40] sm:$0xff]   ;;  %v1771_v32 = vld [vmem:[%s2027_s6 + $0x50] ss:$12 sps:$4 sm:$0xff]  }
 0x13b   : > { %1537 = vmatprep.subr.bf16.mxu1 %v1741_v6  ;;  %v1754_v19 = vld [vmem:[%s1985_s22 + $0x8] sm:$0xff]   ;;  %v1758_v22 = vld [vmem:[%s1985_s22 + $0x80] sm:$0xff]   ;;  %v1769_v34 = vld [vmem:[%s2027_s6 + $0x30] ss:$12 sps:$4 sm:$0xff]  }
 0x13c   : > { %1648 = vmatpush3.bf16.msra.mxu0 %v1740_v5  ;;  %v1755_v20 = vld [vmem:[%s1985_s22 + $0x88] sm:$0xff]   ;;  %v1761_v23 = vld [vmem:[%s2027_s6 + $0x4] ss:$12 sps:$4 sm:$0xff]   ;;  %v1767_v31 = vld [vmem:[%s2027_s6 + $0x34] ss:$12 sps:$4 sm:$0xff]  }
 0x13d   : > { %1649 = vmatprep.subr.bf16.mxu0 %v1743_v8  ;;  %v1762_v24 = vld [vmem:[%s2027_s6 + $0x8] ss:$12 sps:$4 sm:$0xff]   ;;  %v1757_v25 = vld [vmem:[%s1985_s22] sm:$0xff]   ;;  %1043 = vmatprep.mubr.bf16.mxu1 %v1761_v23  ;;  %v1772_v35 = vld [vmem:[%s2027_s6 + $0x4c] ss:$12 sps:$4 sm:$0xff]  }
 0x13e   : > { %1538 = vmatpush3.bf16.msra.mxu1 %v1742_v7  ;;  %1661 = vmatprep.mubr.bf16.mxu0 %v1762_v24  ;;  %v1759_v26 = vld [vmem:[%s2027_s6] ss:$12 sps:$4 sm:$0xff]   ;;  %v1764_v27 = vld [vmem:[%s2027_s6 + $0x1c] ss:$12 sps:$4 sm:$0xff]   ;;  %v1770_v29 = vld [vmem:[%s2027_s6 + $0x38] ss:$12 sps:$4 sm:$0xff]  }
 0x13f   : > { %1539 = vmatprep.subr.bf16.mxu1 %v1744_v9  ;;  %v1763_v28 = vld [vmem:[%s2027_s6 + $0x20] ss:$12 sps:$4 sm:$0xff]   ;;  %v1766_v30 = vld [vmem:[%s2027_s6 + $0x18] ss:$12 sps:$4 sm:$0xff]   ;;  %v1778_v33 = vld [vmem:[%s2027_s6 + $0x68] ss:$12 sps:$4 sm:$0xff]  }
 0x140   : > { %1650 = vmatpush3.bf16.msra.mxu0 %v1743_v8  ;;  %v1779_v36 = vld [vmem:[%s2027_s6 + $0x80] ss:$12 sps:$4 sm:$0xff]   ;;  %v1786_v37 = vld [vmem:[%s2027_s6 + $0x98] ss:$12 sps:$4 sm:$0xff]   ;;  %v1774_v38 = vld [vmem:[%s2027_s6 + $0x48] ss:$12 sps:$4 sm:$0xff]  }
 0x141   : > { %1651 = vmatprep.subr.bf16.mxu0 %v1746_v11  ;;  %v1775_v39 = vld [vmem:[%s2027_s6 + $0x64] ss:$12 sps:$4 sm:$0xff]   ;;  %v1777_v41 = vld [vmem:[%s2027_s6 + $0x60] ss:$12 sps:$4 sm:$0xff]   ;;  %v1780_v42 = vld [vmem:[%s2027_s6 + $0x7c] ss:$12 sps:$4 sm:$0xff]  }
 0x142   : > { %1540 = vmatpush3.bf16.msra.mxu1 %v1745_v10  ;;  %v1787_v40 = vld [vmem:[%s2027_s6 + $0xb0] ss:$12 sps:$4 sm:$0xff]   ;;  %v1782_v43 = vld [vmem:[%s2027_s6 + $0x78] ss:$12 sps:$4 sm:$0xff]   ;;  %v1783_v44 = vld [vmem:[%s2027_s6 + $0x94] ss:$12 sps:$4 sm:$0xff]  }
 0x143   : > { %1541 = vmatprep.subr.bf16.mxu1 %v1747_v12  ;;  %v1785_v45 = vld [vmem:[%s2027_s6 + $0x90] ss:$12 sps:$4 sm:$0xff]   ;;  %v1788_v46 = vld [vmem:[%s2027_s6 + $0xac] ss:$12 sps:$4 sm:$0xff]   ;;  %v1790_v47 = vld [vmem:[%s2027_s6 + $0xa8] ss:$12 sps:$4 sm:$0xff]  }
 0x144   : > { %1652 = vmatpush3.bf16.msra.mxu0 %v1746_v11  ;;  %v643_v53 = vld [vmem:[#allocation2 + $0x30] sm:$0xff]  ;;  %v644_v61 = vld [vmem:[#allocation2] sm:$0xff]  ;;  %v645_v4 = vld [vmem:[#allocation2 + $0x58] sm:$0xff] }
 0x145   : > { %1653 = vmatprep.subr.bf16.mxu0 %v1749_v13  ;;  %v646_v11 = vld [vmem:[#allocation2 + $0x18] sm:$0xff] }
 0x146   : > { %1542 = vmatpush3.bf16.msra.mxu1 %v1748_v14 }
 0x147   : > { %1543 = vmatprep.subr.bf16.mxu1 %v1750_v15 }
 0x148   : > { %1654 = vmatpush3.bf16.msra.mxu0 %v1749_v13 }
 0x149   : > { %1655 = vmatprep.subr.bf16.mxu0 %v1752_v16 }
 0x14a   : > { %1544 = vmatpush3.bf16.msra.mxu1 %v1751_v17 }
 0x14b   : > { %1545 = vmatprep.subr.bf16.mxu1 %v1753_v18 }
 0x14c   : > { %1656 = vmatpush3.bf16.msra.mxu0 %v1752_v16 }
 0x14d   : > { %1657 = vmatprep.subr.bf16.mxu0 %v1755_v20 }
 0x14e   : > { %1546 = vmatpush3.bf16.msra.mxu1 %v1754_v19  ;;  %v647_v19 = vld [vmem:[#allocation2 + $0x50] sm:$0xff] }
 0x14f   : > { %1547 = vmatprep.subr.bf16.mxu1 %v1756_v21 }
 0x150   : > { %1658 = vmatpush3.bf16.msra.mxu0 %v1755_v20 }
 0x151   : > { %1659 = vmatprep.subr.bf16.mxu0 %v1758_v22 }
 0x152   : > { %1548 = vmatpush3.bf16.msra.mxu1 %v1757_v25 }
 0x154   : > { %1660 = vmatpush3.bf16.msra.mxu0 %v1758_v22 }
 0x155   : > { %1044 = vmatmul.mubr.bf16.vlgmr.msra.gmra.mxu1 %v1759_v26  ;;  %v648_v26 = vld [vmem:[#allocation2 + $0x68] sm:$0xff] }
 0x156   : > { %1051 = vmatprep.mubr.bf16.mxu1 %v1764_v27 }
 0x157   : > { %1662 = vmatmul.mubr.bf16.vlgmr.msra.gmra.mxu0 %v1763_v28 }
 0x158   : > { %1665 = vmatprep.mubr.bf16.mxu0 %v1770_v29 }
 0x15d   : > { %1052 = vmatmul.mubr.bf16.gmra.mxu1 %v1766_v30 }
 0x15e   : > { %1059 = vmatprep.mubr.bf16.mxu1 %v1767_v31 }
 0x15f   : > { %1666 = vmatmul.mubr.bf16.gmra.mxu0 %v1771_v32  ;;  %v649_v32 = vld [vmem:[#allocation2 + $0x8] sm:$0xff] }
 0x160   : > { %1669 = vmatprep.mubr.bf16.mxu0 %v1778_v33 }
 0x165   : > { %1060 = vmatmul.mubr.bf16.gmra.mxu1 %v1769_v34 }
 0x166   : > { %1067 = vmatprep.mubr.bf16.mxu1 %v1772_v35 }
 0x167   : > { %1670 = vmatmul.mubr.bf16.gmra.mxu0 %v1779_v36 }
 0x168   : > { %1673 = vmatprep.mubr.bf16.mxu0 %v1786_v37 }
 0x16d   : > { %1068 = vmatmul.mubr.bf16.gmra.mxu1 %v1774_v38 }
 0x16e   : > { %1075 = vmatprep.mubr.bf16.mxu1 %v1775_v39  ;;  %v650_v39 = vld [vmem:[#allocation2 + $0x48] sm:$0xff] }
 0x16f   : > { %1674 = vmatmul.mubr.bf16.gmra.mxu0 %v1787_v40 }
 0x175   : > { %1076 = vmatmul.mubr.bf16.gmra.mxu1 %v1777_v41 }
 0x176   : > { %1083 = vmatprep.mubr.bf16.mxu1 %v1780_v42 }
 0x17d   : > { %1084 = vmatmul.mubr.bf16.gmra.mxu1 %v1782_v43 }
 0x17e   : > { %1091 = vmatprep.mubr.bf16.mxu1 %v1783_v44 }
 0x185   : > { %1092 = vmatmul.mubr.bf16.gmra.mxu1 %v1785_v45 }
 0x186   : > { %1099 = vmatprep.mubr.bf16.mxu1 %v1788_v46 }
 0x18d   : > { %1100 = vmatmul.mubr.bf16.gmra.mxu1 %v1790_v47  ;;  %v651_v47 = vld [vmem:[#allocation2 + $0x40] sm:$0xff] }
 0x215   : > { %v1549_v48 = vpop.f32.mrf.mxu1 }
 0x217   : > { %v1550_v49 = vpop.f32.mrf.mxu1  ;;  %v1663_v50 = vpop.f32.mrf.mxu0 }
 0x218   : > { %v1551_v51 = vadd.f32 %v1550_v49, %v1549_v48 }
 0x219   : > { %v1552_v52 = vpop.f32.mrf.mxu1  ;;  %v1142_v54 = vpop.f32.mrf.mxu0 }
 0x21a   : > { %v1143_v55 = vadd.f32 %v1551_v51, %v1142_v54  ;;  %v652_v54 = vld [vmem:[#allocation2 + $0x20] sm:$0xff] }
 0x21b   : > { %v1553_v56 = vpop.f32.mrf.mxu1  ;;  %v1664_v57 = vpop.f32.mrf.mxu0 }
 0x21c   : > { %v1205_v58 = vadd.f32 %v1143_v55, %v643_v53  ;;  %v1554_v59 = vadd.f32 %v1553_v56, %v1552_v52 }
 0x21d   : > { %v1555_v60 = vpop.f32.mrf.mxu1  ;;  %v1145_v62 = vpop.f32.mrf.mxu0 }
 0x21e   : > { %1221 = vst [vmem:[#allocation2 + $0x30] sm:$0xff] %v1205_v58  ;;  %v1146_v63 = vadd.f32 %v1554_v59, %v1145_v62 }
 0x21f   : > { %v1556_v0 = vpop.f32.mrf.mxu1  ;;  %v1667_v1 = vpop.f32.mrf.mxu0 }
 0x220   : > { %v1206_v2 = vadd.f32 %v1146_v63, %v644_v61  ;;  %v1557_v3 = vadd.f32 %v1556_v0, %v1555_v60  ;;  %v653_v60 = vld [vmem:[#allocation2 + $0x10] sm:$0xff] }
 0x221   : > { %v1558_v5 = vpop.f32.mrf.mxu1  ;;  %v1158_v8 = vpop.f32.mrf.mxu0 }
 0x222   : > { %1222 = vst [vmem:[#allocation2] sm:$0xff] %v1206_v2  ;;  %v1151_v6 = vadd.f32 %v1663_v50, %v1557_v3  ;;  %v654_v3 = vld [vmem:[#allocation2 + $0x38] sm:$0xff] }
 0x223   : > { %v1559_v7 = vpop.f32.mrf.mxu1  ;;  %v1668_v15 = vpop.f32.mrf.mxu0 }
 0x224   : > { %v1207_v9 = vadd.f32 %v1151_v6, %v645_v4  ;;  %v1560_v10 = vadd.f32 %v1559_v7, %v1558_v5 }
 0x225   : > { %v1561_v12 = vpop.f32.mrf.mxu1  ;;  %v1161_v22 = vpop.f32.mrf.mxu0 }
 0x226   : > { %1223 = vst [vmem:[#allocation2 + $0x58] sm:$0xff] %v1207_v9  ;;  %v1154_v13 = vadd.f32 %v1664_v57, %v1560_v10 }
 0x227   : > { %v1562_v14 = vpop.f32.mrf.mxu1  ;;  %v1671_v29 = vpop.f32.mrf.mxu0 }
 0x228   : > { %v1208_v16 = vadd.f32 %v1154_v13, %v646_v11  ;;  %v1563_v17 = vadd.f32 %v1562_v14, %v1561_v12  ;;  %v655_v11 = vld [vmem:[#allocation2 + $0x60] sm:$0xff] }
 0x229   : > { %v1564_v18 = vpop.f32.mrf.mxu1  ;;  %v1174_v36 = vpop.f32.mrf.mxu0 }
 0x22a   : > { %1224 = vst [vmem:[#allocation2 + $0x18] sm:$0xff] %v1208_v16  ;;  %v1159_v20 = vadd.f32 %v1563_v17, %v1158_v8 }
 0x22b   : > { %v1565_v21 = vpop.f32.mrf.mxu1  ;;  %v1672_v43 = vpop.f32.mrf.mxu0 }
 0x22c   : > { %v1209_v23 = vadd.f32 %v1159_v20, %v647_v19  ;;  %v1566_v24 = vadd.f32 %v1565_v21, %v1564_v18  ;;  %v656_v18 = vld [vmem:[#allocation2 + $0x70] sm:$0xff] }
 0x22d   : > { %v1567_v25 = vpop.f32.mrf.mxu1  ;;  %v1177_v50 = vpop.f32.mrf.mxu0 }
 0x22e   : > { %1225 = vst [vmem:[#allocation2 + $0x50] sm:$0xff] %v1209_v23  ;;  %v1162_v27 = vadd.f32 %v1566_v24, %v1161_v22  ;;  %v657_v23 = vld [vmem:[#allocation2 + $0x78] sm:$0xff] }
 0x22f   : > { %v1568_v28 = vpop.f32.mrf.mxu1  ;;  %v1675_v57 = vpop.f32.mrf.mxu0 }
 0x230   : > { %v1210_v30 = vadd.f32 %v1162_v27, %v648_v26  ;;  %v1569_v31 = vadd.f32 %v1568_v28, %v1567_v25 }
 0x231   : > { %v1570_v33 = vpop.f32.mrf.mxu1  ;;  %v1190_v0 = vpop.f32.mrf.mxu0 }
 0x232   : > { %1226 = vst [vmem:[#allocation2 + $0x68] sm:$0xff] %v1210_v30  ;;  %v1167_v34 = vadd.f32 %v1667_v1, %v1569_v31 }
 0x233   : > { %v1571_v35 = vpop.f32.mrf.mxu1  ;;  %v1676_v7 = vpop.f32.mrf.mxu0 }
 0x234   : > { %v1211_v37 = vadd.f32 %v1167_v34, %v649_v32  ;;  %v1572_v38 = vadd.f32 %v1571_v35, %v1570_v33 }
 0x235   : > { %v1573_v40 = vpop.f32.mrf.mxu1  ;;  %v1193_v14 = vpop.f32.mrf.mxu0 }
 0x236   : > { %1227 = vst [vmem:[#allocation2 + $0x8] sm:$0xff] %v1211_v37  ;;  %v1170_v41 = vadd.f32 %v1668_v15, %v1572_v38 }
 0x237   : > { %v1574_v42 = vpop.f32.mrf.mxu1 }
 0x238   : > { %v1212_v44 = vadd.f32 %v1170_v41, %v650_v39  ;;  %v1575_v45 = vadd.f32 %v1574_v42, %v1573_v40 }
 0x239   : > { %v1576_v46 = vpop.f32.mrf.mxu1 }
 0x23a   : > { %1228 = vst [vmem:[#allocation2 + $0x48] sm:$0xff] %v1212_v44  ;;  %v1175_v48 = vadd.f32 %v1575_v45, %v1174_v36 }
 0x23b   : > { %v1577_v49 = vpop.f32.mrf.mxu1 }
 0x23c   : > { %v1213_v51 = vadd.f32 %v1175_v48, %v651_v47  ;;  %v1578_v52 = vadd.f32 %v1577_v49, %v1576_v46 }
 0x23d   : > { %v1579_v53 = vpop.f32.mrf.mxu1 }
 0x23e   : > { %1229 = vst [vmem:[#allocation2 + $0x40] sm:$0xff] %v1213_v51  ;;  %v1178_v55 = vadd.f32 %v1578_v52, %v1177_v50 }
 0x23f   : > { %v1580_v56 = vpop.f32.mrf.mxu1 }
 0x240   : > { %v1214_v58 = vadd.f32 %v1178_v55, %v652_v54  ;;  %v1581_v59 = vadd.f32 %v1580_v56, %v1579_v53 }
 0x241   : > { %v1582_v61 = vpop.f32.mrf.mxu1 }
 0x242   : > { %1230 = vst [vmem:[#allocation2 + $0x20] sm:$0xff] %v1214_v58  ;;  %v1183_v62 = vadd.f32 %v1671_v29, %v1581_v59  ;;  %v658_v29 = vld [vmem:[#allocation2 + $0x28] sm:$0xff] }
 0x243   : > { %v1583_v63 = vpop.f32.mrf.mxu1 }
 0x244   : > { %v1215_v1 = vadd.f32 %v1183_v62, %v653_v60  ;;  %v1584_v2 = vadd.f32 %v1583_v63, %v1582_v61 }
 0x245   : > { %v1585_v4 = vpop.f32.mrf.mxu1 }
 0x246   : > { %1231 = vst [vmem:[#allocation2 + $0x10] sm:$0xff] %v1215_v1  ;;  %v1186_v5 = vadd.f32 %v1672_v43, %v1584_v2 }
 0x247   : > { %v1586_v6 = vpop.f32.mrf.mxu1 }
 0x248   : > { %v1216_v8 = vadd.f32 %v1186_v5, %v654_v3  ;;  %v1587_v9 = vadd.f32 %v1586_v6, %v1585_v4 }
 0x249   : > { %v1588_v10 = vpop.f32.mrf.mxu1 }
 0x24a   : > { %1232 = vst [vmem:[#allocation2 + $0x38] sm:$0xff] %v1216_v8  ;;  %v1191_v12 = vadd.f32 %v1587_v9, %v1190_v0 }
 0x24b   : > { %v1589_v13 = vpop.f32.mrf.mxu1 }
 0x24c   : > { %v1217_v15 = vadd.f32 %v1191_v12, %v655_v11  ;;  %v1590_v16 = vadd.f32 %v1589_v13, %v1588_v10 }
 0x24d   : > { %v1591_v17 = vpop.f32.mrf.mxu1 }
 0x24e   : > { %1233 = vst [vmem:[#allocation2 + $0x60] sm:$0xff] %v1217_v15  ;;  %v1194_v19 = vadd.f32 %v1590_v16, %v1193_v14 }
 0x24f   : > { %v1592_v20 = vpop.f32.mrf.mxu1 }
 0x250   : > { %v1218_v21 = vadd.f32 %v1194_v19, %v656_v18  ;;  %v1593_v22 = vadd.f32 %v1592_v20, %v1591_v17 }
 0x251   : > { %v1594_v24 = vpop.f32.mrf.mxu1 }
 0x252   : > { %1234 = vst [vmem:[#allocation2 + $0x70] sm:$0xff] %v1218_v21  ;;  %v1199_v25 = vadd.f32 %v1675_v57, %v1593_v22 }
 0x253   : > { %v1595_v26 = vpop.f32.mrf.mxu1 }
 0x254   : > { %v1219_v27 = vadd.f32 %v1199_v25, %v657_v23  ;;  %v1596_v28 = vadd.f32 %v1595_v26, %v1594_v24 }
 0x256   : > { %1235 = vst [vmem:[#allocation2 + $0x78] sm:$0xff] %v1219_v27  ;;  %v1202_v30 = vadd.f32 %v1676_v7, %v1596_v28  ;;  %1240 = sbr.rel (%p1511_p11) target bundleno = 612 (0x264), region = 70 }
 0x258   : > { %v1220_v31 = vadd.f32 %v1202_v30, %v658_v29 }
 0x25a   : > { %1236 = vst [vmem:[#allocation2 + $0x28] sm:$0xff] %v1220_v31 }
 0x25b   : > { %v1241_v32 = vld [vmem:[#allocation2 + $0x30] sm:$0xff]  ;;  %v1242_v33 = vld [vmem:[#allocation2] sm:$0xff]  ;;  %v1243_v34 = vld [vmem:[#allocation2 + $0x58] sm:$0xff] }
 0x25c   : > { %1257 = vst [vmem:[%s2146_s4] sm:$0xff] %v1241_v32  ;;  %1258 = vst [vmem:[%s2146_s4 + $0x8] sm:$0xff] %v1242_v33  ;;  %v1244_v35 = vld [vmem:[#allocation2 + $0x18] sm:$0xff]  ;;  %v1245_v36 = vld [vmem:[#allocation2 + $0x50] sm:$0xff] }
 0x25d   : > { %1259 = vst [vmem:[%s2146_s4 + $0x10] sm:$0xff] %v1243_v34  ;;  %v1246_v37 = vld [vmem:[#allocation2 + $0x68] sm:$0xff]  ;;  %1260 = vst [vmem:[%s2146_s4 + $0x18] sm:$0xff] %v1244_v35  ;;  %v1249_v40 = vld [vmem:[#allocation2 + $0x40] sm:$0xff] }
 0x25e   : > { %1261 = vst [vmem:[%s2146_s4 + $0x20] sm:$0xff] %v1245_v36  ;;  %1262 = vst [vmem:[%s2146_s4 + $0x28] sm:$0xff] %v1246_v37  ;;  %v1247_v38 = vld [vmem:[#allocation2 + $0x8] sm:$0xff]  ;;  %v1250_v41 = vld [vmem:[#allocation2 + $0x20] sm:$0xff] }
 0x25f   : > { %v1248_v39 = vld [vmem:[#allocation2 + $0x48] sm:$0xff]  ;;  %1263 = vst [vmem:[%s2146_s4 + $0x30] sm:$0xff] %v1247_v38  ;;  %1265 = vst [vmem:[%s2146_s4 + $0x40] sm:$0xff] %v1249_v40  ;;  %v1251_v42 = vld [vmem:[#allocation2 + $0x10] sm:$0xff] }
 0x260   : > { %1264 = vst [vmem:[%s2146_s4 + $0x38] sm:$0xff] %v1248_v39  ;;  %v1252_v43 = vld [vmem:[#allocation2 + $0x38] sm:$0xff]  ;;  %1266 = vst [vmem:[%s2146_s4 + $0x48] sm:$0xff] %v1250_v41  ;;  %v1253_v44 = vld [vmem:[#allocation2 + $0x60] sm:$0xff] }
 0x261   : > { %1267 = vst [vmem:[%s2146_s4 + $0x50] sm:$0xff] %v1251_v42  ;;  %1268 = vst [vmem:[%s2146_s4 + $0x58] sm:$0xff] %v1252_v43  ;;  %v1254_v45 = vld [vmem:[#allocation2 + $0x70] sm:$0xff]  ;;  %v1255_v46 = vld [vmem:[#allocation2 + $0x78] sm:$0xff] }
 0x262   : > { %1269 = vst [vmem:[%s2146_s4 + $0x60] sm:$0xff] %v1253_v44  ;;  %1270 = vst [vmem:[%s2146_s4 + $0x68] sm:$0xff] %v1254_v45  ;;  %v1256_v47 = vld [vmem:[#allocation2 + $0x28] sm:$0xff] }
 0x263   : > { %1271 = vst [vmem:[%s2146_s4 + $0x70] sm:$0xff] %v1255_v46  ;;  %1272 = vst [vmem:[%s2146_s4 + $0x78] sm:$0xff] %v1256_v47 }
 0x264 PF: > { %s14_s19 = sadd.s32 1, %s1829_s19   ;;  %s2147_s15 = smov %s1817_s16 }
 0x265   : > { %p11_p12 = scmp.ge.s32.totalorder %s14_s19, 5   ;;  %s2148_s16 = smov %s1891_s23 }
 0x266   : > { %s2149_s17 = smov %s1825_s18  ;;  %s2150_s18 = smov %s2152_s20 }
 0x267   :  { %13 = sbr.rel (!%p11_p12) target bundleno = 3 (0x3), region = 120 }

</bundles_post_ra>
